<compile_context>
chip_gen: v7x
topology: tpu7x:2x2x1
jax: 0.10.0
libtpu: 0.0.40
codegen_flags: <defaults>
</compile_context>

<pallas_src>
import functools

import jax
import jax.numpy as jnp
import numpy as np
from jax import lax
from jax.experimental import pallas as pl
from jax.experimental.pallas import tpu as pltpu


# ----------------------------- Fused kernel -------------------------------------
def _fused_dtw_kernel(x_ref, y_ref, out_ref, *, n, m, band_radius):
    # x_ref: (n, d, BB)   y_ref: (m, d, BB)   out_ref: (1, BB)   batch on lanes.
    f32 = jnp.float32

    def normalize(ref, k):
        v = ref[k].astype(f32)                                   # (d, BB)
        ss = jnp.sum(v * v, axis=0, keepdims=True)               # (1, BB)
        # F.normalize(p=2, eps=1e-12): v / max(||v||, 1e-12) == v * rsqrt(max(||v||^2, 1e-24))
        return v * lax.rsqrt(jnp.maximum(ss, 1e-24))

    xn = [normalize(x_ref, i) for i in range(n)]
    yn = [normalize(y_ref, j) for j in range(m)]

    # Cosine distance, batch on lanes: dist[i][j] is (1, BB).
    dist = [
        [
            1.0 - jnp.clip(jnp.sum(xn[i] * yn[j], axis=0, keepdims=True), -1.0, 1.0)
            for j in range(m)
        ]
        for i in range(n)
    ]

    inf_v = jnp.full(out_ref.shape, jnp.inf, dtype=f32)          # (1, BB)

    # --- banded DTW forward DP, fully unrolled over the tiny static n x m ---
    # row 0
    prev = [inf_v] * m
    prev[0] = dist[0][0]
    for j in range(1, min(m, band_radius + 1)):
        prev[j] = prev[j - 1] + dist[0][j]

    # rows 1..n-1
    for i in range(1, n):
        cur = [inf_v] * m
        if i < min(n, band_radius + 1):                          # column-0 band init
            cur[0] = prev[0] + dist[i][0]
        for j in range(max(1, i - band_radius), min(m, i + band_radius + 1)):
            best = jnp.minimum(jnp.minimum(prev[j], prev[j - 1]), cur[j - 1])
            cur[j] = best + dist[i][j]
        prev = cur

    out_ref[...] = prev[m - 1].astype(out_ref.dtype)


# ----------------------------- Wrapper ------------------------------------------
def fast_dtw_embedding_similarity(seq1, seq2, band_radius=None):
    """Equivalent of FastDTWEmbeddingSimilarity(distance_metric='cosine').forward."""
    orig_2d = (seq1.ndim == 2 and seq2.ndim == 2)
    if seq1.ndim == 2:
        seq1 = seq1[None]
    if seq2.ndim == 2:
        seq2 = seq2[None]
    seq1 = jnp.asarray(seq1)   # keep caller dtype (bf16 inputs halve DMA bytes)
    seq2 = jnp.asarray(seq2)
    B, n, d = seq1.shape
    B2, m, d2 = seq2.shape
    assert B == B2 and d == d2, "batch / embedding dims of seq1 and seq2 must match"
    if band_radius is None:
        band_radius = min(n, m) // 2
    band_radius = int(band_radius)

    # Batch block size (lane axis inside the kernel).
    itemsize = max(jnp.dtype(seq1.dtype).itemsize, jnp.dtype(seq2.dtype).itemsize)
    block_b = 128
    while block_b < 512 and B >= 4 * block_b:       # keep >=2 grid steps for v7x's 2 TCs
        block_b *= 2
    # VMEM guard (2 inputs x 2 pipeline buffers); conservative for v7x's smaller VMEM.
    while block_b > 128 and 2 * 2 * block_b * (n + m) * d * itemsize > (16 << 20):
        block_b //= 2

    num_blocks = pl.cdiv(B, block_b)
    b_pad = num_blocks * block_b

    # Layout plumbing (not compute): put batch on the last (lane) axis, pad batch.
    x_t = jnp.transpose(seq1, (1, 2, 0))            # (n, d, B)
    y_t = jnp.transpose(seq2, (1, 2, 0))            # (m, d, B)
    if b_pad != B:
        x_t = jnp.pad(x_t, ((0, 0), (0, 0), (0, b_pad - B)))
        y_t = jnp.pad(y_t, ((0, 0), (0, 0), (0, b_pad - B)))

    out = pl.pallas_call(
        functools.partial(_fused_dtw_kernel, n=n, m=m, band_radius=band_radius),
        out_shape=jax.ShapeDtypeStruct((1, b_pad), jnp.float32),
        grid=(num_blocks,),
        in_specs=[
            pl.BlockSpec((n, d, block_b), lambda b: (0, 0, b)),
            pl.BlockSpec((m, d, block_b), lambda b: (0, 0, b)),
        ],
        out_specs=pl.BlockSpec((1, block_b), lambda b: (0, b)),   # lane-dense output
        compiler_params=pltpu.CompilerParams(dimension_semantics=("parallel",)),
    )(x_t, y_t)

    dtw = out[0, :B]
    if orig_2d:
        return dtw[0]
    return dtw


# ----------------------------- Pure-numpy reference ------------------------------
def _reference(seq1, seq2, band_radius=None):
    x = np.asarray(seq1, np.float64)
    y = np.asarray(seq2, np.float64)
    if x.ndim == 2:
        x = x[None]
    if y.ndim == 2:
        y = y[None]
    B, n, _ = x.shape
    _, m, _ = y.shape
    xn = x / np.maximum(np.linalg.norm(x, axis=-1, keepdims=True), 1e-12)
    yn = y / np.maximum(np.linalg.norm(y, axis=-1, keepdims=True), 1e-12)
    dist = 1.0 - np.clip(np.einsum("bnd,bmd->bnm", xn, yn), -1.0, 1.0)
    if band_radius is None:
        band_radius = min(n, m) // 2
    acc = np.full((B, n, m), np.inf)
    acc[:, 0, 0] = dist[:, 0, 0]
    for i in range(1, min(n, band_radius + 1)):
        acc[:, i, 0] = acc[:, i - 1, 0] + dist[:, i, 0]
    for j in range(1, min(m, band_radius + 1)):
        acc[:, 0, j] = acc[:, 0, j - 1] + dist[:, 0, j]
    for i in range(1, n):
        for j in range(max(1, i - band_radius), min(m, i + band_radius + 1)):
            prev = np.minimum(np.minimum(acc[:, i - 1, j], acc[:, i, j - 1]),
                              acc[:, i - 1, j - 1])
            acc[:, i, j] = prev + dist[:, i, j]
    return acc[:, n - 1, m - 1]


if __name__ == "__main__":
    # Module has no learnable parameters; deterministic inputs only.
    B, N_LAYERS, EMB = 2, 8, 32
    key = jax.random.PRNGKey(0)
    k1, k2 = jax.random.split(key)
    seq1 = jax.random.normal(k1, (B, N_LAYERS, EMB), dtype=jnp.float32)
    seq2 = jax.random.normal(k2, (B, N_LAYERS, EMB), dtype=jnp.float32)

    out = fast_dtw_embedding_similarity(seq1, seq2)
    out = jax.block_until_ready(out)

    ref = _reference(np.asarray(seq1), np.asarray(seq2))
    np.testing.assert_allclose(np.asarray(out), ref, rtol=2e-3, atol=2e-3)
    print("KERNEL_OK")
</pallas_src>

<mosaic_0001>
module attributes {stable_mosaic.version = 11 : i64} {
  func.func @_fused_dtw_kernel(%arg0: i32, %arg1: memref<8x32x128xf32, #tpu.memory_space<vmem>>, %arg2: memref<8x32x128xf32, #tpu.memory_space<vmem>>, %arg3: memref<1x128xf32, #tpu.memory_space<vmem>>) attributes {dimension_semantics = [#tpu.dimension_semantics<parallel>], iteration_bounds = array<i64: 1>, scalar_prefetch = 0 : i64, scratch_operands = 0 : i64, tpu.core_type = #tpu.core_type<tc>, window_params = [{transform_indices = @transform_0, window_bounds = array<i64: 8, 32, 128>}, {transform_indices = @transform_1, window_bounds = array<i64: 8, 32, 128>}, {transform_indices = @transform_2, window_bounds = array<i64: 1, 128>}]} {
    %c0 = arith.constant 0 : index
    %c0_0 = arith.constant 0 : index
    %c0_1 = arith.constant 0 : index
    %0 = vector.load %arg1[%c0, %c0_0, %c0_1] : memref<8x32x128xf32, #tpu.memory_space<vmem>>, vector<1x32x128xf32>
    %1 = vector.shape_cast %0 : vector<1x32x128xf32> to vector<32x128xf32>
    %2 = arith.mulf %1, %1 : vector<32x128xf32>
    %cst = arith.constant dense<0.000000e+00> : vector<128xf32>
    %3 = vector.multi_reduction <add>, %2, %cst [0] : vector<32x128xf32> to vector<128xf32>
    %4 = vector.shape_cast %3 : vector<128xf32> to vector<1x128xf32>
    %cst_2 = arith.constant 1.000000e-24 : f32
    %5 = vector.broadcast %cst_2 : f32 to vector<1x128xf32>
    %6 = arith.maximumf %4, %5 : vector<1x128xf32>
    %7 = math.rsqrt %6 : vector<1x128xf32>
    %8 = vector.broadcast %7 : vector<1x128xf32> to vector<32x128xf32>
    %9 = arith.mulf %1, %8 : vector<32x128xf32>
    %c1 = arith.constant 1 : index
    %c0_3 = arith.constant 0 : index
    %c0_4 = arith.constant 0 : index
    %10 = vector.load %arg1[%c1, %c0_3, %c0_4] : memref<8x32x128xf32, #tpu.memory_space<vmem>>, vector<1x32x128xf32>
    %11 = vector.shape_cast %10 : vector<1x32x128xf32> to vector<32x128xf32>
    %12 = arith.mulf %11, %11 : vector<32x128xf32>
    %cst_5 = arith.constant dense<0.000000e+00> : vector<128xf32>
    %13 = vector.multi_reduction <add>, %12, %cst_5 [0] : vector<32x128xf32> to vector<128xf32>
    %14 = vector.shape_cast %13 : vector<128xf32> to vector<1x128xf32>
    %cst_6 = arith.constant 1.000000e-24 : f32
    %15 = vector.broadcast %cst_6 : f32 to vector<1x128xf32>
    %16 = arith.maximumf %14, %15 : vector<1x128xf32>
    %17 = math.rsqrt %16 : vector<1x128xf32>
    %18 = vector.broadcast %17 : vector<1x128xf32> to vector<32x128xf32>
    %19 = arith.mulf %11, %18 : vector<32x128xf32>
    %c2 = arith.constant 2 : index
    %c0_7 = arith.constant 0 : index
    %c0_8 = arith.constant 0 : index
    %20 = vector.load %arg1[%c2, %c0_7, %c0_8] : memref<8x32x128xf32, #tpu.memory_space<vmem>>, vector<1x32x128xf32>
    %21 = vector.shape_cast %20 : vector<1x32x128xf32> to vector<32x128xf32>
    %22 = arith.mulf %21, %21 : vector<32x128xf32>
    %cst_9 = arith.constant dense<0.000000e+00> : vector<128xf32>
    %23 = vector.multi_reduction <add>, %22, %cst_9 [0] : vector<32x128xf32> to vector<128xf32>
    %24 = vector.shape_cast %23 : vector<128xf32> to vector<1x128xf32>
    %cst_10 = arith.constant 1.000000e-24 : f32
    %25 = vector.broadcast %cst_10 : f32 to vector<1x128xf32>
    %26 = arith.maximumf %24, %25 : vector<1x128xf32>
    %27 = math.rsqrt %26 : vector<1x128xf32>
    %28 = vector.broadcast %27 : vector<1x128xf32> to vector<32x128xf32>
    %29 = arith.mulf %21, %28 : vector<32x128xf32>
    %c3 = arith.constant 3 : index
    %c0_11 = arith.constant 0 : index
    %c0_12 = arith.constant 0 : index
    %30 = vector.load %arg1[%c3, %c0_11, %c0_12] : memref<8x32x128xf32, #tpu.memory_space<vmem>>, vector<1x32x128xf32>
    %31 = vector.shape_cast %30 : vector<1x32x128xf32> to vector<32x128xf32>
    %32 = arith.mulf %31, %31 : vector<32x128xf32>
    %cst_13 = arith.constant dense<0.000000e+00> : vector<128xf32>
    %33 = vector.multi_reduction <add>, %32, %cst_13 [0] : vector<32x128xf32> to vector<128xf32>
    %34 = vector.shape_cast %33 : vector<128xf32> to vector<1x128xf32>
    %cst_14 = arith.constant 1.000000e-24 : f32
    %35 = vector.broadcast %cst_14 : f32 to vector<1x128xf32>
    %36 = arith.maximumf %34, %35 : vector<1x128xf32>
    %37 = math.rsqrt %36 : vector<1x128xf32>
    %38 = vector.broadcast %37 : vector<1x128xf32> to vector<32x128xf32>
    %39 = arith.mulf %31, %38 : vector<32x128xf32>
    %c4 = arith.constant 4 : index
    %c0_15 = arith.constant 0 : index
    %c0_16 = arith.constant 0 : index
    %40 = vector.load %arg1[%c4, %c0_15, %c0_16] : memref<8x32x128xf32, #tpu.memory_space<vmem>>, vector<1x32x128xf32>
    %41 = vector.shape_cast %40 : vector<1x32x128xf32> to vector<32x128xf32>
    %42 = arith.mulf %41, %41 : vector<32x128xf32>
    %cst_17 = arith.constant dense<0.000000e+00> : vector<128xf32>
    %43 = vector.multi_reduction <add>, %42, %cst_17 [0] : vector<32x128xf32> to vector<128xf32>
    %44 = vector.shape_cast %43 : vector<128xf32> to vector<1x128xf32>
    %cst_18 = arith.constant 1.000000e-24 : f32
    %45 = vector.broadcast %cst_18 : f32 to vector<1x128xf32>
    %46 = arith.maximumf %44, %45 : vector<1x128xf32>
    %47 = math.rsqrt %46 : vector<1x128xf32>
    %48 = vector.broadcast %47 : vector<1x128xf32> to vector<32x128xf32>
    %49 = arith.mulf %41, %48 : vector<32x128xf32>
    %c5 = arith.constant 5 : index
    %c0_19 = arith.constant 0 : index
    %c0_20 = arith.constant 0 : index
    %50 = vector.load %arg1[%c5, %c0_19, %c0_20] : memref<8x32x128xf32, #tpu.memory_space<vmem>>, vector<1x32x128xf32>
    %51 = vector.shape_cast %50 : vector<1x32x128xf32> to vector<32x128xf32>
    %52 = arith.mulf %51, %51 : vector<32x128xf32>
    %cst_21 = arith.constant dense<0.000000e+00> : vector<128xf32>
    %53 = vector.multi_reduction <add>, %52, %cst_21 [0] : vector<32x128xf32> to vector<128xf32>
    %54 = vector.shape_cast %53 : vector<128xf32> to vector<1x128xf32>
    %cst_22 = arith.constant 1.000000e-24 : f32
    %55 = vector.broadcast %cst_22 : f32 to vector<1x128xf32>
    %56 = arith.maximumf %54, %55 : vector<1x128xf32>
    %57 = math.rsqrt %56 : vector<1x128xf32>
    %58 = vector.broadcast %57 : vector<1x128xf32> to vector<32x128xf32>
    %59 = arith.mulf %51, %58 : vector<32x128xf32>
    %c6 = arith.constant 6 : index
    %c0_23 = arith.constant 0 : index
    %c0_24 = arith.constant 0 : index
    %60 = vector.load %arg1[%c6, %c0_23, %c0_24] : memref<8x32x128xf32, #tpu.memory_space<vmem>>, vector<1x32x128xf32>
    %61 = vector.shape_cast %60 : vector<1x32x128xf32> to vector<32x128xf32>
    %62 = arith.mulf %61, %61 : vector<32x128xf32>
    %cst_25 = arith.constant dense<0.000000e+00> : vector<128xf32>
    %63 = vector.multi_reduction <add>, %62, %cst_25 [0] : vector<32x128xf32> to vector<128xf32>
    %64 = vector.shape_cast %63 : vector<128xf32> to vector<1x128xf32>
    %cst_26 = arith.constant 1.000000e-24 : f32
    %65 = vector.broadcast %cst_26 : f32 to vector<1x128xf32>
    %66 = arith.maximumf %64, %65 : vector<1x128xf32>
    %67 = math.rsqrt %66 : vector<1x128xf32>
    %68 = vector.broadcast %67 : vector<1x128xf32> to vector<32x128xf32>
    %69 = arith.mulf %61, %68 : vector<32x128xf32>
    %c7 = arith.constant 7 : index
    %c0_27 = arith.constant 0 : index
    %c0_28 = arith.constant 0 : index
    %70 = vector.load %arg1[%c7, %c0_27, %c0_28] : memref<8x32x128xf32, #tpu.memory_space<vmem>>, vector<1x32x128xf32>
    %71 = vector.shape_cast %70 : vector<1x32x128xf32> to vector<32x128xf32>
    %72 = arith.mulf %71, %71 : vector<32x128xf32>
    %cst_29 = arith.constant dense<0.000000e+00> : vector<128xf32>
    %73 = vector.multi_reduction <add>, %72, %cst_29 [0] : vector<32x128xf32> to vector<128xf32>
    %74 = vector.shape_cast %73 : vector<128xf32> to vector<1x128xf32>
    %cst_30 = arith.constant 1.000000e-24 : f32
    %75 = vector.broadcast %cst_30 : f32 to vector<1x128xf32>
    %76 = arith.maximumf %74, %75 : vector<1x128xf32>
    %77 = math.rsqrt %76 : vector<1x128xf32>
    %78 = vector.broadcast %77 : vector<1x128xf32> to vector<32x128xf32>
    %79 = arith.mulf %71, %78 : vector<32x128xf32>
    %c0_31 = arith.constant 0 : index
    %c0_32 = arith.constant 0 : index
    %c0_33 = arith.constant 0 : index
    %80 = vector.load %arg2[%c0_31, %c0_32, %c0_33] : memref<8x32x128xf32, #tpu.memory_space<vmem>>, vector<1x32x128xf32>
    %81 = vector.shape_cast %80 : vector<1x32x128xf32> to vector<32x128xf32>
    %82 = arith.mulf %81, %81 : vector<32x128xf32>
    %cst_34 = arith.constant dense<0.000000e+00> : vector<128xf32>
    %83 = vector.multi_reduction <add>, %82, %cst_34 [0] : vector<32x128xf32> to vector<128xf32>
    %84 = vector.shape_cast %83 : vector<128xf32> to vector<1x128xf32>
    %cst_35 = arith.constant 1.000000e-24 : f32
    %85 = vector.broadcast %cst_35 : f32 to vector<1x128xf32>
    %86 = arith.maximumf %84, %85 : vector<1x128xf32>
    %87 = math.rsqrt %86 : vector<1x128xf32>
    %88 = vector.broadcast %87 : vector<1x128xf32> to vector<32x128xf32>
    %89 = arith.mulf %81, %88 : vector<32x128xf32>
    %c1_36 = arith.constant 1 : index
    %c0_37 = arith.constant 0 : index
    %c0_38 = arith.constant 0 : index
    %90 = vector.load %arg2[%c1_36, %c0_37, %c0_38] : memref<8x32x128xf32, #tpu.memory_space<vmem>>, vector<1x32x128xf32>
    %91 = vector.shape_cast %90 : vector<1x32x128xf32> to vector<32x128xf32>
    %92 = arith.mulf %91, %91 : vector<32x128xf32>
    %cst_39 = arith.constant dense<0.000000e+00> : vector<128xf32>
    %93 = vector.multi_reduction <add>, %92, %cst_39 [0] : vector<32x128xf32> to vector<128xf32>
    %94 = vector.shape_cast %93 : vector<128xf32> to vector<1x128xf32>
    %cst_40 = arith.constant 1.000000e-24 : f32
    %95 = vector.broadcast %cst_40 : f32 to vector<1x128xf32>
    %96 = arith.maximumf %94, %95 : vector<1x128xf32>
    %97 = math.rsqrt %96 : vector<1x128xf32>
    %98 = vector.broadcast %97 : vector<1x128xf32> to vector<32x128xf32>
    %99 = arith.mulf %91, %98 : vector<32x128xf32>
    %c2_41 = arith.constant 2 : index
    %c0_42 = arith.constant 0 : index
    %c0_43 = arith.constant 0 : index
    %100 = vector.load %arg2[%c2_41, %c0_42, %c0_43] : memref<8x32x128xf32, #tpu.memory_space<vmem>>, vector<1x32x128xf32>
    %101 = vector.shape_cast %100 : vector<1x32x128xf32> to vector<32x128xf32>
    %102 = arith.mulf %101, %101 : vector<32x128xf32>
    %cst_44 = arith.constant dense<0.000000e+00> : vector<128xf32>
    %103 = vector.multi_reduction <add>, %102, %cst_44 [0] : vector<32x128xf32> to vector<128xf32>
    %104 = vector.shape_cast %103 : vector<128xf32> to vector<1x128xf32>
    %cst_45 = arith.constant 1.000000e-24 : f32
    %105 = vector.broadcast %cst_45 : f32 to vector<1x128xf32>
    %106 = arith.maximumf %104, %105 : vector<1x128xf32>
    %107 = math.rsqrt %106 : vector<1x128xf32>
    %108 = vector.broadcast %107 : vector<1x128xf32> to vector<32x128xf32>
    %109 = arith.mulf %101, %108 : vector<32x128xf32>
    %c3_46 = arith.constant 3 : index
    %c0_47 = arith.constant 0 : index
    %c0_48 = arith.constant 0 : index
    %110 = vector.load %arg2[%c3_46, %c0_47, %c0_48] : memref<8x32x128xf32, #tpu.memory_space<vmem>>, vector<1x32x128xf32>
    %111 = vector.shape_cast %110 : vector<1x32x128xf32> to vector<32x128xf32>
    %112 = arith.mulf %111, %111 : vector<32x128xf32>
    %cst_49 = arith.constant dense<0.000000e+00> : vector<128xf32>
    %113 = vector.multi_reduction <add>, %112, %cst_49 [0] : vector<32x128xf32> to vector<128xf32>
    %114 = vector.shape_cast %113 : vector<128xf32> to vector<1x128xf32>
    %cst_50 = arith.constant 1.000000e-24 : f32
    %115 = vector.broadcast %cst_50 : f32 to vector<1x128xf32>
    %116 = arith.maximumf %114, %115 : vector<1x128xf32>
    %117 = math.rsqrt %116 : vector<1x128xf32>
    %118 = vector.broadcast %117 : vector<1x128xf32> to vector<32x128xf32>
    %119 = arith.mulf %111, %118 : vector<32x128xf32>
    %c4_51 = arith.constant 4 : index
    %c0_52 = arith.constant 0 : index
    %c0_53 = arith.constant 0 : index
    %120 = vector.load %arg2[%c4_51, %c0_52, %c0_53] : memref<8x32x128xf32, #tpu.memory_space<vmem>>, vector<1x32x128xf32>
    %121 = vector.shape_cast %120 : vector<1x32x128xf32> to vector<32x128xf32>
    %122 = arith.mulf %121, %121 : vector<32x128xf32>
    %cst_54 = arith.constant dense<0.000000e+00> : vector<128xf32>
    %123 = vector.multi_reduction <add>, %122, %cst_54 [0] : vector<32x128xf32> to vector<128xf32>
    %124 = vector.shape_cast %123 : vector<128xf32> to vector<1x128xf32>
    %cst_55 = arith.constant 1.000000e-24 : f32
    %125 = vector.broadcast %cst_55 : f32 to vector<1x128xf32>
    %126 = arith.maximumf %124, %125 : vector<1x128xf32>
    %127 = math.rsqrt %126 : vector<1x128xf32>
    %128 = vector.broadcast %127 : vector<1x128xf32> to vector<32x128xf32>
    %129 = arith.mulf %121, %128 : vector<32x128xf32>
    %c5_56 = arith.constant 5 : index
    %c0_57 = arith.constant 0 : index
    %c0_58 = arith.constant 0 : index
    %130 = vector.load %arg2[%c5_56, %c0_57, %c0_58] : memref<8x32x128xf32, #tpu.memory_space<vmem>>, vector<1x32x128xf32>
    %131 = vector.shape_cast %130 : vector<1x32x128xf32> to vector<32x128xf32>
    %132 = arith.mulf %131, %131 : vector<32x128xf32>
    %cst_59 = arith.constant dense<0.000000e+00> : vector<128xf32>
    %133 = vector.multi_reduction <add>, %132, %cst_59 [0] : vector<32x128xf32> to vector<128xf32>
    %134 = vector.shape_cast %133 : vector<128xf32> to vector<1x128xf32>
    %cst_60 = arith.constant 1.000000e-24 : f32
    %135 = vector.broadcast %cst_60 : f32 to vector<1x128xf32>
    %136 = arith.maximumf %134, %135 : vector<1x128xf32>
    %137 = math.rsqrt %136 : vector<1x128xf32>
    %138 = vector.broadcast %137 : vector<1x128xf32> to vector<32x128xf32>
    %139 = arith.mulf %131, %138 : vector<32x128xf32>
    %c6_61 = arith.constant 6 : index
    %c0_62 = arith.constant 0 : index
    %c0_63 = arith.constant 0 : index
    %140 = vector.load %arg2[%c6_61, %c0_62, %c0_63] : memref<8x32x128xf32, #tpu.memory_space<vmem>>, vector<1x32x128xf32>
    %141 = vector.shape_cast %140 : vector<1x32x128xf32> to vector<32x128xf32>
    %142 = arith.mulf %141, %141 : vector<32x128xf32>
    %cst_64 = arith.constant dense<0.000000e+00> : vector<128xf32>
    %143 = vector.multi_reduction <add>, %142, %cst_64 [0] : vector<32x128xf32> to vector<128xf32>
    %144 = vector.shape_cast %143 : vector<128xf32> to vector<1x128xf32>
    %cst_65 = arith.constant 1.000000e-24 : f32
    %145 = vector.broadcast %cst_65 : f32 to vector<1x128xf32>
    %146 = arith.maximumf %144, %145 : vector<1x128xf32>
    %147 = math.rsqrt %146 : vector<1x128xf32>
    %148 = vector.broadcast %147 : vector<1x128xf32> to vector<32x128xf32>
    %149 = arith.mulf %141, %148 : vector<32x128xf32>
    %c7_66 = arith.constant 7 : index
    %c0_67 = arith.constant 0 : index
    %c0_68 = arith.constant 0 : index
    %150 = vector.load %arg2[%c7_66, %c0_67, %c0_68] : memref<8x32x128xf32, #tpu.memory_space<vmem>>, vector<1x32x128xf32>
    %151 = vector.shape_cast %150 : vector<1x32x128xf32> to vector<32x128xf32>
    %152 = arith.mulf %151, %151 : vector<32x128xf32>
    %cst_69 = arith.constant dense<0.000000e+00> : vector<128xf32>
    %153 = vector.multi_reduction <add>, %152, %cst_69 [0] : vector<32x128xf32> to vector<128xf32>
    %154 = vector.shape_cast %153 : vector<128xf32> to vector<1x128xf32>
    %cst_70 = arith.constant 1.000000e-24 : f32
    %155 = vector.broadcast %cst_70 : f32 to vector<1x128xf32>
    %156 = arith.maximumf %154, %155 : vector<1x128xf32>
    %157 = math.rsqrt %156 : vector<1x128xf32>
    %158 = vector.broadcast %157 : vector<1x128xf32> to vector<32x128xf32>
    %159 = arith.mulf %151, %158 : vector<32x128xf32>
    %160 = arith.mulf %9, %89 : vector<32x128xf32>
    %cst_71 = arith.constant dense<0.000000e+00> : vector<128xf32>
    %161 = vector.multi_reduction <add>, %160, %cst_71 [0] : vector<32x128xf32> to vector<128xf32>
    %162 = vector.shape_cast %161 : vector<128xf32> to vector<1x128xf32>
    %cst_72 = arith.constant -1.000000e+00 : f32
    %cst_73 = arith.constant 1.000000e+00 : f32
    %163 = vector.broadcast %cst_72 : f32 to vector<1x128xf32>
    %164 = arith.maximumf %163, %162 : vector<1x128xf32>
    %165 = vector.broadcast %cst_73 : f32 to vector<1x128xf32>
    %166 = arith.minimumf %165, %164 : vector<1x128xf32>
    %cst_74 = arith.constant 1.000000e+00 : f32
    %167 = vector.broadcast %cst_74 : f32 to vector<1x128xf32>
    %168 = arith.subf %167, %166 : vector<1x128xf32>
    %169 = arith.mulf %9, %99 : vector<32x128xf32>
    %cst_75 = arith.constant dense<0.000000e+00> : vector<128xf32>
    %170 = vector.multi_reduction <add>, %169, %cst_75 [0] : vector<32x128xf32> to vector<128xf32>
    %171 = vector.shape_cast %170 : vector<128xf32> to vector<1x128xf32>
    %cst_76 = arith.constant -1.000000e+00 : f32
    %cst_77 = arith.constant 1.000000e+00 : f32
    %172 = vector.broadcast %cst_76 : f32 to vector<1x128xf32>
    %173 = arith.maximumf %172, %171 : vector<1x128xf32>
    %174 = vector.broadcast %cst_77 : f32 to vector<1x128xf32>
    %175 = arith.minimumf %174, %173 : vector<1x128xf32>
    %cst_78 = arith.constant 1.000000e+00 : f32
    %176 = vector.broadcast %cst_78 : f32 to vector<1x128xf32>
    %177 = arith.subf %176, %175 : vector<1x128xf32>
    %178 = arith.mulf %9, %109 : vector<32x128xf32>
    %cst_79 = arith.constant dense<0.000000e+00> : vector<128xf32>
    %179 = vector.multi_reduction <add>, %178, %cst_79 [0] : vector<32x128xf32> to vector<128xf32>
    %180 = vector.shape_cast %179 : vector<128xf32> to vector<1x128xf32>
    %cst_80 = arith.constant -1.000000e+00 : f32
    %cst_81 = arith.constant 1.000000e+00 : f32
    %181 = vector.broadcast %cst_80 : f32 to vector<1x128xf32>
    %182 = arith.maximumf %181, %180 : vector<1x128xf32>
    %183 = vector.broadcast %cst_81 : f32 to vector<1x128xf32>
    %184 = arith.minimumf %183, %182 : vector<1x128xf32>
    %cst_82 = arith.constant 1.000000e+00 : f32
    %185 = vector.broadcast %cst_82 : f32 to vector<1x128xf32>
    %186 = arith.subf %185, %184 : vector<1x128xf32>
    %187 = arith.mulf %9, %119 : vector<32x128xf32>
    %cst_83 = arith.constant dense<0.000000e+00> : vector<128xf32>
    %188 = vector.multi_reduction <add>, %187, %cst_83 [0] : vector<32x128xf32> to vector<128xf32>
    %189 = vector.shape_cast %188 : vector<128xf32> to vector<1x128xf32>
    %cst_84 = arith.constant -1.000000e+00 : f32
    %cst_85 = arith.constant 1.000000e+00 : f32
    %190 = vector.broadcast %cst_84 : f32 to vector<1x128xf32>
    %191 = arith.maximumf %190, %189 : vector<1x128xf32>
    %192 = vector.broadcast %cst_85 : f32 to vector<1x128xf32>
    %193 = arith.minimumf %192, %191 : vector<1x128xf32>
    %cst_86 = arith.constant 1.000000e+00 : f32
    %194 = vector.broadcast %cst_86 : f32 to vector<1x128xf32>
    %195 = arith.subf %194, %193 : vector<1x128xf32>
    %196 = arith.mulf %9, %129 : vector<32x128xf32>
    %cst_87 = arith.constant dense<0.000000e+00> : vector<128xf32>
    %197 = vector.multi_reduction <add>, %196, %cst_87 [0] : vector<32x128xf32> to vector<128xf32>
    %198 = vector.shape_cast %197 : vector<128xf32> to vector<1x128xf32>
    %cst_88 = arith.constant -1.000000e+00 : f32
    %cst_89 = arith.constant 1.000000e+00 : f32
    %199 = vector.broadcast %cst_88 : f32 to vector<1x128xf32>
    %200 = arith.maximumf %199, %198 : vector<1x128xf32>
    %201 = vector.broadcast %cst_89 : f32 to vector<1x128xf32>
    %202 = arith.minimumf %201, %200 : vector<1x128xf32>
    %cst_90 = arith.constant 1.000000e+00 : f32
    %203 = vector.broadcast %cst_90 : f32 to vector<1x128xf32>
    %204 = arith.subf %203, %202 : vector<1x128xf32>
    %205 = arith.mulf %19, %89 : vector<32x128xf32>
    %cst_91 = arith.constant dense<0.000000e+00> : vector<128xf32>
    %206 = vector.multi_reduction <add>, %205, %cst_91 [0] : vector<32x128xf32> to vector<128xf32>
    %207 = vector.shape_cast %206 : vector<128xf32> to vector<1x128xf32>
    %cst_92 = arith.constant -1.000000e+00 : f32
    %cst_93 = arith.constant 1.000000e+00 : f32
    %208 = vector.broadcast %cst_92 : f32 to vector<1x128xf32>
    %209 = arith.maximumf %208, %207 : vector<1x128xf32>
    %210 = vector.broadcast %cst_93 : f32 to vector<1x128xf32>
    %211 = arith.minimumf %210, %209 : vector<1x128xf32>
    %cst_94 = arith.constant 1.000000e+00 : f32
    %212 = vector.broadcast %cst_94 : f32 to vector<1x128xf32>
    %213 = arith.subf %212, %211 : vector<1x128xf32>
    %214 = arith.mulf %19, %99 : vector<32x128xf32>
    %cst_95 = arith.constant dense<0.000000e+00> : vector<128xf32>
    %215 = vector.multi_reduction <add>, %214, %cst_95 [0] : vector<32x128xf32> to vector<128xf32>
    %216 = vector.shape_cast %215 : vector<128xf32> to vector<1x128xf32>
    %cst_96 = arith.constant -1.000000e+00 : f32
    %cst_97 = arith.constant 1.000000e+00 : f32
    %217 = vector.broadcast %cst_96 : f32 to vector<1x128xf32>
    %218 = arith.maximumf %217, %216 : vector<1x128xf32>
    %219 = vector.broadcast %cst_97 : f32 to vector<1x128xf32>
    %220 = arith.minimumf %219, %218 : vector<1x128xf32>
    %cst_98 = arith.constant 1.000000e+00 : f32
    %221 = vector.broadcast %cst_98 : f32 to vector<1x128xf32>
    %222 = arith.subf %221, %220 : vector<1x128xf32>
    %223 = arith.mulf %19, %109 : vector<32x128xf32>
    %cst_99 = arith.constant dense<0.000000e+00> : vector<128xf32>
    %224 = vector.multi_reduction <add>, %223, %cst_99 [0] : vector<32x128xf32> to vector<128xf32>
    %225 = vector.shape_cast %224 : vector<128xf32> to vector<1x128xf32>
    %cst_100 = arith.constant -1.000000e+00 : f32
    %cst_101 = arith.constant 1.000000e+00 : f32
    %226 = vector.broadcast %cst_100 : f32 to vector<1x128xf32>
    %227 = arith.maximumf %226, %225 : vector<1x128xf32>
    %228 = vector.broadcast %cst_101 : f32 to vector<1x128xf32>
    %229 = arith.minimumf %228, %227 : vector<1x128xf32>
    %cst_102 = arith.constant 1.000000e+00 : f32
    %230 = vector.broadcast %cst_102 : f32 to vector<1x128xf32>
    %231 = arith.subf %230, %229 : vector<1x128xf32>
    %232 = arith.mulf %19, %119 : vector<32x128xf32>
    %cst_103 = arith.constant dense<0.000000e+00> : vector<128xf32>
    %233 = vector.multi_reduction <add>, %232, %cst_103 [0] : vector<32x128xf32> to vector<128xf32>
    %234 = vector.shape_cast %233 : vector<128xf32> to vector<1x128xf32>
    %cst_104 = arith.constant -1.000000e+00 : f32
    %cst_105 = arith.constant 1.000000e+00 : f32
    %235 = vector.broadcast %cst_104 : f32 to vector<1x128xf32>
    %236 = arith.maximumf %235, %234 : vector<1x128xf32>
    %237 = vector.broadcast %cst_105 : f32 to vector<1x128xf32>
    %238 = arith.minimumf %237, %236 : vector<1x128xf32>
    %cst_106 = arith.constant 1.000000e+00 : f32
    %239 = vector.broadcast %cst_106 : f32 to vector<1x128xf32>
    %240 = arith.subf %239, %238 : vector<1x128xf32>
    %241 = arith.mulf %19, %129 : vector<32x128xf32>
    %cst_107 = arith.constant dense<0.000000e+00> : vector<128xf32>
    %242 = vector.multi_reduction <add>, %241, %cst_107 [0] : vector<32x128xf32> to vector<128xf32>
    %243 = vector.shape_cast %242 : vector<128xf32> to vector<1x128xf32>
    %cst_108 = arith.constant -1.000000e+00 : f32
    %cst_109 = arith.constant 1.000000e+00 : f32
    %244 = vector.broadcast %cst_108 : f32 to vector<1x128xf32>
    %245 = arith.maximumf %244, %243 : vector<1x128xf32>
    %246 = vector.broadcast %cst_109 : f32 to vector<1x128xf32>
    %247 = arith.minimumf %246, %245 : vector<1x128xf32>
    %cst_110 = arith.constant 1.000000e+00 : f32
    %248 = vector.broadcast %cst_110 : f32 to vector<1x128xf32>
    %249 = arith.subf %248, %247 : vector<1x128xf32>
    %250 = arith.mulf %19, %139 : vector<32x128xf32>
    %cst_111 = arith.constant dense<0.000000e+00> : vector<128xf32>
    %251 = vector.multi_reduction <add>, %250, %cst_111 [0] : vector<32x128xf32> to vector<128xf32>
    %252 = vector.shape_cast %251 : vector<128xf32> to vector<1x128xf32>
    %cst_112 = arith.constant -1.000000e+00 : f32
    %cst_113 = arith.constant 1.000000e+00 : f32
    %253 = vector.broadcast %cst_112 : f32 to vector<1x128xf32>
    %254 = arith.maximumf %253, %252 : vector<1x128xf32>
    %255 = vector.broadcast %cst_113 : f32 to vector<1x128xf32>
    %256 = arith.minimumf %255, %254 : vector<1x128xf32>
    %cst_114 = arith.constant 1.000000e+00 : f32
    %257 = vector.broadcast %cst_114 : f32 to vector<1x128xf32>
    %258 = arith.subf %257, %256 : vector<1x128xf32>
    %259 = arith.mulf %29, %89 : vector<32x128xf32>
    %cst_115 = arith.constant dense<0.000000e+00> : vector<128xf32>
    %260 = vector.multi_reduction <add>, %259, %cst_115 [0] : vector<32x128xf32> to vector<128xf32>
    %261 = vector.shape_cast %260 : vector<128xf32> to vector<1x128xf32>
    %cst_116 = arith.constant -1.000000e+00 : f32
    %cst_117 = arith.constant 1.000000e+00 : f32
    %262 = vector.broadcast %cst_116 : f32 to vector<1x128xf32>
    %263 = arith.maximumf %262, %261 : vector<1x128xf32>
    %264 = vector.broadcast %cst_117 : f32 to vector<1x128xf32>
    %265 = arith.minimumf %264, %263 : vector<1x128xf32>
    %cst_118 = arith.constant 1.000000e+00 : f32
    %266 = vector.broadcast %cst_118 : f32 to vector<1x128xf32>
    %267 = arith.subf %266, %265 : vector<1x128xf32>
    %268 = arith.mulf %29, %99 : vector<32x128xf32>
    %cst_119 = arith.constant dense<0.000000e+00> : vector<128xf32>
    %269 = vector.multi_reduction <add>, %268, %cst_119 [0] : vector<32x128xf32> to vector<128xf32>
    %270 = vector.shape_cast %269 : vector<128xf32> to vector<1x128xf32>
    %cst_120 = arith.constant -1.000000e+00 : f32
    %cst_121 = arith.constant 1.000000e+00 : f32
    %271 = vector.broadcast %cst_120 : f32 to vector<1x128xf32>
    %272 = arith.maximumf %271, %270 : vector<1x128xf32>
    %273 = vector.broadcast %cst_121 : f32 to vector<1x128xf32>
    %274 = arith.minimumf %273, %272 : vector<1x128xf32>
    %cst_122 = arith.constant 1.000000e+00 : f32
    %275 = vector.broadcast %cst_122 : f32 to vector<1x128xf32>
    %276 = arith.subf %275, %274 : vector<1x128xf32>
    %277 = arith.mulf %29, %109 : vector<32x128xf32>
    %cst_123 = arith.constant dense<0.000000e+00> : vector<128xf32>
    %278 = vector.multi_reduction <add>, %277, %cst_123 [0] : vector<32x128xf32> to vector<128xf32>
    %279 = vector.shape_cast %278 : vector<128xf32> to vector<1x128xf32>
    %cst_124 = arith.constant -1.000000e+00 : f32
    %cst_125 = arith.constant 1.000000e+00 : f32
    %280 = vector.broadcast %cst_124 : f32 to vector<1x128xf32>
    %281 = arith.maximumf %280, %279 : vector<1x128xf32>
    %282 = vector.broadcast %cst_125 : f32 to vector<1x128xf32>
    %283 = arith.minimumf %282, %281 : vector<1x128xf32>
    %cst_126 = arith.constant 1.000000e+00 : f32
    %284 = vector.broadcast %cst_126 : f32 to vector<1x128xf32>
    %285 = arith.subf %284, %283 : vector<1x128xf32>
    %286 = arith.mulf %29, %119 : vector<32x128xf32>
    %cst_127 = arith.constant dense<0.000000e+00> : vector<128xf32>
    %287 = vector.multi_reduction <add>, %286, %cst_127 [0] : vector<32x128xf32> to vector<128xf32>
    %288 = vector.shape_cast %287 : vector<128xf32> to vector<1x128xf32>
    %cst_128 = arith.constant -1.000000e+00 : f32
    %cst_129 = arith.constant 1.000000e+00 : f32
    %289 = vector.broadcast %cst_128 : f32 to vector<1x128xf32>
    %290 = arith.maximumf %289, %288 : vector<1x128xf32>
    %291 = vector.broadcast %cst_129 : f32 to vector<1x128xf32>
    %292 = arith.minimumf %291, %290 : vector<1x128xf32>
    %cst_130 = arith.constant 1.000000e+00 : f32
    %293 = vector.broadcast %cst_130 : f32 to vector<1x128xf32>
    %294 = arith.subf %293, %292 : vector<1x128xf32>
    %295 = arith.mulf %29, %129 : vector<32x128xf32>
    %cst_131 = arith.constant dense<0.000000e+00> : vector<128xf32>
    %296 = vector.multi_reduction <add>, %295, %cst_131 [0] : vector<32x128xf32> to vector<128xf32>
    %297 = vector.shape_cast %296 : vector<128xf32> to vector<1x128xf32>
    %cst_132 = arith.constant -1.000000e+00 : f32
    %cst_133 = arith.constant 1.000000e+00 : f32
    %298 = vector.broadcast %cst_132 : f32 to vector<1x128xf32>
    %299 = arith.maximumf %298, %297 : vector<1x128xf32>
    %300 = vector.broadcast %cst_133 : f32 to vector<1x128xf32>
    %301 = arith.minimumf %300, %299 : vector<1x128xf32>
    %cst_134 = arith.constant 1.000000e+00 : f32
    %302 = vector.broadcast %cst_134 : f32 to vector<1x128xf32>
    %303 = arith.subf %302, %301 : vector<1x128xf32>
    %304 = arith.mulf %29, %139 : vector<32x128xf32>
    %cst_135 = arith.constant dense<0.000000e+00> : vector<128xf32>
    %305 = vector.multi_reduction <add>, %304, %cst_135 [0] : vector<32x128xf32> to vector<128xf32>
    %306 = vector.shape_cast %305 : vector<128xf32> to vector<1x128xf32>
    %cst_136 = arith.constant -1.000000e+00 : f32
    %cst_137 = arith.constant 1.000000e+00 : f32
    %307 = vector.broadcast %cst_136 : f32 to vector<1x128xf32>
    %308 = arith.maximumf %307, %306 : vector<1x128xf32>
    %309 = vector.broadcast %cst_137 : f32 to vector<1x128xf32>
    %310 = arith.minimumf %309, %308 : vector<1x128xf32>
    %cst_138 = arith.constant 1.000000e+00 : f32
    %311 = vector.broadcast %cst_138 : f32 to vector<1x128xf32>
    %312 = arith.subf %311, %310 : vector<1x128xf32>
    %313 = arith.mulf %29, %149 : vector<32x128xf32>
    %cst_139 = arith.constant dense<0.000000e+00> : vector<128xf32>
    %314 = vector.multi_reduction <add>, %313, %cst_139 [0] : vector<32x128xf32> to vector<128xf32>
    %315 = vector.shape_cast %314 : vector<128xf32> to vector<1x128xf32>
    %cst_140 = arith.constant -1.000000e+00 : f32
    %cst_141 = arith.constant 1.000000e+00 : f32
    %316 = vector.broadcast %cst_140 : f32 to vector<1x128xf32>
    %317 = arith.maximumf %316, %315 : vector<1x128xf32>
    %318 = vector.broadcast %cst_141 : f32 to vector<1x128xf32>
    %319 = arith.minimumf %318, %317 : vector<1x128xf32>
    %cst_142 = arith.constant 1.000000e+00 : f32
    %320 = vector.broadcast %cst_142 : f32 to vector<1x128xf32>
    %321 = arith.subf %320, %319 : vector<1x128xf32>
    %322 = arith.mulf %39, %89 : vector<32x128xf32>
    %cst_143 = arith.constant dense<0.000000e+00> : vector<128xf32>
    %323 = vector.multi_reduction <add>, %322, %cst_143 [0] : vector<32x128xf32> to vector<128xf32>
    %324 = vector.shape_cast %323 : vector<128xf32> to vector<1x128xf32>
    %cst_144 = arith.constant -1.000000e+00 : f32
    %cst_145 = arith.constant 1.000000e+00 : f32
    %325 = vector.broadcast %cst_144 : f32 to vector<1x128xf32>
    %326 = arith.maximumf %325, %324 : vector<1x128xf32>
    %327 = vector.broadcast %cst_145 : f32 to vector<1x128xf32>
    %328 = arith.minimumf %327, %326 : vector<1x128xf32>
    %cst_146 = arith.constant 1.000000e+00 : f32
    %329 = vector.broadcast %cst_146 : f32 to vector<1x128xf32>
    %330 = arith.subf %329, %328 : vector<1x128xf32>
    %331 = arith.mulf %39, %99 : vector<32x128xf32>
    %cst_147 = arith.constant dense<0.000000e+00> : vector<128xf32>
    %332 = vector.multi_reduction <add>, %331, %cst_147 [0] : vector<32x128xf32> to vector<128xf32>
    %333 = vector.shape_cast %332 : vector<128xf32> to vector<1x128xf32>
    %cst_148 = arith.constant -1.000000e+00 : f32
    %cst_149 = arith.constant 1.000000e+00 : f32
    %334 = vector.broadcast %cst_148 : f32 to vector<1x128xf32>
    %335 = arith.maximumf %334, %333 : vector<1x128xf32>
    %336 = vector.broadcast %cst_149 : f32 to vector<1x128xf32>
    %337 = arith.minimumf %336, %335 : vector<1x128xf32>
    %cst_150 = arith.constant 1.000000e+00 : f32
    %338 = vector.broadcast %cst_150 : f32 to vector<1x128xf32>
    %339 = arith.subf %338, %337 : vector<1x128xf32>
    %340 = arith.mulf %39, %109 : vector<32x128xf32>
    %cst_151 = arith.constant dense<0.000000e+00> : vector<128xf32>
    %341 = vector.multi_reduction <add>, %340, %cst_151 [0] : vector<32x128xf32> to vector<128xf32>
    %342 = vector.shape_cast %341 : vector<128xf32> to vector<1x128xf32>
    %cst_152 = arith.constant -1.000000e+00 : f32
    %cst_153 = arith.constant 1.000000e+00 : f32
    %343 = vector.broadcast %cst_152 : f32 to vector<1x128xf32>
    %344 = arith.maximumf %343, %342 : vector<1x128xf32>
    %345 = vector.broadcast %cst_153 : f32 to vector<1x128xf32>
    %346 = arith.minimumf %345, %344 : vector<1x128xf32>
    %cst_154 = arith.constant 1.000000e+00 : f32
    %347 = vector.broadcast %cst_154 : f32 to vector<1x128xf32>
    %348 = arith.subf %347, %346 : vector<1x128xf32>
    %349 = arith.mulf %39, %119 : vector<32x128xf32>
    %cst_155 = arith.constant dense<0.000000e+00> : vector<128xf32>
    %350 = vector.multi_reduction <add>, %349, %cst_155 [0] : vector<32x128xf32> to vector<128xf32>
    %351 = vector.shape_cast %350 : vector<128xf32> to vector<1x128xf32>
    %cst_156 = arith.constant -1.000000e+00 : f32
    %cst_157 = arith.constant 1.000000e+00 : f32
    %352 = vector.broadcast %cst_156 : f32 to vector<1x128xf32>
    %353 = arith.maximumf %352, %351 : vector<1x128xf32>
    %354 = vector.broadcast %cst_157 : f32 to vector<1x128xf32>
    %355 = arith.minimumf %354, %353 : vector<1x128xf32>
    %cst_158 = arith.constant 1.000000e+00 : f32
    %356 = vector.broadcast %cst_158 : f32 to vector<1x128xf32>
    %357 = arith.subf %356, %355 : vector<1x128xf32>
    %358 = arith.mulf %39, %129 : vector<32x128xf32>
    %cst_159 = arith.constant dense<0.000000e+00> : vector<128xf32>
    %359 = vector.multi_reduction <add>, %358, %cst_159 [0] : vector<32x128xf32> to vector<128xf32>
    %360 = vector.shape_cast %359 : vector<128xf32> to vector<1x128xf32>
    %cst_160 = arith.constant -1.000000e+00 : f32
    %cst_161 = arith.constant 1.000000e+00 : f32
    %361 = vector.broadcast %cst_160 : f32 to vector<1x128xf32>
    %362 = arith.maximumf %361, %360 : vector<1x128xf32>
    %363 = vector.broadcast %cst_161 : f32 to vector<1x128xf32>
    %364 = arith.minimumf %363, %362 : vector<1x128xf32>
    %cst_162 = arith.constant 1.000000e+00 : f32
    %365 = vector.broadcast %cst_162 : f32 to vector<1x128xf32>
    %366 = arith.subf %365, %364 : vector<1x128xf32>
    %367 = arith.mulf %39, %139 : vector<32x128xf32>
    %cst_163 = arith.constant dense<0.000000e+00> : vector<128xf32>
    %368 = vector.multi_reduction <add>, %367, %cst_163 [0] : vector<32x128xf32> to vector<128xf32>
    %369 = vector.shape_cast %368 : vector<128xf32> to vector<1x128xf32>
    %cst_164 = arith.constant -1.000000e+00 : f32
    %cst_165 = arith.constant 1.000000e+00 : f32
    %370 = vector.broadcast %cst_164 : f32 to vector<1x128xf32>
    %371 = arith.maximumf %370, %369 : vector<1x128xf32>
    %372 = vector.broadcast %cst_165 : f32 to vector<1x128xf32>
    %373 = arith.minimumf %372, %371 : vector<1x128xf32>
    %cst_166 = arith.constant 1.000000e+00 : f32
    %374 = vector.broadcast %cst_166 : f32 to vector<1x128xf32>
    %375 = arith.subf %374, %373 : vector<1x128xf32>
    %376 = arith.mulf %39, %149 : vector<32x128xf32>
    %cst_167 = arith.constant dense<0.000000e+00> : vector<128xf32>
    %377 = vector.multi_reduction <add>, %376, %cst_167 [0] : vector<32x128xf32> to vector<128xf32>
    %378 = vector.shape_cast %377 : vector<128xf32> to vector<1x128xf32>
    %cst_168 = arith.constant -1.000000e+00 : f32
    %cst_169 = arith.constant 1.000000e+00 : f32
    %379 = vector.broadcast %cst_168 : f32 to vector<1x128xf32>
    %380 = arith.maximumf %379, %378 : vector<1x128xf32>
    %381 = vector.broadcast %cst_169 : f32 to vector<1x128xf32>
    %382 = arith.minimumf %381, %380 : vector<1x128xf32>
    %cst_170 = arith.constant 1.000000e+00 : f32
    %383 = vector.broadcast %cst_170 : f32 to vector<1x128xf32>
    %384 = arith.subf %383, %382 : vector<1x128xf32>
    %385 = arith.mulf %39, %159 : vector<32x128xf32>
    %cst_171 = arith.constant dense<0.000000e+00> : vector<128xf32>
    %386 = vector.multi_reduction <add>, %385, %cst_171 [0] : vector<32x128xf32> to vector<128xf32>
    %387 = vector.shape_cast %386 : vector<128xf32> to vector<1x128xf32>
    %cst_172 = arith.constant -1.000000e+00 : f32
    %cst_173 = arith.constant 1.000000e+00 : f32
    %388 = vector.broadcast %cst_172 : f32 to vector<1x128xf32>
    %389 = arith.maximumf %388, %387 : vector<1x128xf32>
    %390 = vector.broadcast %cst_173 : f32 to vector<1x128xf32>
    %391 = arith.minimumf %390, %389 : vector<1x128xf32>
    %cst_174 = arith.constant 1.000000e+00 : f32
    %392 = vector.broadcast %cst_174 : f32 to vector<1x128xf32>
    %393 = arith.subf %392, %391 : vector<1x128xf32>
    %394 = arith.mulf %49, %89 : vector<32x128xf32>
    %cst_175 = arith.constant dense<0.000000e+00> : vector<128xf32>
    %395 = vector.multi_reduction <add>, %394, %cst_175 [0] : vector<32x128xf32> to vector<128xf32>
    %396 = vector.shape_cast %395 : vector<128xf32> to vector<1x128xf32>
    %cst_176 = arith.constant -1.000000e+00 : f32
    %cst_177 = arith.constant 1.000000e+00 : f32
    %397 = vector.broadcast %cst_176 : f32 to vector<1x128xf32>
    %398 = arith.maximumf %397, %396 : vector<1x128xf32>
    %399 = vector.broadcast %cst_177 : f32 to vector<1x128xf32>
    %400 = arith.minimumf %399, %398 : vector<1x128xf32>
    %cst_178 = arith.constant 1.000000e+00 : f32
    %401 = vector.broadcast %cst_178 : f32 to vector<1x128xf32>
    %402 = arith.subf %401, %400 : vector<1x128xf32>
    %403 = arith.mulf %49, %99 : vector<32x128xf32>
    %cst_179 = arith.constant dense<0.000000e+00> : vector<128xf32>
    %404 = vector.multi_reduction <add>, %403, %cst_179 [0] : vector<32x128xf32> to vector<128xf32>
    %405 = vector.shape_cast %404 : vector<128xf32> to vector<1x128xf32>
    %cst_180 = arith.constant -1.000000e+00 : f32
    %cst_181 = arith.constant 1.000000e+00 : f32
    %406 = vector.broadcast %cst_180 : f32 to vector<1x128xf32>
    %407 = arith.maximumf %406, %405 : vector<1x128xf32>
    %408 = vector.broadcast %cst_181 : f32 to vector<1x128xf32>
    %409 = arith.minimumf %408, %407 : vector<1x128xf32>
    %cst_182 = arith.constant 1.000000e+00 : f32
    %410 = vector.broadcast %cst_182 : f32 to vector<1x128xf32>
    %411 = arith.subf %410, %409 : vector<1x128xf32>
    %412 = arith.mulf %49, %109 : vector<32x128xf32>
    %cst_183 = arith.constant dense<0.000000e+00> : vector<128xf32>
    %413 = vector.multi_reduction <add>, %412, %cst_183 [0] : vector<32x128xf32> to vector<128xf32>
    %414 = vector.shape_cast %413 : vector<128xf32> to vector<1x128xf32>
    %cst_184 = arith.constant -1.000000e+00 : f32
    %cst_185 = arith.constant 1.000000e+00 : f32
    %415 = vector.broadcast %cst_184 : f32 to vector<1x128xf32>
    %416 = arith.maximumf %415, %414 : vector<1x128xf32>
    %417 = vector.broadcast %cst_185 : f32 to vector<1x128xf32>
    %418 = arith.minimumf %417, %416 : vector<1x128xf32>
    %cst_186 = arith.constant 1.000000e+00 : f32
    %419 = vector.broadcast %cst_186 : f32 to vector<1x128xf32>
    %420 = arith.subf %419, %418 : vector<1x128xf32>
    %421 = arith.mulf %49, %119 : vector<32x128xf32>
    %cst_187 = arith.constant dense<0.000000e+00> : vector<128xf32>
    %422 = vector.multi_reduction <add>, %421, %cst_187 [0] : vector<32x128xf32> to vector<128xf32>
    %423 = vector.shape_cast %422 : vector<128xf32> to vector<1x128xf32>
    %cst_188 = arith.constant -1.000000e+00 : f32
    %cst_189 = arith.constant 1.000000e+00 : f32
    %424 = vector.broadcast %cst_188 : f32 to vector<1x128xf32>
    %425 = arith.maximumf %424, %423 : vector<1x128xf32>
    %426 = vector.broadcast %cst_189 : f32 to vector<1x128xf32>
    %427 = arith.minimumf %426, %425 : vector<1x128xf32>
    %cst_190 = arith.constant 1.000000e+00 : f32
    %428 = vector.broadcast %cst_190 : f32 to vector<1x128xf32>
    %429 = arith.subf %428, %427 : vector<1x128xf32>
    %430 = arith.mulf %49, %129 : vector<32x128xf32>
    %cst_191 = arith.constant dense<0.000000e+00> : vector<128xf32>
    %431 = vector.multi_reduction <add>, %430, %cst_191 [0] : vector<32x128xf32> to vector<128xf32>
    %432 = vector.shape_cast %431 : vector<128xf32> to vector<1x128xf32>
    %cst_192 = arith.constant -1.000000e+00 : f32
    %cst_193 = arith.constant 1.000000e+00 : f32
    %433 = vector.broadcast %cst_192 : f32 to vector<1x128xf32>
    %434 = arith.maximumf %433, %432 : vector<1x128xf32>
    %435 = vector.broadcast %cst_193 : f32 to vector<1x128xf32>
    %436 = arith.minimumf %435, %434 : vector<1x128xf32>
    %cst_194 = arith.constant 1.000000e+00 : f32
    %437 = vector.broadcast %cst_194 : f32 to vector<1x128xf32>
    %438 = arith.subf %437, %436 : vector<1x128xf32>
    %439 = arith.mulf %49, %139 : vector<32x128xf32>
    %cst_195 = arith.constant dense<0.000000e+00> : vector<128xf32>
    %440 = vector.multi_reduction <add>, %439, %cst_195 [0] : vector<32x128xf32> to vector<128xf32>
    %441 = vector.shape_cast %440 : vector<128xf32> to vector<1x128xf32>
    %cst_196 = arith.constant -1.000000e+00 : f32
    %cst_197 = arith.constant 1.000000e+00 : f32
    %442 = vector.broadcast %cst_196 : f32 to vector<1x128xf32>
    %443 = arith.maximumf %442, %441 : vector<1x128xf32>
    %444 = vector.broadcast %cst_197 : f32 to vector<1x128xf32>
    %445 = arith.minimumf %444, %443 : vector<1x128xf32>
    %cst_198 = arith.constant 1.000000e+00 : f32
    %446 = vector.broadcast %cst_198 : f32 to vector<1x128xf32>
    %447 = arith.subf %446, %445 : vector<1x128xf32>
    %448 = arith.mulf %49, %149 : vector<32x128xf32>
    %cst_199 = arith.constant dense<0.000000e+00> : vector<128xf32>
    %449 = vector.multi_reduction <add>, %448, %cst_199 [0] : vector<32x128xf32> to vector<128xf32>
    %450 = vector.shape_cast %449 : vector<128xf32> to vector<1x128xf32>
    %cst_200 = arith.constant -1.000000e+00 : f32
    %cst_201 = arith.constant 1.000000e+00 : f32
    %451 = vector.broadcast %cst_200 : f32 to vector<1x128xf32>
    %452 = arith.maximumf %451, %450 : vector<1x128xf32>
    %453 = vector.broadcast %cst_201 : f32 to vector<1x128xf32>
    %454 = arith.minimumf %453, %452 : vector<1x128xf32>
    %cst_202 = arith.constant 1.000000e+00 : f32
    %455 = vector.broadcast %cst_202 : f32 to vector<1x128xf32>
    %456 = arith.subf %455, %454 : vector<1x128xf32>
    %457 = arith.mulf %49, %159 : vector<32x128xf32>
    %cst_203 = arith.constant dense<0.000000e+00> : vector<128xf32>
    %458 = vector.multi_reduction <add>, %457, %cst_203 [0] : vector<32x128xf32> to vector<128xf32>
    %459 = vector.shape_cast %458 : vector<128xf32> to vector<1x128xf32>
    %cst_204 = arith.constant -1.000000e+00 : f32
    %cst_205 = arith.constant 1.000000e+00 : f32
    %460 = vector.broadcast %cst_204 : f32 to vector<1x128xf32>
    %461 = arith.maximumf %460, %459 : vector<1x128xf32>
    %462 = vector.broadcast %cst_205 : f32 to vector<1x128xf32>
    %463 = arith.minimumf %462, %461 : vector<1x128xf32>
    %cst_206 = arith.constant 1.000000e+00 : f32
    %464 = vector.broadcast %cst_206 : f32 to vector<1x128xf32>
    %465 = arith.subf %464, %463 : vector<1x128xf32>
    %466 = arith.mulf %59, %99 : vector<32x128xf32>
    %cst_207 = arith.constant dense<0.000000e+00> : vector<128xf32>
    %467 = vector.multi_reduction <add>, %466, %cst_207 [0] : vector<32x128xf32> to vector<128xf32>
    %468 = vector.shape_cast %467 : vector<128xf32> to vector<1x128xf32>
    %cst_208 = arith.constant -1.000000e+00 : f32
    %cst_209 = arith.constant 1.000000e+00 : f32
    %469 = vector.broadcast %cst_208 : f32 to vector<1x128xf32>
    %470 = arith.maximumf %469, %468 : vector<1x128xf32>
    %471 = vector.broadcast %cst_209 : f32 to vector<1x128xf32>
    %472 = arith.minimumf %471, %470 : vector<1x128xf32>
    %cst_210 = arith.constant 1.000000e+00 : f32
    %473 = vector.broadcast %cst_210 : f32 to vector<1x128xf32>
    %474 = arith.subf %473, %472 : vector<1x128xf32>
    %475 = arith.mulf %59, %109 : vector<32x128xf32>
    %cst_211 = arith.constant dense<0.000000e+00> : vector<128xf32>
    %476 = vector.multi_reduction <add>, %475, %cst_211 [0] : vector<32x128xf32> to vector<128xf32>
    %477 = vector.shape_cast %476 : vector<128xf32> to vector<1x128xf32>
    %cst_212 = arith.constant -1.000000e+00 : f32
    %cst_213 = arith.constant 1.000000e+00 : f32
    %478 = vector.broadcast %cst_212 : f32 to vector<1x128xf32>
    %479 = arith.maximumf %478, %477 : vector<1x128xf32>
    %480 = vector.broadcast %cst_213 : f32 to vector<1x128xf32>
    %481 = arith.minimumf %480, %479 : vector<1x128xf32>
    %cst_214 = arith.constant 1.000000e+00 : f32
    %482 = vector.broadcast %cst_214 : f32 to vector<1x128xf32>
    %483 = arith.subf %482, %481 : vector<1x128xf32>
    %484 = arith.mulf %59, %119 : vector<32x128xf32>
    %cst_215 = arith.constant dense<0.000000e+00> : vector<128xf32>
    %485 = vector.multi_reduction <add>, %484, %cst_215 [0] : vector<32x128xf32> to vector<128xf32>
    %486 = vector.shape_cast %485 : vector<128xf32> to vector<1x128xf32>
    %cst_216 = arith.constant -1.000000e+00 : f32
    %cst_217 = arith.constant 1.000000e+00 : f32
    %487 = vector.broadcast %cst_216 : f32 to vector<1x128xf32>
    %488 = arith.maximumf %487, %486 : vector<1x128xf32>
    %489 = vector.broadcast %cst_217 : f32 to vector<1x128xf32>
    %490 = arith.minimumf %489, %488 : vector<1x128xf32>
    %cst_218 = arith.constant 1.000000e+00 : f32
    %491 = vector.broadcast %cst_218 : f32 to vector<1x128xf32>
    %492 = arith.subf %491, %490 : vector<1x128xf32>
    %493 = arith.mulf %59, %129 : vector<32x128xf32>
    %cst_219 = arith.constant dense<0.000000e+00> : vector<128xf32>
    %494 = vector.multi_reduction <add>, %493, %cst_219 [0] : vector<32x128xf32> to vector<128xf32>
    %495 = vector.shape_cast %494 : vector<128xf32> to vector<1x128xf32>
    %cst_220 = arith.constant -1.000000e+00 : f32
    %cst_221 = arith.constant 1.000000e+00 : f32
    %496 = vector.broadcast %cst_220 : f32 to vector<1x128xf32>
    %497 = arith.maximumf %496, %495 : vector<1x128xf32>
    %498 = vector.broadcast %cst_221 : f32 to vector<1x128xf32>
    %499 = arith.minimumf %498, %497 : vector<1x128xf32>
    %cst_222 = arith.constant 1.000000e+00 : f32
    %500 = vector.broadcast %cst_222 : f32 to vector<1x128xf32>
    %501 = arith.subf %500, %499 : vector<1x128xf32>
    %502 = arith.mulf %59, %139 : vector<32x128xf32>
    %cst_223 = arith.constant dense<0.000000e+00> : vector<128xf32>
    %503 = vector.multi_reduction <add>, %502, %cst_223 [0] : vector<32x128xf32> to vector<128xf32>
    %504 = vector.shape_cast %503 : vector<128xf32> to vector<1x128xf32>
    %cst_224 = arith.constant -1.000000e+00 : f32
    %cst_225 = arith.constant 1.000000e+00 : f32
    %505 = vector.broadcast %cst_224 : f32 to vector<1x128xf32>
    %506 = arith.maximumf %505, %504 : vector<1x128xf32>
    %507 = vector.broadcast %cst_225 : f32 to vector<1x128xf32>
    %508 = arith.minimumf %507, %506 : vector<1x128xf32>
    %cst_226 = arith.constant 1.000000e+00 : f32
    %509 = vector.broadcast %cst_226 : f32 to vector<1x128xf32>
    %510 = arith.subf %509, %508 : vector<1x128xf32>
    %511 = arith.mulf %59, %149 : vector<32x128xf32>
    %cst_227 = arith.constant dense<0.000000e+00> : vector<128xf32>
    %512 = vector.multi_reduction <add>, %511, %cst_227 [0] : vector<32x128xf32> to vector<128xf32>
    %513 = vector.shape_cast %512 : vector<128xf32> to vector<1x128xf32>
    %cst_228 = arith.constant -1.000000e+00 : f32
    %cst_229 = arith.constant 1.000000e+00 : f32
    %514 = vector.broadcast %cst_228 : f32 to vector<1x128xf32>
    %515 = arith.maximumf %514, %513 : vector<1x128xf32>
    %516 = vector.broadcast %cst_229 : f32 to vector<1x128xf32>
    %517 = arith.minimumf %516, %515 : vector<1x128xf32>
    %cst_230 = arith.constant 1.000000e+00 : f32
    %518 = vector.broadcast %cst_230 : f32 to vector<1x128xf32>
    %519 = arith.subf %518, %517 : vector<1x128xf32>
    %520 = arith.mulf %59, %159 : vector<32x128xf32>
    %cst_231 = arith.constant dense<0.000000e+00> : vector<128xf32>
    %521 = vector.multi_reduction <add>, %520, %cst_231 [0] : vector<32x128xf32> to vector<128xf32>
    %522 = vector.shape_cast %521 : vector<128xf32> to vector<1x128xf32>
    %cst_232 = arith.constant -1.000000e+00 : f32
    %cst_233 = arith.constant 1.000000e+00 : f32
    %523 = vector.broadcast %cst_232 : f32 to vector<1x128xf32>
    %524 = arith.maximumf %523, %522 : vector<1x128xf32>
    %525 = vector.broadcast %cst_233 : f32 to vector<1x128xf32>
    %526 = arith.minimumf %525, %524 : vector<1x128xf32>
    %cst_234 = arith.constant 1.000000e+00 : f32
    %527 = vector.broadcast %cst_234 : f32 to vector<1x128xf32>
    %528 = arith.subf %527, %526 : vector<1x128xf32>
    %529 = arith.mulf %69, %109 : vector<32x128xf32>
    %cst_235 = arith.constant dense<0.000000e+00> : vector<128xf32>
    %530 = vector.multi_reduction <add>, %529, %cst_235 [0] : vector<32x128xf32> to vector<128xf32>
    %531 = vector.shape_cast %530 : vector<128xf32> to vector<1x128xf32>
    %cst_236 = arith.constant -1.000000e+00 : f32
    %cst_237 = arith.constant 1.000000e+00 : f32
    %532 = vector.broadcast %cst_236 : f32 to vector<1x128xf32>
    %533 = arith.maximumf %532, %531 : vector<1x128xf32>
    %534 = vector.broadcast %cst_237 : f32 to vector<1x128xf32>
    %535 = arith.minimumf %534, %533 : vector<1x128xf32>
    %cst_238 = arith.constant 1.000000e+00 : f32
    %536 = vector.broadcast %cst_238 : f32 to vector<1x128xf32>
    %537 = arith.subf %536, %535 : vector<1x128xf32>
    %538 = arith.mulf %69, %119 : vector<32x128xf32>
    %cst_239 = arith.constant dense<0.000000e+00> : vector<128xf32>
    %539 = vector.multi_reduction <add>, %538, %cst_239 [0] : vector<32x128xf32> to vector<128xf32>
    %540 = vector.shape_cast %539 : vector<128xf32> to vector<1x128xf32>
    %cst_240 = arith.constant -1.000000e+00 : f32
    %cst_241 = arith.constant 1.000000e+00 : f32
    %541 = vector.broadcast %cst_240 : f32 to vector<1x128xf32>
    %542 = arith.maximumf %541, %540 : vector<1x128xf32>
    %543 = vector.broadcast %cst_241 : f32 to vector<1x128xf32>
    %544 = arith.minimumf %543, %542 : vector<1x128xf32>
    %cst_242 = arith.constant 1.000000e+00 : f32
    %545 = vector.broadcast %cst_242 : f32 to vector<1x128xf32>
    %546 = arith.subf %545, %544 : vector<1x128xf32>
    %547 = arith.mulf %69, %129 : vector<32x128xf32>
    %cst_243 = arith.constant dense<0.000000e+00> : vector<128xf32>
    %548 = vector.multi_reduction <add>, %547, %cst_243 [0] : vector<32x128xf32> to vector<128xf32>
    %549 = vector.shape_cast %548 : vector<128xf32> to vector<1x128xf32>
    %cst_244 = arith.constant -1.000000e+00 : f32
    %cst_245 = arith.constant 1.000000e+00 : f32
    %550 = vector.broadcast %cst_244 : f32 to vector<1x128xf32>
    %551 = arith.maximumf %550, %549 : vector<1x128xf32>
    %552 = vector.broadcast %cst_245 : f32 to vector<1x128xf32>
    %553 = arith.minimumf %552, %551 : vector<1x128xf32>
    %cst_246 = arith.constant 1.000000e+00 : f32
    %554 = vector.broadcast %cst_246 : f32 to vector<1x128xf32>
    %555 = arith.subf %554, %553 : vector<1x128xf32>
    %556 = arith.mulf %69, %139 : vector<32x128xf32>
    %cst_247 = arith.constant dense<0.000000e+00> : vector<128xf32>
    %557 = vector.multi_reduction <add>, %556, %cst_247 [0] : vector<32x128xf32> to vector<128xf32>
    %558 = vector.shape_cast %557 : vector<128xf32> to vector<1x128xf32>
    %cst_248 = arith.constant -1.000000e+00 : f32
    %cst_249 = arith.constant 1.000000e+00 : f32
    %559 = vector.broadcast %cst_248 : f32 to vector<1x128xf32>
    %560 = arith.maximumf %559, %558 : vector<1x128xf32>
    %561 = vector.broadcast %cst_249 : f32 to vector<1x128xf32>
    %562 = arith.minimumf %561, %560 : vector<1x128xf32>
    %cst_250 = arith.constant 1.000000e+00 : f32
    %563 = vector.broadcast %cst_250 : f32 to vector<1x128xf32>
    %564 = arith.subf %563, %562 : vector<1x128xf32>
    %565 = arith.mulf %69, %149 : vector<32x128xf32>
    %cst_251 = arith.constant dense<0.000000e+00> : vector<128xf32>
    %566 = vector.multi_reduction <add>, %565, %cst_251 [0] : vector<32x128xf32> to vector<128xf32>
    %567 = vector.shape_cast %566 : vector<128xf32> to vector<1x128xf32>
    %cst_252 = arith.constant -1.000000e+00 : f32
    %cst_253 = arith.constant 1.000000e+00 : f32
    %568 = vector.broadcast %cst_252 : f32 to vector<1x128xf32>
    %569 = arith.maximumf %568, %567 : vector<1x128xf32>
    %570 = vector.broadcast %cst_253 : f32 to vector<1x128xf32>
    %571 = arith.minimumf %570, %569 : vector<1x128xf32>
    %cst_254 = arith.constant 1.000000e+00 : f32
    %572 = vector.broadcast %cst_254 : f32 to vector<1x128xf32>
    %573 = arith.subf %572, %571 : vector<1x128xf32>
    %574 = arith.mulf %69, %159 : vector<32x128xf32>
    %cst_255 = arith.constant dense<0.000000e+00> : vector<128xf32>
    %575 = vector.multi_reduction <add>, %574, %cst_255 [0] : vector<32x128xf32> to vector<128xf32>
    %576 = vector.shape_cast %575 : vector<128xf32> to vector<1x128xf32>
    %cst_256 = arith.constant -1.000000e+00 : f32
    %cst_257 = arith.constant 1.000000e+00 : f32
    %577 = vector.broadcast %cst_256 : f32 to vector<1x128xf32>
    %578 = arith.maximumf %577, %576 : vector<1x128xf32>
    %579 = vector.broadcast %cst_257 : f32 to vector<1x128xf32>
    %580 = arith.minimumf %579, %578 : vector<1x128xf32>
    %cst_258 = arith.constant 1.000000e+00 : f32
    %581 = vector.broadcast %cst_258 : f32 to vector<1x128xf32>
    %582 = arith.subf %581, %580 : vector<1x128xf32>
    %583 = arith.mulf %79, %119 : vector<32x128xf32>
    %cst_259 = arith.constant dense<0.000000e+00> : vector<128xf32>
    %584 = vector.multi_reduction <add>, %583, %cst_259 [0] : vector<32x128xf32> to vector<128xf32>
    %585 = vector.shape_cast %584 : vector<128xf32> to vector<1x128xf32>
    %cst_260 = arith.constant -1.000000e+00 : f32
    %cst_261 = arith.constant 1.000000e+00 : f32
    %586 = vector.broadcast %cst_260 : f32 to vector<1x128xf32>
    %587 = arith.maximumf %586, %585 : vector<1x128xf32>
    %588 = vector.broadcast %cst_261 : f32 to vector<1x128xf32>
    %589 = arith.minimumf %588, %587 : vector<1x128xf32>
    %cst_262 = arith.constant 1.000000e+00 : f32
    %590 = vector.broadcast %cst_262 : f32 to vector<1x128xf32>
    %591 = arith.subf %590, %589 : vector<1x128xf32>
    %592 = arith.mulf %79, %129 : vector<32x128xf32>
    %cst_263 = arith.constant dense<0.000000e+00> : vector<128xf32>
    %593 = vector.multi_reduction <add>, %592, %cst_263 [0] : vector<32x128xf32> to vector<128xf32>
    %594 = vector.shape_cast %593 : vector<128xf32> to vector<1x128xf32>
    %cst_264 = arith.constant -1.000000e+00 : f32
    %cst_265 = arith.constant 1.000000e+00 : f32
    %595 = vector.broadcast %cst_264 : f32 to vector<1x128xf32>
    %596 = arith.maximumf %595, %594 : vector<1x128xf32>
    %597 = vector.broadcast %cst_265 : f32 to vector<1x128xf32>
    %598 = arith.minimumf %597, %596 : vector<1x128xf32>
    %cst_266 = arith.constant 1.000000e+00 : f32
    %599 = vector.broadcast %cst_266 : f32 to vector<1x128xf32>
    %600 = arith.subf %599, %598 : vector<1x128xf32>
    %601 = arith.mulf %79, %139 : vector<32x128xf32>
    %cst_267 = arith.constant dense<0.000000e+00> : vector<128xf32>
    %602 = vector.multi_reduction <add>, %601, %cst_267 [0] : vector<32x128xf32> to vector<128xf32>
    %603 = vector.shape_cast %602 : vector<128xf32> to vector<1x128xf32>
    %cst_268 = arith.constant -1.000000e+00 : f32
    %cst_269 = arith.constant 1.000000e+00 : f32
    %604 = vector.broadcast %cst_268 : f32 to vector<1x128xf32>
    %605 = arith.maximumf %604, %603 : vector<1x128xf32>
    %606 = vector.broadcast %cst_269 : f32 to vector<1x128xf32>
    %607 = arith.minimumf %606, %605 : vector<1x128xf32>
    %cst_270 = arith.constant 1.000000e+00 : f32
    %608 = vector.broadcast %cst_270 : f32 to vector<1x128xf32>
    %609 = arith.subf %608, %607 : vector<1x128xf32>
    %610 = arith.mulf %79, %149 : vector<32x128xf32>
    %cst_271 = arith.constant dense<0.000000e+00> : vector<128xf32>
    %611 = vector.multi_reduction <add>, %610, %cst_271 [0] : vector<32x128xf32> to vector<128xf32>
    %612 = vector.shape_cast %611 : vector<128xf32> to vector<1x128xf32>
    %cst_272 = arith.constant -1.000000e+00 : f32
    %cst_273 = arith.constant 1.000000e+00 : f32
    %613 = vector.broadcast %cst_272 : f32 to vector<1x128xf32>
    %614 = arith.maximumf %613, %612 : vector<1x128xf32>
    %615 = vector.broadcast %cst_273 : f32 to vector<1x128xf32>
    %616 = arith.minimumf %615, %614 : vector<1x128xf32>
    %cst_274 = arith.constant 1.000000e+00 : f32
    %617 = vector.broadcast %cst_274 : f32 to vector<1x128xf32>
    %618 = arith.subf %617, %616 : vector<1x128xf32>
    %619 = arith.mulf %79, %159 : vector<32x128xf32>
    %cst_275 = arith.constant dense<0.000000e+00> : vector<128xf32>
    %620 = vector.multi_reduction <add>, %619, %cst_275 [0] : vector<32x128xf32> to vector<128xf32>
    %621 = vector.shape_cast %620 : vector<128xf32> to vector<1x128xf32>
    %cst_276 = arith.constant -1.000000e+00 : f32
    %cst_277 = arith.constant 1.000000e+00 : f32
    %622 = vector.broadcast %cst_276 : f32 to vector<1x128xf32>
    %623 = arith.maximumf %622, %621 : vector<1x128xf32>
    %624 = vector.broadcast %cst_277 : f32 to vector<1x128xf32>
    %625 = arith.minimumf %624, %623 : vector<1x128xf32>
    %cst_278 = arith.constant 1.000000e+00 : f32
    %626 = vector.broadcast %cst_278 : f32 to vector<1x128xf32>
    %627 = arith.subf %626, %625 : vector<1x128xf32>
    %cst_279 = arith.constant 0x7F800000 : f32
    %628 = vector.broadcast %cst_279 : f32 to vector<1x128xf32>
    %629 = arith.addf %168, %177 : vector<1x128xf32>
    %630 = arith.addf %629, %186 : vector<1x128xf32>
    %631 = arith.addf %630, %195 : vector<1x128xf32>
    %632 = arith.addf %631, %204 : vector<1x128xf32>
    %633 = arith.addf %168, %213 : vector<1x128xf32>
    %634 = arith.minimumf %629, %168 : vector<1x128xf32>
    %635 = arith.minimumf %634, %633 : vector<1x128xf32>
    %636 = arith.addf %635, %222 : vector<1x128xf32>
    %637 = arith.minimumf %630, %629 : vector<1x128xf32>
    %638 = arith.minimumf %637, %636 : vector<1x128xf32>
    %639 = arith.addf %638, %231 : vector<1x128xf32>
    %640 = arith.minimumf %631, %630 : vector<1x128xf32>
    %641 = arith.minimumf %640, %639 : vector<1x128xf32>
    %642 = arith.addf %641, %240 : vector<1x128xf32>
    %643 = arith.minimumf %632, %631 : vector<1x128xf32>
    %644 = arith.minimumf %643, %642 : vector<1x128xf32>
    %645 = arith.addf %644, %249 : vector<1x128xf32>
    %646 = arith.minimumf %628, %632 : vector<1x128xf32>
    %647 = arith.minimumf %646, %645 : vector<1x128xf32>
    %648 = arith.addf %647, %258 : vector<1x128xf32>
    %649 = arith.addf %633, %267 : vector<1x128xf32>
    %650 = arith.minimumf %636, %633 : vector<1x128xf32>
    %651 = arith.minimumf %650, %649 : vector<1x128xf32>
    %652 = arith.addf %651, %276 : vector<1x128xf32>
    %653 = arith.minimumf %639, %636 : vector<1x128xf32>
    %654 = arith.minimumf %653, %652 : vector<1x128xf32>
    %655 = arith.addf %654, %285 : vector<1x128xf32>
    %656 = arith.minimumf %642, %639 : vector<1x128xf32>
    %657 = arith.minimumf %656, %655 : vector<1x128xf32>
    %658 = arith.addf %657, %294 : vector<1x128xf32>
    %659 = arith.minimumf %645, %642 : vector<1x128xf32>
    %660 = arith.minimumf %659, %658 : vector<1x128xf32>
    %661 = arith.addf %660, %303 : vector<1x128xf32>
    %662 = arith.minimumf %648, %645 : vector<1x128xf32>
    %663 = arith.minimumf %662, %661 : vector<1x128xf32>
    %664 = arith.addf %663, %312 : vector<1x128xf32>
    %665 = arith.minimumf %628, %648 : vector<1x128xf32>
    %666 = arith.minimumf %665, %664 : vector<1x128xf32>
    %667 = arith.addf %666, %321 : vector<1x128xf32>
    %668 = arith.addf %649, %330 : vector<1x128xf32>
    %669 = arith.minimumf %652, %649 : vector<1x128xf32>
    %670 = arith.minimumf %669, %668 : vector<1x128xf32>
    %671 = arith.addf %670, %339 : vector<1x128xf32>
    %672 = arith.minimumf %655, %652 : vector<1x128xf32>
    %673 = arith.minimumf %672, %671 : vector<1x128xf32>
    %674 = arith.addf %673, %348 : vector<1x128xf32>
    %675 = arith.minimumf %658, %655 : vector<1x128xf32>
    %676 = arith.minimumf %675, %674 : vector<1x128xf32>
    %677 = arith.addf %676, %357 : vector<1x128xf32>
    %678 = arith.minimumf %661, %658 : vector<1x128xf32>
    %679 = arith.minimumf %678, %677 : vector<1x128xf32>
    %680 = arith.addf %679, %366 : vector<1x128xf32>
    %681 = arith.minimumf %664, %661 : vector<1x128xf32>
    %682 = arith.minimumf %681, %680 : vector<1x128xf32>
    %683 = arith.addf %682, %375 : vector<1x128xf32>
    %684 = arith.minimumf %667, %664 : vector<1x128xf32>
    %685 = arith.minimumf %684, %683 : vector<1x128xf32>
    %686 = arith.addf %685, %384 : vector<1x128xf32>
    %687 = arith.minimumf %628, %667 : vector<1x128xf32>
    %688 = arith.minimumf %687, %686 : vector<1x128xf32>
    %689 = arith.addf %688, %393 : vector<1x128xf32>
    %690 = arith.addf %668, %402 : vector<1x128xf32>
    %691 = arith.minimumf %671, %668 : vector<1x128xf32>
    %692 = arith.minimumf %691, %690 : vector<1x128xf32>
    %693 = arith.addf %692, %411 : vector<1x128xf32>
    %694 = arith.minimumf %674, %671 : vector<1x128xf32>
    %695 = arith.minimumf %694, %693 : vector<1x128xf32>
    %696 = arith.addf %695, %420 : vector<1x128xf32>
    %697 = arith.minimumf %677, %674 : vector<1x128xf32>
    %698 = arith.minimumf %697, %696 : vector<1x128xf32>
    %699 = arith.addf %698, %429 : vector<1x128xf32>
    %700 = arith.minimumf %680, %677 : vector<1x128xf32>
    %701 = arith.minimumf %700, %699 : vector<1x128xf32>
    %702 = arith.addf %701, %438 : vector<1x128xf32>
    %703 = arith.minimumf %683, %680 : vector<1x128xf32>
    %704 = arith.minimumf %703, %702 : vector<1x128xf32>
    %705 = arith.addf %704, %447 : vector<1x128xf32>
    %706 = arith.minimumf %686, %683 : vector<1x128xf32>
    %707 = arith.minimumf %706, %705 : vector<1x128xf32>
    %708 = arith.addf %707, %456 : vector<1x128xf32>
    %709 = arith.minimumf %689, %686 : vector<1x128xf32>
    %710 = arith.minimumf %709, %708 : vector<1x128xf32>
    %711 = arith.addf %710, %465 : vector<1x128xf32>
    %712 = arith.minimumf %693, %690 : vector<1x128xf32>
    %713 = arith.minimumf %712, %628 : vector<1x128xf32>
    %714 = arith.addf %713, %474 : vector<1x128xf32>
    %715 = arith.minimumf %696, %693 : vector<1x128xf32>
    %716 = arith.minimumf %715, %714 : vector<1x128xf32>
    %717 = arith.addf %716, %483 : vector<1x128xf32>
    %718 = arith.minimumf %699, %696 : vector<1x128xf32>
    %719 = arith.minimumf %718, %717 : vector<1x128xf32>
    %720 = arith.addf %719, %492 : vector<1x128xf32>
    %721 = arith.minimumf %702, %699 : vector<1x128xf32>
    %722 = arith.minimumf %721, %720 : vector<1x128xf32>
    %723 = arith.addf %722, %501 : vector<1x128xf32>
    %724 = arith.minimumf %705, %702 : vector<1x128xf32>
    %725 = arith.minimumf %724, %723 : vector<1x128xf32>
    %726 = arith.addf %725, %510 : vector<1x128xf32>
    %727 = arith.minimumf %708, %705 : vector<1x128xf32>
    %728 = arith.minimumf %727, %726 : vector<1x128xf32>
    %729 = arith.addf %728, %519 : vector<1x128xf32>
    %730 = arith.minimumf %711, %708 : vector<1x128xf32>
    %731 = arith.minimumf %730, %729 : vector<1x128xf32>
    %732 = arith.addf %731, %528 : vector<1x128xf32>
    %733 = arith.minimumf %717, %714 : vector<1x128xf32>
    %734 = arith.minimumf %733, %628 : vector<1x128xf32>
    %735 = arith.addf %734, %537 : vector<1x128xf32>
    %736 = arith.minimumf %720, %717 : vector<1x128xf32>
    %737 = arith.minimumf %736, %735 : vector<1x128xf32>
    %738 = arith.addf %737, %546 : vector<1x128xf32>
    %739 = arith.minimumf %723, %720 : vector<1x128xf32>
    %740 = arith.minimumf %739, %738 : vector<1x128xf32>
    %741 = arith.addf %740, %555 : vector<1x128xf32>
    %742 = arith.minimumf %726, %723 : vector<1x128xf32>
    %743 = arith.minimumf %742, %741 : vector<1x128xf32>
    %744 = arith.addf %743, %564 : vector<1x128xf32>
    %745 = arith.minimumf %729, %726 : vector<1x128xf32>
    %746 = arith.minimumf %745, %744 : vector<1x128xf32>
    %747 = arith.addf %746, %573 : vector<1x128xf32>
    %748 = arith.minimumf %732, %729 : vector<1x128xf32>
    %749 = arith.minimumf %748, %747 : vector<1x128xf32>
    %750 = arith.addf %749, %582 : vector<1x128xf32>
    %751 = arith.minimumf %738, %735 : vector<1x128xf32>
    %752 = arith.minimumf %751, %628 : vector<1x128xf32>
    %753 = arith.addf %752, %591 : vector<1x128xf32>
    %754 = arith.minimumf %741, %738 : vector<1x128xf32>
    %755 = arith.minimumf %754, %753 : vector<1x128xf32>
    %756 = arith.addf %755, %600 : vector<1x128xf32>
    %757 = arith.minimumf %744, %741 : vector<1x128xf32>
    %758 = arith.minimumf %757, %756 : vector<1x128xf32>
    %759 = arith.addf %758, %609 : vector<1x128xf32>
    %760 = arith.minimumf %747, %744 : vector<1x128xf32>
    %761 = arith.minimumf %760, %759 : vector<1x128xf32>
    %762 = arith.addf %761, %618 : vector<1x128xf32>
    %763 = arith.minimumf %750, %747 : vector<1x128xf32>
    %764 = arith.minimumf %763, %762 : vector<1x128xf32>
    %765 = arith.addf %764, %627 : vector<1x128xf32>
    %c0_280 = arith.constant 0 : index
    %c0_281 = arith.constant 0 : index
    %766 = vector.load %arg3[%c0_280, %c0_281] : memref<1x128xf32, #tpu.memory_space<vmem>>, vector<1x128xf32>
    tpu.vector_store %arg3[%c0_280, %c0_281], %765 {strides = array<i32>} : memref<1x128xf32, #tpu.memory_space<vmem>>, vector<1x128xf32>,
    return
  }
  func.func @transform_0(%arg0: i32) -> (i32, i32, i32) {
    %c0_i32 = arith.constant 0 : i32
    %c0_i32_0 = arith.constant 0 : i32
    %c0_i32_1 = arith.constant 0 : i32
    return %c0_i32, %c0_i32_0, %arg0 : i32, i32, i32
  }
  func.func @transform_1(%arg0: i32) -> (i32, i32, i32) {
    %c0_i32 = arith.constant 0 : i32
    %c0_i32_0 = arith.constant 0 : i32
    %c0_i32_1 = arith.constant 0 : i32
    return %c0_i32, %c0_i32_0, %arg0 : i32, i32, i32
  }
  func.func @transform_2(%arg0: i32) -> (i32, i32) {
    %c0_i32 = arith.constant 0 : i32
    %c0_i32_0 = arith.constant 0 : i32
    return %c0_i32, %arg0 : i32, i32
  }
}

</mosaic_0001>

<bundles_post_ra>
// kernel: tpu_custom_call.1
= control target key start
LH: loop header
LB: loop body
LE: loop exit
PB: predicated region body
PF: predicated region fallthrough
CT: control target
= control target key end

     0   :  { %7 = vsyncpa [#allocation3], 0  ;;  %s2702_s0 = inlined_call_operand.hbm [shape: f32[8,32,128], index: 0, kind: input, shape index: {}]   ;;  %s2703_s1 = inlined_call_operand.hbm [shape: f32[8,32,128], index: 1, kind: input, shape index: {}]   ;;  %s2704_s2 = inlined_call_operand.hbm [shape: f32[1,128], index: 2, kind: output, shape index: {}]  }
   0x1   :  { %8 = vsyncpa [#allocation6], 0 }
   0x2   :  { %9 = vsyncpa [#allocation4], 0  ;;  %s1563_s9 = smov [#allocation2]   ;;  %s1491_s13 = scalar_lea.hbm %s2702_s0, 4096 }
   0x3   :  { %s15_s10 = sshll.u32 %s1563_s9, 4  ;;  %p1492_p0 = scmp.ne.s32.totalorder %s2702_s0, %s1491_s13  ;;  %s16_s10 = int_to_ptr.vmem [resolvable:$true] %s15_s10 }
   0x4   :  { %p1495_p1 = scmp.lt.u32.totalorder %s1491_s13, %s2702_s0 }
   0x6   :  { %p1497_p2 = pnand %p1495_p1, %p1492_p0 }
   0x8   :  { %1500 = shalt.err (!%p1497_p2)
}
   0x9   :  { %s1501_s18 = scalar_lea.vmem %s16_s10, 4096  ;;  %p1506_p4 = scmp.lt.s32.totalorder %s16_s10, %s16_s10 }
   0xa   :  { %p1502_p3 = scmp.ne.s32.totalorder %s16_s10, %s1501_s18  ;;  %p1507_p5 = scmp.lt.s32.totalorder %s1501_s18, %s1501_s18 }
   0xc   :  { %p1508_p6 = por %p1507_p5, %p1506_p4 }
   0xe   :  { %p1509_p7 = pnand %p1508_p6, %p1502_p3 }
  0x10   :  { %1512 = shalt.err (!%p1509_p7)
}
  0x11   :  { %s1564_s19 = smov 128   ;;  %s1565_s20 = smov 8  }
  0x12   :  { %21 = dma.hbm_to_vmem [thread:$0]  %s2702_s0, 4096, %s16_s10, [#allocation3], %s1564_s19, %s1564_s19, %s1565_s20  }
  0x13   :  { %s1566_s23 = smov [#allocation5]   ;;  %s1513_s27 = scalar_lea.hbm %s2703_s1, 4096 }
  0x14   :  { %s27_s24 = sshll.u32 %s1566_s23, 4  ;;  %p1514_p8 = scmp.ne.s32.totalorder %s2703_s1, %s1513_s27  ;;  %s28_s24 = int_to_ptr.vmem [resolvable:$true] %s27_s24 }
  0x15   :  { %p1517_p9 = scmp.lt.u32.totalorder %s1513_s27, %s2703_s1 }
  0x17   :  { %p1519_p10 = pnand %p1517_p9, %p1514_p8 }
  0x19   :  { %1522 = shalt.err (!%p1519_p10)
}
  0x1a   :  { %s1523_s4 = scalar_lea.vmem %s28_s24, 4096  ;;  %p1528_p12 = scmp.lt.s32.totalorder %s28_s24, %s28_s24 }
  0x1b   :  { %p1524_p11 = scmp.ne.s32.totalorder %s28_s24, %s1523_s4  ;;  %p1529_p13 = scmp.lt.s32.totalorder %s1523_s4, %s1523_s4 }
  0x1d   :  { %p1530_p0 = por %p1529_p13, %p1528_p12 }
  0x1f   :  { %p1531_p1 = pnand %p1530_p0, %p1524_p11 }
  0x21   :  { %1534 = shalt.err (!%p1531_p1)
}
  0x22   :  { %33 = dma.hbm_to_vmem [thread:$0]  %s2703_s1, 4096, %s28_s24, [#allocation6], %s1564_s19, %s1564_s19, %s1565_s20  }
  0x23   :  { %1557 = dma.done.wait [#allocation3], 4096  }
  0x24   :  { %1558 = vsyncadd [#allocation3], 4294963200 }
  0x25   :  { %1559 = dma.done.wait [#allocation6], 4096  }
  0x26   :  { %1560 = vsyncadd [#allocation6], 4294963200  ;;  %v1607_v0 = vld [vmem:[#allocation2] sm:$0xff]  ;;  %v1609_v1 = vld [vmem:[#allocation2 + $0x8] sm:$0xff]  ;;  %s1567_s1 = smov [#allocation7]  }
  0x27   :  { %v44_v2 = vmul.f32 %v1607_v0, %v1607_v0  ;;  %v45_v3 = vmul.f32 %v1609_v1, %v1609_v1  ;;  %v1615_v4 = vld [vmem:[#allocation2 + $0x20] sm:$0xff]  ;;  %v1617_v5 = vld [vmem:[#allocation2 + $0x28] sm:$0xff]  ;;  %v1619_v6 = vld [vmem:[#allocation2 + $0x10] sm:$0xff]  ;;  %s1392_s6 = sshll.u32 %s1567_s1, 4  ;;  %s1393_s6 = int_to_ptr.vmem [resolvable:$true] %s1392_s6 }
  0x28   :  { %v68_v7 = vmul.f32 %v1615_v4, %v1615_v4  ;;  %v69_v8 = vmul.f32 %v1617_v5, %v1617_v5  ;;  %v46_v9 = vmul.f32 %v1619_v6, %v1619_v6  ;;  %v1627_v11 = vld [vmem:[#allocation2 + $0x30] sm:$0xff]  ;;  %v1629_v12 = vld [vmem:[#allocation2 + $0x40] sm:$0xff]  ;;  %v1631_v13 = vld [vmem:[#allocation2 + $0x48] sm:$0xff]  ;;  %s1535_s7 = scalar_lea.vmem %s1393_s6, 16  ;;  %s1539_s8 = scalar_lea.vmem %s1393_s6, 32 }
  0x29   :  { %v48_v10 = vadd.f32 %v45_v3, %v44_v2  ;;  %v1633_v14 = vld [vmem:[#allocation2 + $0x18] sm:$0xff]  ;;  %v1635_v15 = vld [vmem:[#allocation2 + $0x60] sm:$0xff]  ;;  %v1637_v16 = vld [vmem:[#allocation2 + $0x68] sm:$0xff]  ;;  %v70_v17 = vmul.f32 %v1627_v11, %v1627_v11  ;;  %v92_v19 = vmul.f32 %v1629_v12, %v1629_v12  ;;  %v93_v20 = vmul.f32 %v1631_v13, %v1631_v13  ;;  %p1536_p2 = scmp.ne.s32.totalorder %s1393_s6, %s1535_s7  ;;  %p1540_p3 = scmp.lt.s32.totalorder %s1393_s6, %s1393_s6 }
  0x2a   :  { %2802 = vst [vmem:[#allocation11_spill] sm:$0xff] %v1635_v15  ;;  %2803 = vst [vmem:[#allocation12_spill] sm:$0xff] %v1637_v16  ;;  %v72_v18 = vadd.f32 %v69_v8, %v68_v7  ;;  %v47_v21 = vmul.f32 %v1633_v14, %v1633_v14  ;;  %v1647_v23 = vld [vmem:[#allocation2 + $0x38] sm:$0xff]  ;;  %v1649_v24 = vld [vmem:[#allocation2 + $0x50] sm:$0xff]  ;;  %v116_v25 = vmul.f32 %v1635_v15, %v1635_v15  ;;  %p1541_p4 = scmp.lt.s32.totalorder %s1539_s8, %s1535_s7 }
  0x2b   :  { %v49_v22 = vadd.f32 %v48_v10, %v46_v9  ;;  %v117_v26 = vmul.f32 %v1637_v16, %v1637_v16  ;;  %v1655_v27 = vld [vmem:[#allocation2 + $0x70] sm:$0xff]  ;;  %v1657_v28 = vld [vmem:[#allocation2 + $0x80] sm:$0xff]  ;;  %v1659_v29 = vld [vmem:[#allocation2 + $0x88] sm:$0xff]  ;;  %v71_v30 = vmul.f32 %v1647_v23, %v1647_v23  ;;  %v94_v32 = vmul.f32 %v1649_v24, %v1649_v24 }
  0x2c   :  { %2804 = vst [vmem:[#allocation13_spill] sm:$0xff] %v1655_v27  ;;  %2805 = vst [vmem:[#allocation14_spill] sm:$0xff] %v1657_v28  ;;  %v73_v31 = vadd.f32 %v72_v18, %v70_v17  ;;  %v96_v33 = vadd.f32 %v93_v20, %v92_v19  ;;  %v1665_v35 = vld [vmem:[#allocation2 + $0x58] sm:$0xff]  ;;  %v118_v36 = vmul.f32 %v1655_v27, %v1655_v27  ;;  %v1675_v41 = vld [vmem:[#allocation2 + $0x90] sm:$0xff]  ;;  %p1542_p5 = por %p1541_p4, %p1540_p3 }
  0x2d   :  { %2806 = vst [vmem:[#allocation15_spill] sm:$0xff] %v1659_v29  ;;  %v50_v34 = vadd.f32 %v49_v22, %v47_v21  ;;  %v120_v37 = vadd.f32 %v117_v26, %v116_v25  ;;  %v1669_v38 = vld [vmem:[#allocation2 + $0x78] sm:$0xff]  ;;  %v140_v39 = vmul.f32 %v1657_v28, %v1657_v28  ;;  %v141_v40 = vmul.f32 %v1659_v29, %v1659_v29  ;;  %v1677_v42 = vld [vmem:[#allocation2 + $0xa0] sm:$0xff]  ;;  %v1679_v43 = vld [vmem:[#allocation2 + $0xa8] sm:$0xff] }
  0x2e   :  { %2807 = vst [vmem:[#allocation16_spill] sm:$0xff] %v1669_v38  ;;  %2808 = vst [vmem:[#allocation17_spill] sm:$0xff] %v1675_v41  ;;  %v74_v44 = vadd.f32 %v73_v31, %v71_v30  ;;  %v95_v45 = vmul.f32 %v1665_v35, %v1665_v35  ;;  %v97_v46 = vadd.f32 %v96_v33, %v94_v32  ;;  %v1683_v47 = vld [vmem:[#allocation5] sm:$0xff]  ;;  %v1687_v51 = vld [vmem:[#allocation2 + $0x98] sm:$0xff]  ;;  %p1543_p6 = pnand %p1542_p5, %p1536_p2 }
  0x2f   :  { %2809 = vst [vmem:[#allocation18_spill] sm:$0xff] %v1677_v42  ;;  %2810 = vst [vmem:[#allocation19_spill] sm:$0xff] %v1679_v43  ;;  %v51_v48 = vrot.slane %v50_v34, 4  ;;  %v119_v49 = vmul.f32 %v1669_v38, %v1669_v38  ;;  %v121_v50 = vadd.f32 %v120_v37, %v118_v36  ;;  %v1689_v52 = vld [vmem:[#allocation5 + $0x8] sm:$0xff]  ;;  %v142_v53 = vmul.f32 %v1675_v41, %v1675_v41  ;;  %v1693_v55 = vld [vmem:[#allocation2 + $0xb0] sm:$0xff] }
  0x30   :  { %2811 = vst [vmem:[#allocation20_spill] sm:$0xff] %v1687_v51  ;;  %v144_v54 = vadd.f32 %v141_v40, %v140_v39  ;;  %2812 = vst [vmem:[#allocation21_spill] sm:$0xff] %v1693_v55  ;;  %v164_v56 = vmul.f32 %v1677_v42, %v1677_v42  ;;  %v165_v57 = vmul.f32 %v1679_v43, %v1679_v43  ;;  %v1699_v58 = vld [vmem:[#allocation5 + $0x10] sm:$0xff]  ;;  %v1701_v59 = vld [vmem:[#allocation5 + $0x18] sm:$0xff]  ;;  %v75_v61 = vrot.slane %v74_v44, 4 }
  0x31   :  { %v235_v60 = vmul.f32 %v1683_v47, %v1683_v47  ;;  %v98_v62 = vadd.f32 %v97_v46, %v95_v45  ;;  %v143_v63 = vmul.f32 %v1687_v51, %v1687_v51  ;;  %v236_v2 = vmul.f32 %v1689_v52, %v1689_v52  ;;  %v1709_v3 = vld [vmem:[#allocation5 + $0x20] sm:$0xff]  ;;  %v1711_v7 = vld [vmem:[#allocation5 + $0x28] sm:$0xff]  ;;  %v1717_v18 = vld [vmem:[#allocation5 + $0x30] sm:$0xff] }
  0x32   :  { %v52_v8 = vadd.f32 %v51_v48, %v50_v34  ;;  %v122_v9 = vadd.f32 %v121_v50, %v119_v49  ;;  %v166_v10 = vmul.f32 %v1693_v55, %v1693_v55  ;;  %v237_v17 = vmul.f32 %v1699_v58, %v1699_v58  ;;  %v1719_v20 = vld [vmem:[#allocation2 + $0xb8] sm:$0xff]  ;;  %v1733_v45 = vld [vmem:[#allocation2 + $0xc0] sm:$0xff]  ;;  %v1735_v46 = vld [vmem:[#allocation2 + $0xc8] sm:$0xff] }
  0x33   :  { %v145_v19 = vadd.f32 %v144_v54, %v142_v53  ;;  %2813 = vst [vmem:[#allocation22_spill] sm:$0xff] %v1719_v20  ;;  %v168_v21 = vadd.f32 %v165_v57, %v164_v56  ;;  %v238_v22 = vmul.f32 %v1701_v59, %v1701_v59  ;;  %v239_v25 = vadd.f32 %v236_v2, %v235_v60  ;;  %v1723_v26 = vld [vmem:[#allocation5 + $0x38] sm:$0xff]  ;;  %v1739_v60 = vld [vmem:[#allocation2 + $0xd0] sm:$0xff]  ;;  %v1783_v43 = vld [vmem:[#allocation5 + $0x80] sm:$0xff] }
  0x34   :  { %v259_v30 = vmul.f32 %v1709_v3, %v1709_v3  ;;  %v260_v31 = vmul.f32 %v1711_v7, %v1711_v7  ;;  %v76_v32 = vadd.f32 %v75_v61, %v74_v44  ;;  %v99_v33 = vrot.slane %v98_v62, 4  ;;  %2814 = vst [vmem:[#allocation23_spill] sm:$0xff] %v1733_v45  ;;  %2815 = vst [vmem:[#allocation24_spill] sm:$0xff] %v1735_v46  ;;  %v1793_v28 = vld [vmem:[#allocation5 + $0x78] sm:$0xff]  ;;  %v1810_v27 = vld [vmem:[#allocation2 + $0xf0] sm:$0xff] }
  0x35   :  { %v240_v34 = vadd.f32 %v239_v25, %v237_v17  ;;  %v261_v36 = vmul.f32 %v1717_v18, %v1717_v18  ;;  %v53_v37 = vrot.slane %v52_v8, 2  ;;  %v123_v39 = vrot.slane %v122_v9, 4  ;;  %2816 = vst [vmem:[#allocation25_spill] sm:$0xff] %v1739_v60  ;;  %v1745_v17 = vld [vmem:[#allocation5 + $0x40] sm:$0xff]  ;;  %v1747_v25 = vld [vmem:[#allocation5 + $0x48] sm:$0xff]  ;;  %2820 = vst [vmem:[#allocation29_spill] sm:$0xff] %v1783_v43 }
  0x36   :  { %v167_v40 = vmul.f32 %v1719_v20, %v1719_v20  ;;  %v263_v48 = vadd.f32 %v260_v31, %v259_v30  ;;  %v146_v49 = vadd.f32 %v145_v19, %v143_v63  ;;  %v169_v50 = vadd.f32 %v168_v21, %v166_v10  ;;  %v1749_v19 = vld [vmem:[#allocation2 + $0xd8] sm:$0xff]  ;;  %v1751_v30 = vld [vmem:[#allocation2 + $0xe0] sm:$0xff]  ;;  %2822 = vst [vmem:[#allocation31_spill] sm:$0xff] %v1793_v28 }
  0x37   :  { %v241_v53 = vadd.f32 %v240_v34, %v238_v22  ;;  %v262_v44 = vmul.f32 %v1723_v26, %v1723_v26  ;;  %v77_v56 = vrot.slane %v76_v32, 2  ;;  %v100_v57 = vadd.f32 %v99_v33, %v98_v62  ;;  %2817 = vst [vmem:[#allocation26_spill] sm:$0xff] %v1749_v19  ;;  %2818 = vst [vmem:[#allocation27_spill] sm:$0xff] %v1751_v30  ;;  %v1753_v33 = vld [vmem:[#allocation5 + $0x50] sm:$0xff] }
  0x38   :  { %v264_v54 = vadd.f32 %v263_v48, %v261_v36  ;;  %v188_v61 = vmul.f32 %v1733_v45, %v1733_v45  ;;  %v189_v2 = vmul.f32 %v1735_v46, %v1735_v46  ;;  %v54_v63 = vadd.f32 %v53_v37, %v52_v8  ;;  %v1763_v48 = vld [vmem:[#allocation5 + $0x58] sm:$0xff]  ;;  %v1771_v46 = vld [vmem:[#allocation5 + $0x60] sm:$0xff]  ;;  %2824 = vst [vmem:[#allocation33_spill] sm:$0xff] %v1810_v27 }
  0x39   :  { %v124_v10 = vadd.f32 %v123_v39, %v122_v9  ;;  %v147_v21 = vrot.slane %v146_v49, 4  ;;  %v170_v22 = vadd.f32 %v169_v50, %v167_v40  ;;  %v242_v62 = vrot.slane %v241_v53, 4 }
  0x3a   :  { %v265_v31 = vadd.f32 %v264_v54, %v262_v44  ;;  %v190_v34 = vmul.f32 %v1739_v60, %v1739_v60  ;;  %v283_v36 = vmul.f32 %v1745_v17, %v1745_v17  ;;  %v284_v8 = vmul.f32 %v1747_v25, %v1747_v25 }
  0x3b   :  { %v78_v9 = vadd.f32 %v77_v56, %v76_v32  ;;  %v101_v37 = vrot.slane %v100_v57, 2  ;;  %v191_v39 = vmul.f32 %v1749_v19, %v1749_v19  ;;  %v192_v40 = vadd.f32 %v189_v2, %v188_v61  ;;  %v1775_v19 = vld [vmem:[#allocation2 + $0xe8] sm:$0xff] }
  0x3c   :  { %v1767_v50 = vmul.f32 %v1751_v30, %v1751_v30  ;;  %v243_v44 = vadd.f32 %v242_v62, %v241_v53  ;;  %v266_v54 = vrot.slane %v265_v31, 4  ;;  %v285_v60 = vmul.f32 %v1753_v33, %v1753_v33  ;;  %2819 = vst [vmem:[#allocation28_spill] sm:$0xff] %v1775_v19  ;;  %v1779_v53 = vld [vmem:[#allocation5 + $0x68] sm:$0xff]  ;;  %v1781_v62 = vld [vmem:[#allocation5 + $0x70] sm:$0xff] }
  0x3d   :  { %v55_v45 = vrot.slane %v54_v63, 1  ;;  %v125_v32 = vrot.slane %v124_v10, 2  ;;  %v1773_v56 = vadd.f32 %v147_v21, %v146_v49  ;;  %v171_v20 = vrot.slane %v170_v22, 4 }
  0x3e   :  { %v244_v61 = vrot.slane %v243_v44, 2  ;;  %v267_v2 = vadd.f32 %v266_v54, %v265_v31  ;;  %v286_v30 = vmul.f32 %v1763_v48, %v1763_v48  ;;  %v287_v55 = vadd.f32 %v284_v8, %v283_v36  ;;  %v1791_v36 = vld [vmem:[#allocation5 + $0x88] sm:$0xff] }
  0x3f   :  { %v79_v42 = vrot.slane %v78_v9, 1  ;;  %v1785_v51 = vadd.f32 %v101_v37, %v100_v57  ;;  %v193_v49 = vadd.f32 %v192_v40, %v190_v34  ;;  %v307_v21 = vmul.f32 %v1771_v46, %v1771_v46  ;;  %2821 = vst [vmem:[#allocation30_spill] sm:$0xff] %v1791_v36 }
  0x40   :  { %v213_v31 = vmul.f32 %v1775_v19, %v1775_v19  ;;  %v245_v54 = vadd.f32 %v244_v61, %v243_v44  ;;  %v268_v41 = vrot.slane %v267_v2, 2  ;;  %v288_v29 = vadd.f32 %v287_v55, %v285_v60  ;;  %v1803_v55 = vld [vmem:[#allocation5 + $0x90] sm:$0xff] }
  0x41   :  { %v56_v8 = vadd.f32 %v55_v45, %v54_v63  ;;  %v308_v38 = vmul.f32 %v1779_v53, %v1779_v53  ;;  %v309_v57 = vmul.f32 %v1781_v62, %v1781_v62  ;;  %v331_v34 = vmul.f32 %v1783_v43, %v1783_v43  ;;  %2823 = vst [vmem:[#allocation32_spill] sm:$0xff] %v1803_v55 }
  0x42   :  { %v1801_v37 = vadd.f32 %v125_v32, %v124_v10  ;;  %v246_v40 = vrot.slane %v245_v54, 1  ;;  %v269_v44 = vadd.f32 %v268_v41, %v267_v2  ;;  %v289_v61 = vadd.f32 %v288_v29, %v286_v30  ;;  %v1814_v41 = vld [vmem:[#allocation5 + $0x98] sm:$0xff] }
  0x43   :  { %v149_v45 = vrot.slane %v1773_v56, 2  ;;  %v1806_v60 = vadd.f32 %v171_v20, %v170_v22  ;;  %v311_v63 = vadd.f32 %v308_v38, %v307_v21  ;;  %v332_v19 = vmul.f32 %v1791_v36, %v1791_v36  ;;  %2825 = vst [vmem:[#allocation34_spill] sm:$0xff] %v1814_v41  ;;  %v1820_v36 = vld [vmem:[#allocation5 + $0xa0] sm:$0xff] }
  0x44   :  { %v247_v16 = vadd.f32 %v246_v40, %v245_v54  ;;  %v270_v15 = vrot.slane %v269_v44, 1  ;;  %v290_v43 = vrot.slane %v289_v61, 4  ;;  %v310_v10 = vmul.f32 %v1793_v28, %v1793_v28  ;;  %2826 = vst [vmem:[#allocation35_spill] sm:$0xff] %v1820_v36 }
  0x45   :  { %v57_v29 = vmax.f32 %v56_v8, 1e-24  ;;  %v312_v30 = vadd.f32 %v311_v63, %v309_v57  ;;  %v333_v20 = vmul.f32 %v1803_v55, %v1803_v55  ;;  %v335_v22 = vadd.f32 %v332_v19, %v331_v34  ;;  %v1829_v57 = vld [vmem:[#allocation5 + $0xa8] sm:$0xff] }
  0x46   :  { %v1818_v38 = vadd.f32 %v79_v42, %v78_v9  ;;  %v248_v32 = vmax.f32 %v247_v16, 1e-24  ;;  %v271_v2 = vadd.f32 %v270_v15, %v269_v44  ;;  %v291_v21 = vadd.f32 %v290_v43, %v289_v61  ;;  %2827 = vst [vmem:[#allocation36_spill] sm:$0xff] %v1829_v57  ;;  %v1832_v43 = vld [vmem:[#allocation5 + $0xc0] sm:$0xff]  ;;  %v1834_v9 = vld [vmem:[#allocation5 + $0xc8] sm:$0xff]  ;;  %v1839_v44 = vld [vmem:[#allocation2 + $0xf8] sm:$0xff] }
  0x47   :  { %v103_v54 = vrot.slane %v1785_v51, 1  ;;  %v1823_v40 = vadd.f32 %v193_v49, %v191_v39  ;;  %v214_v28 = vmul.f32 %v1810_v27, %v1810_v27  ;;  %v334_v8 = vmul.f32 %v1814_v41, %v1814_v41  ;;  %2828 = vst [vmem:[#allocation37_spill] sm:$0xff] %v1832_v43  ;;  %2829 = vst [vmem:[#allocation38_spill] sm:$0xff] %v1834_v9 }
  0x48   :  { %v127_v42 = vrot.slane %v1801_v37, 1  ;;  %v272_v19 = vmax.f32 %v271_v2, 1e-24  ;;  %v292_v16 = vrot.slane %v291_v21, 2  ;;  %v313_v15 = vadd.f32 %v312_v30, %v310_v10  ;;  %2830 = vst [vmem:[#allocation39_spill] sm:$0xff] %v1839_v44  ;;  %v1843_v30 = vld [vmem:[#allocation5 + $0xb0] sm:$0xff] }
  0x49   :  { %1459 = vrsqrt.f32 %v57_v29  ;;  %v216_v39 = vadd.f32 %v213_v31, %v1767_v50  ;;  %v336_v49 = vadd.f32 %v335_v22, %v333_v20  ;;  %v355_v34 = vmul.f32 %v1820_v36, %v1820_v36  ;;  %2831 = vst [vmem:[#allocation40_spill] sm:$0xff] %v1843_v30  ;;  %v1856_v36 = vld [vmem:[#allocation5 + $0xb8] sm:$0xff] }
  0x4a   :  { %1461 = vrsqrt.f32 %v248_v32  ;;  %v293_v61 = vadd.f32 %v292_v16, %v291_v21  ;;  %v314_v63 = vrot.slane %v313_v15, 4  ;;  %v356_v2 = vmul.f32 %v1829_v57, %v1829_v57  ;;  %v1851_v21 = vld [vmem:[#allocation5 + $0xd0] sm:$0xff] }
  0x4b   :  { %1463 = vrsqrt.f32 %v272_v19  ;;  %v337_v10 = vadd.f32 %v336_v49, %v334_v8  ;;  %v379_v29 = vmul.f32 %v1832_v43, %v1832_v43  ;;  %v380_v50 = vmul.f32 %v1834_v9, %v1834_v9 }
  0x4c   :  { %v150_v31 = vadd.f32 %v149_v45, %v1773_v56  ;;  %v173_v20 = vrot.slane %v1806_v60, 2  ;;  %v294_v22 = vrot.slane %v293_v61, 1  ;;  %v315_v32 = vadd.f32 %v314_v63, %v313_v15 }
  0x4d   :  { %v104_v16 = vadd.f32 %v103_v54, %v1785_v51  ;;  %v215_v8 = vmul.f32 %v1839_v44, %v1839_v44  ;;  %v217_v19 = vadd.f32 %v216_v39, %v214_v28  ;;  %v338_v49 = vrot.slane %v337_v10, 4 }
  0x4e   :  { %v295_v57 = vadd.f32 %v294_v22, %v293_v61  ;;  %v316_v43 = vrot.slane %v315_v32, 2  ;;  %v357_v56 = vmul.f32 %v1843_v30, %v1843_v30  ;;  %v359_v45 = vadd.f32 %v356_v2, %v355_v34  ;;  %v1864_v61 = vld [vmem:[#allocation5 + $0xd8] sm:$0xff] }
  0x4f   :  { %v81_v9 = vmax.f32 %v1818_v38, 1e-24  ;;  %v195_v15 = vrot.slane %v1823_v40, 4  ;;  %v381_v51 = vmul.f32 %v1851_v21, %v1851_v21  ;;  %v383_v54 = vadd.f32 %v380_v50, %v379_v29  ;;  %v1876_v50 = vld [vmem:[#allocation5 + $0xe8] sm:$0xff] }
  0x50   :  { %v151_v63 = vrot.slane %v150_v31, 1  ;;  %v296_v44 = vmax.f32 %v295_v57, 1e-24  ;;  %v317_v28 = vadd.f32 %v316_v43, %v315_v32  ;;  %v339_v39 = vadd.f32 %v338_v49, %v337_v10  ;;  %v1874_v10 = vld [vmem:[#allocation5 + $0xe0] sm:$0xff]  ;;  %2833 = vst [vmem:[#allocation42_spill] sm:$0xff] %v1876_v50 }
  0x51   :  { %v105_v22 = vmax.f32 %v104_v16, 1e-24  ;;  %v174_v27 = vadd.f32 %v173_v20, %v1806_v60  ;;  %v218_v41 = vadd.f32 %v217_v19, %v215_v8  ;;  %v358_v34 = vmul.f32 %v1856_v36, %v1856_v36  ;;  %2832 = vst [vmem:[#allocation41_spill] sm:$0xff] %v1874_v10 }
  0x52   :  { %1465 = vrsqrt.f32 %v296_v44  ;;  %v318_v38 = vrot.slane %v317_v28, 1  ;;  %v340_v2 = vrot.slane %v339_v39, 2  ;;  %v360_v30 = vadd.f32 %v359_v45, %v357_v56 }
  0x53   :  { %v1460_v55 = vpop.eup %1459  ;;  %v1870_v29 = vadd.f32 %v127_v42, %v1801_v37  ;;  %v382_v57 = vmul.f32 %v1864_v61, %v1864_v61  ;;  %v384_v43 = vadd.f32 %v383_v54, %v381_v51  ;;  %1467 = vrsqrt.f32 %v81_v9  ;;  %v1897_v51 = vld [vmem:[#allocation5 + $0xf0] sm:$0xff] }
  0x54   :  { %v1462_v60 = vpop.eup %1461  ;;  %v196_v20 = vadd.f32 %v195_v15, %v1823_v40  ;;  %v319_v44 = vadd.f32 %v318_v38, %v317_v28  ;;  %v341_v32 = vadd.f32 %v340_v2, %v339_v39  ;;  %1469 = vrsqrt.f32 %v105_v22  ;;  %2834 = vst [vmem:[#allocation43_spill] sm:$0xff] %v1897_v51  ;;  %v1916_v2 = vld [vmem:[#allocation5 + $0xf8] sm:$0xff] }
  0x55   :  { %v1464_v16 = vpop.eup %1463  ;;  %v1879_v8 = vadd.f32 %v151_v63, %v150_v31  ;;  %v175_v37 = vrot.slane %v174_v27, 1  ;;  %v219_v42 = vrot.slane %v218_v41, 4  ;;  %v1882_v19 = vmul.f32 %v1460_v55, %v1607_v0  ;;  %2837 = vst [vmem:[#allocation46_spill] sm:$0xff] %v1916_v2 }
  0x56   :  { %v361_v49 = vadd.f32 %v360_v30, %v358_v34  ;;  %v403_v56 = vmul.f32 %v1874_v10, %v1874_v10  ;;  %v404_v9 = vmul.f32 %v1876_v50, %v1876_v50  ;;  %v1889_v40 = vmul.f32 %v1460_v55, %v1609_v1  ;;  %v2892_v10 = vld [vmem:[#allocation39_spill] sm:$0xff] }
  0x57   :  { %v1892_v45 = vmul.f32 %v1462_v60, %v1683_v47  ;;  %v1895_v31 = vmul.f32 %v1462_v60, %v1689_v52  ;;  %v385_v15 = vadd.f32 %v384_v43, %v382_v57  ;;  %v1900_v0 = vmul.f32 %v1464_v16, %v1709_v3 }
  0x58   :  { %v1903_v30 = vmul.f32 %v1464_v16, %v1711_v7  ;;  %v320_v54 = vmax.f32 %v319_v44, 1e-24  ;;  %v342_v63 = vrot.slane %v341_v32, 1  ;;  %v1906_v1 = vmul.f32 %v1460_v55, %v1619_v6 }
  0x59   :  { %2835 = vst [vmem:[#allocation44_spill] sm:$0xff] %v1900_v0  ;;  %v176_v28 = vadd.f32 %v175_v37, %v174_v27  ;;  %v197_v47 = vrot.slane %v196_v20, 2  ;;  %v220_v39 = vadd.f32 %v219_v42, %v218_v41  ;;  %v1909_v52 = vmul.f32 %v1462_v60, %v1699_v58 }
  0x5a   :  { %2836 = vst [vmem:[#allocation45_spill] sm:$0xff] %v1903_v30  ;;  %v362_v22 = vrot.slane %v361_v49, 4  ;;  %v405_v34 = vmul.f32 %v1897_v51, %v1897_v51  ;;  %v407_v3 = vadd.f32 %v404_v9, %v403_v56  ;;  %v1914_v38 = vmul.f32 %v1464_v16, %v1717_v18 }
  0x5b   :  { %v386_v7 = vrot.slane %v385_v15, 4  ;;  %v422_v6 = vmul.f32 %v1892_v45, %v1882_v19  ;;  %v423_v27 = vmul.f32 %v1895_v31, %v1889_v40  ;;  %1471 = vrsqrt.f32 %v320_v54 }
  0x5c   :  { %v1466_v41 = vpop.eup %1465  ;;  %v343_v58 = vadd.f32 %v342_v63, %v341_v32  ;;  %v438_v57 = vmul.f32 %v1900_v0, %v1882_v19  ;;  %v439_v43 = vmul.f32 %v1903_v30, %v1889_v40  ;;  %v1927_v18 = vmul.f32 %v1460_v55, %v1633_v14 }
  0x5d   :  { %v198_v44 = vadd.f32 %v197_v47, %v196_v20  ;;  %v1930_v37 = vmul.f32 %v1466_v41, %v1745_v17  ;;  %v1933_v42 = vmul.f32 %v1466_v41, %v1747_v25  ;;  %v1468_v56 = vpop.eup %1467  ;;  %v221_v9 = vrot.slane %v220_v39, 2 }
  0x5e   :  { %v1936_v32 = vmul.f32 %v1462_v60, %v1701_v59  ;;  %v363_v54 = vadd.f32 %v362_v22, %v361_v49  ;;  %v406_v63 = vmul.f32 %v1916_v2, %v1916_v2  ;;  %v1940_v51 = vpop.eup %1469  ;;  %v1943_v14 = vmul.f32 %v1464_v16, %v1723_v26 }
  0x5f   :  { %2838 = vst [vmem:[#allocation47_spill] sm:$0xff] %v1930_v37  ;;  %2839 = vst [vmem:[#allocation48_spill] sm:$0xff] %v1933_v42  ;;  %v387_v55 = vadd.f32 %v386_v7, %v385_v15  ;;  %v408_v17 = vadd.f32 %v407_v3, %v405_v34  ;;  %v424_v25 = vmul.f32 %v1909_v52, %v1906_v1  ;;  %v344_v20 = vmax.f32 %v343_v58, 1e-24 }
  0x60   :  { %2840 = vst [vmem:[#allocation49_spill] sm:$0xff] %v1943_v14  ;;  %v426_v47 = vadd.f32 %v423_v27, %v422_v6  ;;  %v440_v59 = vmul.f32 %v1914_v38, %v1906_v1  ;;  %v442_v60 = vadd.f32 %v439_v43, %v438_v57  ;;  %v129_v49 = vmax.f32 %v1870_v29, 1e-24 }
  0x61   :  { %v1951_v22 = vmul.f32 %v1466_v41, %v1753_v33  ;;  %v454_v26 = vmul.f32 %v1930_v37, %v1882_v19  ;;  %v455_v16 = vmul.f32 %v1933_v42, %v1889_v40  ;;  %v153_v15 = vmax.f32 %v1879_v8, 1e-24 }
  0x62   :  { %v177_v34 = vmax.f32 %v176_v28, 1e-24  ;;  %v222_v3 = vadd.f32 %v221_v9, %v220_v39  ;;  %v364_v7 = vrot.slane %v363_v54, 2  ;;  %v199_v6 = vrot.slane %v198_v44, 1 }
  0x63   :  { %2841 = vst [vmem:[#allocation50_spill] sm:$0xff] %v1951_v22  ;;  %v388_v27 = vrot.slane %v387_v55, 2  ;;  %v409_v58 = vadd.f32 %v408_v17, %v406_v63  ;;  %v425_v29 = vmul.f32 %v1936_v32, %v1927_v18  ;;  %1473 = vrsqrt.f32 %v344_v20 }
  0x64   :  { %v427_v33 = vadd.f32 %v426_v47, %v424_v25  ;;  %v441_v57 = vmul.f32 %v1943_v14, %v1927_v18  ;;  %v443_v43 = vadd.f32 %v442_v60, %v440_v59  ;;  %1475 = vrsqrt.f32 %v129_v49 }
  0x65   :  { %v1963_v2 = vmul.f32 %v1466_v41, %v1763_v48  ;;  %v456_v8 = vmul.f32 %v1951_v22, %v1906_v1  ;;  %v458_v28 = vadd.f32 %v455_v16, %v454_v26  ;;  %v1472_v39 = vpop.eup %1471  ;;  %v223_v9 = vrot.slane %v222_v3, 1 }
  0x66   :  { %v365_v63 = vadd.f32 %v364_v7, %v363_v54  ;;  %1477 = vrsqrt.f32 %v153_v15  ;;  %v200_v17 = vadd.f32 %v199_v6, %v198_v44  ;;  %v389_v50 = vadd.f32 %v388_v27, %v387_v55 }
  0x67   :  { %2842 = vst [vmem:[#allocation51_spill] sm:$0xff] %v1963_v2  ;;  %v410_v20 = vrot.slane %v409_v58, 4  ;;  %1479 = vrsqrt.f32 %v177_v34  ;;  %v428_v25 = vadd.f32 %v427_v33, %v425_v29  ;;  %v444_v47 = vadd.f32 %v443_v43, %v441_v57  ;;  %v2846_v43 = vld [vmem:[#allocation31_spill] sm:$0xff] }
  0x68   :  { %v1968_v59 = vmul.f32 %v1472_v39, %v1771_v46  ;;  %v1971_v48 = vmul.f32 %v1472_v39, %v1779_v53  ;;  %v457_v41 = vmul.f32 %v1963_v2, %v1927_v18  ;;  %v459_v60 = vadd.f32 %v458_v28, %v456_v8 }
  0x69   :  { %v1976_v49 = vmul.f32 %v1468_v56, %v1615_v4  ;;  %v1979_v44 = vmul.f32 %v1468_v56, %v1617_v5  ;;  %v224_v54 = vadd.f32 %v223_v9, %v222_v3  ;;  %v366_v55 = vrot.slane %v365_v63, 1 }
  0x6a   :  { %2843 = vst [vmem:[#allocation52_spill] sm:$0xff] %v1968_v59  ;;  %2844 = vst [vmem:[#allocation53_spill] sm:$0xff] %v1971_v48  ;;  %v1982_v26 = vmul.f32 %v1468_v56, %v1627_v11  ;;  %v201_v46 = vmax.f32 %v200_v17, 1e-24  ;;  %v390_v16 = vrot.slane %v389_v50, 1  ;;  %v411_v15 = vadd.f32 %v410_v20, %v409_v58  ;;  %v2848_v17 = vld [vmem:[#allocation29_spill] sm:$0xff] }
  0x6b   :  { %v1985_v53 = vmul.f32 %v1468_v56, %v1647_v23  ;;  %v1988_v34 = vmul.f32 %v1472_v39, %v1781_v62  ;;  %v429_v7 = vrot.slane %v428_v25, 4  ;;  %v445_v4 = vrot.slane %v444_v47, 4 }
  0x6c   :  { %v1992_v5 = vmul.f32 %v1940_v51, %v1629_v12  ;;  %v460_v3 = vadd.f32 %v459_v60, %v457_v41  ;;  %v470_v11 = vmul.f32 %v1968_v59, %v1882_v19  ;;  %v471_v6 = vmul.f32 %v1971_v48, %v1889_v40 }
  0x6d   :  { %2845 = vst [vmem:[#allocation54_spill] sm:$0xff] %v1988_v34  ;;  %v1474_v27 = vpop.eup %1473  ;;  %v2000_v23 = vmul.f32 %v1940_v51, %v1631_v13  ;;  %v2004_v62 = vmul.f32 %v1940_v51, %v1649_v24  ;;  %v225_v56 = vmax.f32 %v224_v54, 1e-24  ;;  %v367_v58 = vadd.f32 %v366_v55, %v365_v63  ;;  %v2849_v63 = vld [vmem:[#allocation30_spill] sm:$0xff] }
  0x6e   :  { %v1476_v12 = vpop.eup %1475  ;;  %v2008_v29 = vmul.f32 %v1940_v51, %v1665_v35  ;;  %1481 = vrsqrt.f32 %v201_v46  ;;  %v391_v33 = vadd.f32 %v390_v16, %v389_v50  ;;  %v412_v57 = vrot.slane %v411_v15, 2  ;;  %v2850_v50 = vld [vmem:[#allocation11_spill] sm:$0xff]  ;;  %v2856_v16 = vld [vmem:[#allocation16_spill] sm:$0xff] }
  0x6f   :  { %v2011_v8 = vmul.f32 %v1472_v39, %v2846_v43  ;;  %v430_v28 = vadd.f32 %v429_v7, %v428_v25  ;;  %v446_v13 = vadd.f32 %v445_v4, %v444_v47  ;;  %v472_v9 = vmul.f32 %v1988_v34, %v1906_v1  ;;  %v2852_v39 = vld [vmem:[#allocation12_spill] sm:$0xff]  ;;  %v2854_v47 = vld [vmem:[#allocation13_spill] sm:$0xff] }
  0x70   :  { %v1478_v24 = vpop.eup %1477  ;;  %v2016_v20 = vmul.f32 %v1474_v27, %v2848_v17  ;;  %v2019_v41 = vmul.f32 %v1474_v27, %v2849_v63  ;;  %v461_v35 = vrot.slane %v460_v3, 4  ;;  %v474_v51 = vadd.f32 %v471_v6, %v470_v11  ;;  %v2858_v17 = vld [vmem:[#allocation32_spill] sm:$0xff] }
  0x71   :  { %2847 = vst [vmem:[#allocation31_spill] sm:$0xff] %v2011_v8  ;;  %v1480_v60 = vpop.eup %1479  ;;  %v2022_v54 = vmul.f32 %v1476_v12, %v2850_v50  ;;  %v2025_v55 = vmul.f32 %v1476_v12, %v2852_v39  ;;  %1483 = vrsqrt.f32 %v225_v56  ;;  %v368_v25 = vmax.f32 %v367_v58, 1e-24 }
  0x72   :  { %v2028_v46 = vmul.f32 %v1476_v12, %v2854_v47  ;;  %v2031_v7 = vmul.f32 %v1476_v12, %v2856_v16  ;;  %v392_v4 = vmax.f32 %v391_v33, 1e-24  ;;  %v413_v43 = vadd.f32 %v412_v57, %v411_v15  ;;  %v2860_v12 = vld [vmem:[#allocation14_spill] sm:$0xff]  ;;  %v2862_v57 = vld [vmem:[#allocation15_spill] sm:$0xff] }
  0x73   :  { %2851 = vst [vmem:[#allocation29_spill] sm:$0xff] %v2022_v54  ;;  %2853 = vst [vmem:[#allocation30_spill] sm:$0xff] %v2025_v55  ;;  %v2034_v63 = vmul.f32 %v1474_v27, %v2858_v17  ;;  %v431_v11 = vrot.slane %v430_v28, 2  ;;  %v447_v6 = vrot.slane %v446_v13, 2  ;;  %v473_v50 = vmul.f32 %v2011_v8, %v1927_v18 }
  0x74   :  { %2855 = vst [vmem:[#allocation11_spill] sm:$0xff] %v2028_v46  ;;  %2857 = vst [vmem:[#allocation12_spill] sm:$0xff] %v2031_v7  ;;  %v462_v39 = vadd.f32 %v461_v35, %v460_v3  ;;  %v475_v55 = vadd.f32 %v474_v51, %v472_v9  ;;  %v486_v56 = vmul.f32 %v2016_v20, %v1882_v19  ;;  %1485 = vrsqrt.f32 %v368_v25  ;;  %v2864_v3 = vld [vmem:[#allocation17_spill] sm:$0xff]  ;;  %v2866_v19 = vld [vmem:[#allocation20_spill] sm:$0xff] }
  0x75   :  { %2859 = vst [vmem:[#allocation13_spill] sm:$0xff] %v2034_v63  ;;  %v487_v58 = vmul.f32 %v2019_v41, %v1889_v40  ;;  %v2043_v47 = vmul.f32 %v1478_v24, %v2860_v12  ;;  %v502_v15 = vmul.f32 %v1892_v45, %v1976_v49  ;;  %v503_v33 = vmul.f32 %v1895_v31, %v1979_v44  ;;  %v2868_v40 = vld [vmem:[#allocation34_spill] sm:$0xff] }
  0x76   :  { %v2050_v16 = vmul.f32 %v1478_v24, %v2862_v57  ;;  %v2053_v9 = vmul.f32 %v1478_v24, %v2864_v3  ;;  %v2056_v35 = vmul.f32 %v1478_v24, %v2866_v19  ;;  %1487 = vrsqrt.f32 %v392_v4  ;;  %v2870_v4 = vld [vmem:[#allocation18_spill] sm:$0xff] }
  0x77   :  { %2861 = vst [vmem:[#allocation16_spill] sm:$0xff] %v2043_v47  ;;  %v2059_v51 = vmul.f32 %v1474_v27, %v2868_v40  ;;  %v414_v25 = vrot.slane %v413_v43, 1  ;;  %v432_v17 = vadd.f32 %v431_v11, %v430_v28  ;;  %v448_v12 = vadd.f32 %v447_v6, %v446_v13  ;;  %v2872_v13 = vld [vmem:[#allocation19_spill] sm:$0xff] }
  0x78   :  { %2863 = vst [vmem:[#allocation32_spill] sm:$0xff] %v2050_v16  ;;  %2865 = vst [vmem:[#allocation14_spill] sm:$0xff] %v2053_v9  ;;  %v1482_v47 = vpop.eup %1481  ;;  %v463_v7 = vrot.slane %v462_v39, 2  ;;  %v476_v46 = vadd.f32 %v475_v55, %v473_v50  ;;  %v488_v57 = vmul.f32 %v2034_v63, %v1906_v1  ;;  %v490_v16 = vadd.f32 %v487_v58, %v486_v56  ;;  %v2874_v55 = vld [vmem:[#allocation21_spill] sm:$0xff]  ;;  %v2876_v1 = vld [vmem:[#allocation22_spill] sm:$0xff] }
  0x79   :  { %2867 = vst [vmem:[#allocation15_spill] sm:$0xff] %v2056_v35  ;;  %2869 = vst [vmem:[#allocation17_spill] sm:$0xff] %v2059_v51  ;;  %v504_v3 = vmul.f32 %v1909_v52, %v1982_v26  ;;  %v506_v9 = vadd.f32 %v503_v33, %v502_v15  ;;  %v518_v24 = vmul.f32 %v1900_v0, %v1976_v49  ;;  %v2878_v58 = vld [vmem:[#allocation23_spill] sm:$0xff]  ;;  %v433_v19 = vrot.slane %v432_v17, 1 }
  0x7a   :  { %v519_v27 = vmul.f32 %v1903_v30, %v1979_v44  ;;  %v2070_v28 = vmul.f32 %v1480_v60, %v2870_v4  ;;  %v2073_v11 = vmul.f32 %v1480_v60, %v2872_v13  ;;  %v2076_v6 = vmul.f32 %v1480_v60, %v2874_v55 }
  0x7b   :  { %v2079_v50 = vmul.f32 %v1480_v60, %v2876_v1  ;;  %v1484_v56 = vpop.eup %1483  ;;  %v2082_v15 = vmul.f32 %v1482_v47, %v2878_v58  ;;  %v415_v33 = vadd.f32 %v414_v25, %v413_v43  ;;  %v449_v40 = vrot.slane %v448_v12, 1  ;;  %v2882_v43 = vld [vmem:[#allocation25_spill] sm:$0xff] }
  0x7c   :  { %2871 = vst [vmem:[#allocation20_spill] sm:$0xff] %v2070_v28  ;;  %2873 = vst [vmem:[#allocation34_spill] sm:$0xff] %v2073_v11  ;;  %v464_v35 = vadd.f32 %v463_v7, %v462_v39  ;;  %v477_v54 = vrot.slane %v476_v46, 4  ;;  %v489_v4 = vmul.f32 %v2059_v51, %v1927_v18  ;;  %v491_v13 = vadd.f32 %v490_v16, %v488_v57  ;;  %v2884_v7 = vld [vmem:[#allocation26_spill] sm:$0xff]  ;;  %v2888_v57 = vld [vmem:[#allocation28_spill] sm:$0xff] }
  0x7d   :  { %2875 = vst [vmem:[#allocation18_spill] sm:$0xff] %v2076_v6  ;;  %2877 = vst [vmem:[#allocation19_spill] sm:$0xff] %v2079_v50  ;;  %v505_v55 = vmul.f32 %v1936_v32, %v1985_v53  ;;  %v507_v6 = vadd.f32 %v506_v9, %v504_v3  ;;  %v520_v60 = vmul.f32 %v1914_v38, %v1982_v26  ;;  %v2880_v50 = vld [vmem:[#allocation24_spill] sm:$0xff]  ;;  %v2890_v9 = vld [vmem:[#allocation33_spill] sm:$0xff] }
  0x7e   :  { %2879 = vst [vmem:[#allocation21_spill] sm:$0xff] %v2082_v15  ;;  %v522_v1 = vadd.f32 %v519_v27, %v518_v24  ;;  %v2091_v58 = vmul.f32 %v1482_v47, %v2880_v50  ;;  %v2094_v25 = vmul.f32 %v1482_v47, %v2882_v43  ;;  %v2097_v39 = vmul.f32 %v1482_v47, %v2884_v7  ;;  %v2886_v15 = vld [vmem:[#allocation27_spill] sm:$0xff]  ;;  %v1486_v16 = vpop.eup %1485 }
  0x7f   :  { %v2100_v18 = vmul.f32 %v1484_v56, %v2886_v15  ;;  %v2103_v11 = vmul.f32 %v1484_v56, %v2888_v57  ;;  %v2106_v3 = vmul.f32 %v1484_v56, %v2890_v9  ;;  %v434_v24 = vadd.f32 %v433_v19, %v432_v17  ;;  %v2894_v57 = vld [vmem:[#allocation35_spill] sm:$0xff]  ;;  %v2895_v9 = vld [vmem:[#allocation36_spill] sm:$0xff] }
  0x80   :  { %2881 = vst [vmem:[#allocation22_spill] sm:$0xff] %v2091_v58  ;;  %2883 = vst [vmem:[#allocation23_spill] sm:$0xff] %v2094_v25  ;;  %v450_v27 = vadd.f32 %v449_v40, %v448_v12  ;;  %v1488_v50 = vpop.eup %1487  ;;  %v416_v58 = vmax.f32 %v415_v33, 1e-24  ;;  %v465_v28 = vrot.slane %v464_v35, 1  ;;  %v478_v43 = vadd.f32 %v477_v54, %v476_v46  ;;  %v2897_v46 = vld [vmem:[#allocation40_spill] sm:$0xff] }
  0x81   :  { %2885 = vst [vmem:[#allocation24_spill] sm:$0xff] %v2097_v39  ;;  %2887 = vst [vmem:[#allocation25_spill] sm:$0xff] %v2100_v18  ;;  %v492_v25 = vadd.f32 %v491_v13, %v489_v4  ;;  %v2109_v47 = vmul.f32 %v1484_v56, %v2892_v10  ;;  %v508_v7 = vadd.f32 %v507_v6, %v505_v55  ;;  %v1402_v6 = vclamps-f32 %v434_v24, 1.0 }
  0x82   :  { %2889 = vst [vmem:[#allocation26_spill] sm:$0xff] %v2103_v11  ;;  %2891 = vst [vmem:[#allocation27_spill] sm:$0xff] %v2106_v3  ;;  %v521_v15 = vmul.f32 %v1943_v14, %v1985_v53  ;;  %v523_v18 = vadd.f32 %v522_v1, %v520_v60  ;;  %v2114_v11 = vmul.f32 %v1486_v16, %v2894_v57  ;;  %v1403_v56 = vclamps-f32 %v450_v27, 1.0  ;;  %v2900_v1 = vld [vmem:[#allocation37_spill] sm:$0xff] }
  0x83   :  { %2893 = vst [vmem:[#allocation28_spill] sm:$0xff] %v2109_v47  ;;  %v2117_v3 = vmul.f32 %v1486_v16, %v2895_v9  ;;  %v534_v17 = vmul.f32 %v1930_v37, %v1976_v49  ;;  %v535_v54 = vmul.f32 %v1933_v42, %v1979_v44  ;;  %v2124_v10 = vmul.f32 %v1486_v16, %v2897_v46 }
  0x84   :  { %v2127_v12 = vmul.f32 %v1486_v16, %v1856_v36  ;;  %1489 = vrsqrt.f32 %v416_v58  ;;  %v2129_v33 = vadd.f32 %v465_v28, %v464_v35  ;;  %v479_v19 = vrot.slane %v478_v43, 2  ;;  %v2901_v36 = vld [vmem:[#allocation38_spill] sm:$0xff] }
  0x85   :  { %2896 = vst [vmem:[#allocation33_spill] sm:$0xff] %v2117_v3  ;;  %2898 = vst [vmem:[#allocation39_spill] sm:$0xff] %v2124_v10  ;;  %v493_v40 = vrot.slane %v492_v25, 4  ;;  %v509_v4 = vrot.slane %v508_v7, 4  ;;  %v524_v13 = vadd.f32 %v523_v18, %v521_v15  ;;  %v550_v55 = vmul.f32 %v1968_v59, %v1976_v49 }
  0x86   :  { %2899 = vst [vmem:[#allocation35_spill] sm:$0xff] %v2127_v12  ;;  %v551_v60 = vmul.f32 %v1971_v48, %v1979_v44  ;;  %v2136_v57 = vmul.f32 %v1488_v50, %v2900_v1  ;;  %v2139_v16 = vmul.f32 %v1488_v50, %v2901_v36  ;;  %v536_v35 = vmul.f32 %v1951_v22, %v1982_v26 }
  0x87   :  { %v538_v28 = vadd.f32 %v535_v54, %v534_v17  ;;  %v2144_v58 = vmul.f32 %v1488_v50, %v1851_v21  ;;  %v2147_v18 = vmul.f32 %v1488_v50, %v1864_v61  ;;  %v2149_v24 = vsub.f32 1.0, %v1402_v6 }
  0x88   :  { %v2151_v27 = vsub.f32 1.0, %v1403_v56  ;;  %v480_v9 = vadd.f32 %v479_v19, %v478_v43  ;;  %v494_v46 = vadd.f32 %v493_v40, %v492_v25  ;;  %v537_v1 = vmul.f32 %v1963_v2, %v1985_v53 }
  0x89   :  { %2902 = vst [vmem:[#allocation36_spill] sm:$0xff] %v2144_v58  ;;  %2903 = vst [vmem:[#allocation40_spill] sm:$0xff] %v2147_v18  ;;  %v510_v36 = vadd.f32 %v509_v4, %v508_v7  ;;  %v525_v47 = vrot.slane %v524_v13, 4  ;;  %v552_v21 = vmul.f32 %v1988_v34, %v1982_v26  ;;  %v554_v17 = vadd.f32 %v551_v60, %v550_v55 }
  0x8a   :  { %2904 = vst [vmem:[#allocation37_spill] sm:$0xff] %v2149_v24  ;;  %2905 = vst [vmem:[#allocation38_spill] sm:$0xff] %v2151_v27  ;;  %v539_v54 = vadd.f32 %v538_v28, %v536_v35  ;;  %v553_v61 = vmul.f32 %v2011_v8, %v1985_v53  ;;  %v566_v50 = vmul.f32 %v2016_v20, %v1976_v49  ;;  %v481_v55 = vrot.slane %v480_v9, 1 }
  0x8b   :  { %v567_v43 = vmul.f32 %v2019_v41, %v1979_v44  ;;  %v582_v25 = vmul.f32 %v2114_v11, %v1976_v49  ;;  %v583_v7 = vmul.f32 %v2117_v3, %v1979_v44  ;;  %v598_v6 = vmul.f32 %v1892_v45, %v1992_v5 }
  0x8c   :  { %v599_v56 = vmul.f32 %v1895_v31, %v2000_v23  ;;  %v614_v19 = vmul.f32 %v1900_v0, %v1992_v5  ;;  %v615_v40 = vmul.f32 %v1903_v30, %v2000_v23  ;;  %v630_v4 = vmul.f32 %v1930_v37, %v1992_v5 }
  0x8d   :  { %v631_v49 = vmul.f32 %v1933_v42, %v2000_v23  ;;  %v495_v44 = vrot.slane %v494_v46, 2  ;;  %v511_v60 = vrot.slane %v510_v36, 2  ;;  %v555_v35 = vadd.f32 %v554_v17, %v552_v21 }
  0x8e   :  { %v1490_v28 = vpop.eup %1489  ;;  %v568_v15 = vmul.f32 %v2034_v63, %v1982_v26  ;;  %v570_v27 = vadd.f32 %v567_v43, %v566_v50  ;;  %v646_v24 = vmul.f32 %v1968_v59, %v1992_v5  ;;  %v647_v39 = vmul.f32 %v1971_v48, %v2000_v23 }
  0x8f   :  { %v584_v37 = vmul.f32 %v2124_v10, %v1982_v26  ;;  %v586_v30 = vadd.f32 %v583_v7, %v582_v25  ;;  %v600_v42 = vmul.f32 %v1909_v52, %v2004_v62  ;;  %v602_v0 = vadd.f32 %v599_v56, %v598_v6 }
  0x90   :  { %v616_v21 = vmul.f32 %v1914_v38, %v2004_v62  ;;  %v618_v17 = vadd.f32 %v615_v40, %v614_v19  ;;  %v632_v50 = vmul.f32 %v1951_v22, %v2004_v62  ;;  %v634_v43 = vadd.f32 %v631_v49, %v630_v4 }
  0x91   :  { %v526_v59 = vadd.f32 %v525_v47, %v524_v13  ;;  %v540_v18 = vadd.f32 %v539_v54, %v537_v1  ;;  %v648_v48 = vmul.f32 %v1988_v34, %v2004_v62  ;;  %v650_v58 = vadd.f32 %v647_v39, %v646_v24 }
  0x92   :  { %v496_v26 = vadd.f32 %v495_v44, %v494_v46  ;;  %v556_v25 = vadd.f32 %v555_v35, %v553_v61  ;;  %v569_v7 = vmul.f32 %v2059_v51, %v1985_v53  ;;  %v571_v6 = vadd.f32 %v570_v27, %v568_v15 }
  0x93   :  { %v585_v56 = vmul.f32 %v2127_v12, %v1985_v53  ;;  %v587_v19 = vadd.f32 %v586_v30, %v584_v37  ;;  %v601_v40 = vmul.f32 %v1936_v32, %v2008_v29  ;;  %v603_v4 = vadd.f32 %v602_v0, %v600_v42  ;;  %v2906_v37 = vld [vmem:[#allocation41_spill] sm:$0xff]  ;;  %v2908_v42 = vld [vmem:[#allocation42_spill] sm:$0xff] }
  0x94   :  { %v617_v47 = vmul.f32 %v1943_v14, %v2008_v29  ;;  %v619_v13 = vadd.f32 %v618_v17, %v616_v21  ;;  %v633_v39 = vmul.f32 %v1963_v2, %v2008_v29  ;;  %v635_v24 = vadd.f32 %v634_v43, %v632_v50 }
  0x95   :  { %v649_v46 = vmul.f32 %v2011_v8, %v2008_v29  ;;  %v651_v27 = vadd.f32 %v650_v58, %v648_v48  ;;  %v662_v53 = vmul.f32 %v2016_v20, %v1992_v5  ;;  %v663_v30 = vmul.f32 %v2019_v41, %v2000_v23 }
  0x96   :  { %v2213_v0 = vmul.f32 %v1490_v28, %v2906_v37  ;;  %v2216_v15 = vmul.f32 %v1490_v28, %v2908_v42  ;;  %v482_v1 = vadd.f32 %v481_v55, %v480_v9  ;;  %v512_v54 = vadd.f32 %v511_v60, %v510_v36  ;;  %v2912_v42 = vld [vmem:[#allocation46_spill] sm:$0xff] }
  0x97   :  { %v497_v61 = vrot.slane %v496_v26, 1  ;;  %v527_v49 = vrot.slane %v526_v59, 2  ;;  %v541_v44 = vrot.slane %v540_v18, 4  ;;  %v572_v35 = vadd.f32 %v571_v6, %v569_v7 }
  0x98   :  { %2907 = vst [vmem:[#allocation41_spill] sm:$0xff] %v2213_v0  ;;  %2909 = vst [vmem:[#allocation42_spill] sm:$0xff] %v2216_v15  ;;  %v588_v21 = vadd.f32 %v587_v19, %v585_v56  ;;  %v604_v48 = vadd.f32 %v603_v4, %v601_v40  ;;  %v620_v58 = vadd.f32 %v619_v13, %v617_v47  ;;  %v557_v50 = vrot.slane %v556_v25, 4  ;;  %v2910_v0 = vld [vmem:[#allocation43_spill] sm:$0xff] }
  0x99   :  { %v636_v17 = vadd.f32 %v635_v24, %v633_v39  ;;  %v652_v43 = vadd.f32 %v651_v27, %v649_v46  ;;  %v664_v8 = vmul.f32 %v2034_v63, %v2004_v62  ;;  %v666_v37 = vadd.f32 %v663_v30, %v662_v53 }
  0x9a   :  { %v2221_v34 = vmul.f32 %v1490_v28, %v2910_v0  ;;  %v2224_v9 = vmul.f32 %v1490_v28, %v2912_v42  ;;  %v1405_v36 = vclamps-f32 %v482_v1, 1.0  ;;  %v513_v55 = vrot.slane %v512_v54, 1 }
  0x9b   :  { %v498_v60 = vadd.f32 %v497_v61, %v496_v26  ;;  %v528_v7 = vadd.f32 %v527_v49, %v526_v59  ;;  %v542_v6 = vadd.f32 %v541_v44, %v540_v18  ;;  %v573_v56 = vrot.slane %v572_v35, 4 }
  0x9c   :  { %2911 = vst [vmem:[#allocation43_spill] sm:$0xff] %v2221_v34  ;;  %2913 = vst [vmem:[#allocation46_spill] sm:$0xff] %v2224_v9  ;;  %v589_v19 = vrot.slane %v588_v21, 4  ;;  %v605_v40 = vrot.slane %v604_v48, 4  ;;  %v621_v4 = vrot.slane %v620_v58, 4  ;;  %v637_v47 = vrot.slane %v636_v17, 4 }
  0x9d   :  { %v558_v13 = vadd.f32 %v557_v50, %v556_v25  ;;  %v653_v39 = vrot.slane %v652_v43, 4  ;;  %v665_v24 = vmul.f32 %v2059_v51, %v2008_v29  ;;  %v667_v46 = vadd.f32 %v666_v37, %v664_v8 }
  0x9e   :  { %v2914_v27 = vclamps-f32 %v2129_v33, 1.0  ;;  %v2232_v53 = vsub.f32 1.0, %v1405_v36  ;;  %v678_v59 = vmul.f32 %v2114_v11, %v1992_v5  ;;  %v679_v18 = vmul.f32 %v2117_v3, %v2000_v23 }
  0x9f   :  { %v2238_v26 = vadd.f32 %v513_v55, %v512_v54  ;;  %v529_v25 = vrot.slane %v528_v7, 1  ;;  %v543_v30 = vrot.slane %v542_v6, 2  ;;  %v574_v0 = vadd.f32 %v573_v56, %v572_v35 }
  0xa0   :  { %v2230_v28 = vsub.f32 1.0, %v2914_v27  ;;  %2916 = vst [vmem:[#allocation56_spill] sm:$0xff] %v2232_v53  ;;  %v590_v1 = vadd.f32 %v589_v19, %v588_v21  ;;  %v606_v61 = vadd.f32 %v605_v40, %v604_v48  ;;  %v622_v8 = vadd.f32 %v621_v4, %v620_v58  ;;  %v2917_v48 = vld [vmem:[#allocation29_spill] sm:$0xff]  ;;  %v2920_v53 = vld [vmem:[#allocation11_spill] sm:$0xff] }
  0xa1   :  { %v638_v49 = vadd.f32 %v637_v47, %v636_v17  ;;  %v1406_v33 = vclamps-f32 %v498_v60, 1.0  ;;  %v559_v44 = vrot.slane %v558_v13, 2  ;;  %v654_v50 = vadd.f32 %v653_v39, %v652_v43  ;;  %v2918_v17 = vld [vmem:[#allocation30_spill] sm:$0xff] }
  0xa2   :  { %2915 = vst [vmem:[#allocation55_spill] sm:$0xff] %v2230_v28  ;;  %v668_v37 = vadd.f32 %v667_v46, %v665_v24  ;;  %v680_v42 = vmul.f32 %v2124_v10, %v2004_v62  ;;  %v682_v36 = vadd.f32 %v679_v18, %v678_v59  ;;  %v694_v27 = vmul.f32 %v2136_v57, %v1992_v5  ;;  %v2919_v24 = vld [vmem:[#allocation36_spill] sm:$0xff] }
  0xa3   :  { %v695_v54 = vmul.f32 %v2139_v16, %v2000_v23  ;;  %v1407_v35 = vclamps-f32 %v2238_v26, 1.0  ;;  %v575_v21 = vrot.slane %v574_v0, 2  ;;  %v710_v58 = vmul.f32 %v1892_v45, %v2917_v48 }
  0xa4   :  { %v711_v43 = vmul.f32 %v1895_v31, %v2918_v17  ;;  %v591_v55 = vrot.slane %v590_v1, 2  ;;  %v607_v60 = vrot.slane %v606_v61, 2  ;;  %v623_v56 = vrot.slane %v622_v8, 2 }
  0xa5   :  { %v639_v19 = vrot.slane %v638_v49, 2  ;;  %v544_v40 = vadd.f32 %v543_v30, %v542_v6  ;;  %v560_v4 = vadd.f32 %v559_v44, %v558_v13  ;;  %v655_v47 = vrot.slane %v654_v50, 2 }
  0xa6   :  { %v669_v5 = vrot.slane %v668_v37, 4  ;;  %v681_v23 = vmul.f32 %v2127_v12, %v2008_v29  ;;  %v683_v39 = vadd.f32 %v682_v36, %v680_v42  ;;  %v696_v46 = vmul.f32 %v2919_v24, %v2004_v62  ;;  %v2922_v62 = vld [vmem:[#allocation40_spill] sm:$0xff] }
  0xa7   :  { %v698_v59 = vadd.f32 %v695_v54, %v694_v27  ;;  %v530_v18 = vadd.f32 %v529_v25, %v528_v7  ;;  %v576_v26 = vadd.f32 %v575_v21, %v574_v0  ;;  %v712_v28 = vmul.f32 %v1909_v52, %v2920_v53  ;;  %v2923_v27 = vld [vmem:[#allocation12_spill] sm:$0xff] }
  0xa8   :  { %v714_v9 = vadd.f32 %v711_v43, %v710_v58  ;;  %v592_v51 = vadd.f32 %v591_v55, %v590_v1  ;;  %v608_v34 = vadd.f32 %v607_v60, %v606_v61  ;;  %v624_v6 = vadd.f32 %v623_v56, %v622_v8  ;;  %v2924_v60 = vld [vmem:[#allocation44_spill] sm:$0xff]  ;;  %v2925_v56 = vld [vmem:[#allocation45_spill] sm:$0xff] }
  0xa9   :  { %v640_v13 = vadd.f32 %v639_v19, %v638_v49  ;;  %v545_v30 = vrot.slane %v544_v40, 1  ;;  %v561_v44 = vrot.slane %v560_v4, 1  ;;  %v656_v10 = vadd.f32 %v655_v47, %v654_v50 }
  0xaa   :  { %v670_v63 = vadd.f32 %v669_v5, %v668_v37  ;;  %v2257_v12 = vsub.f32 1.0, %v1406_v33  ;;  %v684_v42 = vadd.f32 %v683_v39, %v681_v23  ;;  %v697_v36 = vmul.f32 %v2922_v62, %v2008_v29 }
  0xab   :  { %v699_v7 = vadd.f32 %v698_v59, %v696_v46  ;;  %v1408_v25 = vclamps-f32 %v530_v18, 1.0  ;;  %v577_v0 = vrot.slane %v576_v26, 1  ;;  %v713_v54 = vmul.f32 %v1936_v32, %v2923_v27 }
  0xac   :  { %2921 = vst [vmem:[#allocation29_spill] sm:$0xff] %v2257_v12  ;;  %v715_v1 = vadd.f32 %v714_v9, %v712_v28  ;;  %v593_v61 = vrot.slane %v592_v51, 1  ;;  %v609_v8 = vrot.slane %v608_v34, 1  ;;  %v625_v49 = vrot.slane %v624_v6, 1 }
  0xad   :  { %v641_v21 = vrot.slane %v640_v13, 1  ;;  %v546_v58 = vadd.f32 %v545_v30, %v544_v40  ;;  %v562_v50 = vadd.f32 %v561_v44, %v560_v4  ;;  %v657_v37 = vrot.slane %v656_v10, 1 }
  0xae   :  { %v671_v33 = vrot.slane %v670_v63, 2  ;;  %v685_v43 = vrot.slane %v684_v42, 4  ;;  %v700_v55 = vadd.f32 %v699_v7, %v697_v36  ;;  %v726_v29 = vmul.f32 %v2924_v60, %v2917_v48 }
  0xaf   :  { %v727_v19 = vmul.f32 %v2925_v56, %v2918_v17  ;;  %v2267_v47 = vsub.f32 1.0, %v1407_v35  ;;  %v2269_v5 = vsub.f32 1.0, %v1408_v25  ;;  %v578_v9 = vadd.f32 %v577_v0, %v576_v26  ;;  %v2928_v25 = vld [vmem:[#allocation47_spill] sm:$0xff] }
  0xb0   :  { %v716_v28 = vadd.f32 %v715_v1, %v713_v54  ;;  %v594_v23 = vadd.f32 %v593_v61, %v592_v51  ;;  %v610_v39 = vadd.f32 %v609_v8, %v608_v34  ;;  %v626_v40 = vadd.f32 %v625_v49, %v624_v6  ;;  %v2929_v51 = vld [vmem:[#allocation48_spill] sm:$0xff] }
  0xb1   :  { %2926 = vst [vmem:[#allocation30_spill] sm:$0xff] %v2267_v47  ;;  %2927 = vst [vmem:[#allocation36_spill] sm:$0xff] %v2269_v5  ;;  %v642_v4 = vadd.f32 %v641_v21, %v640_v13  ;;  %v1409_v46 = vclamps-f32 %v546_v58, 1.0  ;;  %v1410_v59 = vclamps-f32 %v562_v50, 1.0  ;;  %v658_v18 = vadd.f32 %v657_v37, %v656_v10  ;;  %v2947_v5 = vld [vmem:[#allocation43_spill] sm:$0xff] }
  0xb2   :  { %v672_v30 = vadd.f32 %v671_v33, %v670_v63  ;;  %v686_v44 = vadd.f32 %v685_v43, %v684_v42  ;;  %v701_v36 = vrot.slane %v700_v55, 4  ;;  %v728_v7 = vmul.f32 %v1914_v38, %v2920_v53 }
  0xb3   :  { %v730_v12 = vadd.f32 %v727_v19, %v726_v29  ;;  %v1411_v35 = vclamps-f32 %v578_v9, 1.0  ;;  %v717_v47 = vrot.slane %v716_v28, 4  ;;  %v742_v26 = vmul.f32 %v2928_v25, %v2917_v48 }
  0xb4   :  { %v743_v34 = vmul.f32 %v2929_v51, %v2918_v17  ;;  %v1412_v6 = vclamps-f32 %v594_v23, 1.0  ;;  %v1413_v13 = vclamps-f32 %v610_v39, 1.0  ;;  %v1414_v0 = vclamps-f32 %v626_v40, 1.0 }
  0xb5   :  { %v1415_v54 = vclamps-f32 %v642_v4, 1.0  ;;  %v2277_v10 = vsub.f32 1.0, %v1409_v46  ;;  %v2279_v63 = vsub.f32 1.0, %v1410_v59  ;;  %v1416_v42 = vclamps-f32 %v658_v18, 1.0 }
  0xb6   :  { %v673_v1 = vrot.slane %v672_v30, 1  ;;  %v687_v61 = vrot.slane %v686_v44, 2  ;;  %v2281_v8 = vadd.f32 %v701_v36, %v700_v55  ;;  %v729_v49 = vmul.f32 %v1943_v14, %v2923_v27 }
  0xb7   :  { %2930 = vst [vmem:[#allocation11_spill] sm:$0xff] %v2277_v10  ;;  %2931 = vst [vmem:[#allocation40_spill] sm:$0xff] %v2279_v63  ;;  %v731_v21 = vadd.f32 %v730_v12, %v728_v7  ;;  %v2285_v58 = vsub.f32 1.0, %v1411_v35  ;;  %v2287_v50 = vadd.f32 %v717_v47, %v716_v28  ;;  %v744_v37 = vmul.f32 %v1951_v22, %v2920_v53  ;;  %v2938_v12 = vld [vmem:[#allocation52_spill] sm:$0xff]  ;;  %v2939_v28 = vld [vmem:[#allocation53_spill] sm:$0xff] }
  0xb8   :  { %v746_v33 = vadd.f32 %v743_v34, %v742_v26  ;;  %v2291_v43 = vsub.f32 1.0, %v1412_v6  ;;  %v2293_v29 = vsub.f32 1.0, %v1413_v13  ;;  %v2295_v19 = vsub.f32 1.0, %v1414_v0  ;;  %v2940_v6 = vld [vmem:[#allocation54_spill] sm:$0xff] }
  0xb9   :  { %2932 = vst [vmem:[#allocation12_spill] sm:$0xff] %v2285_v58  ;;  %v2297_v55 = vsub.f32 1.0, %v1415_v54  ;;  %v2299_v9 = vsub.f32 1.0, %v1416_v42  ;;  %v2301_v23 = vadd.f32 %v673_v1, %v672_v30  ;;  %v758_v47 = vmul.f32 %v2938_v12, %v2917_v48  ;;  %v2941_v54 = vld [vmem:[#allocation41_spill] sm:$0xff] }
  0xba   :  { %2933 = vst [vmem:[#allocation45_spill] sm:$0xff] %v2291_v43  ;;  %2934 = vst [vmem:[#allocation57_spill] sm:$0xff] %v2293_v29  ;;  %v759_v39 = vmul.f32 %v2939_v28, %v2918_v17  ;;  %v2307_v40 = vadd.f32 %v687_v61, %v686_v44  ;;  %v703_v4 = vrot.slane %v2281_v8, 2  ;;  %v732_v46 = vadd.f32 %v731_v21, %v729_v49  ;;  %v2942_v49 = vld [vmem:[#allocation31_spill] sm:$0xff]  ;;  %v2944_v43 = vld [vmem:[#allocation32_spill] sm:$0xff] }
  0xbb   :  { %2935 = vst [vmem:[#allocation58_spill] sm:$0xff] %v2295_v19  ;;  %2936 = vst [vmem:[#allocation59_spill] sm:$0xff] %v2297_v55  ;;  %v745_v59 = vmul.f32 %v1963_v2, %v2923_v27  ;;  %v719_v18 = vrot.slane %v2287_v50, 2  ;;  %v747_v36 = vadd.f32 %v746_v33, %v744_v37  ;;  %v774_v30 = vmul.f32 %v2016_v20, %v2917_v48  ;;  %v2943_v37 = vld [vmem:[#allocation16_spill] sm:$0xff]  ;;  %v2945_v58 = vld [vmem:[#allocation13_spill] sm:$0xff] }
  0xbc   :  { %2937 = vst [vmem:[#allocation60_spill] sm:$0xff] %v2299_v9  ;;  %v775_v7 = vmul.f32 %v2019_v41, %v2918_v17  ;;  %v790_v35 = vmul.f32 %v2114_v11, %v2917_v48  ;;  %v791_v44 = vmul.f32 %v2117_v3, %v2918_v17  ;;  %v806_v26 = vmul.f32 %v2136_v57, %v2917_v48 }
  0xbd   :  { %v807_v34 = vmul.f32 %v2139_v16, %v2918_v17  ;;  %v760_v13 = vmul.f32 %v2940_v6, %v2920_v53  ;;  %v762_v0 = vadd.f32 %v759_v39, %v758_v47  ;;  %v822_v42 = vmul.f32 %v2941_v54, %v2917_v48  ;;  %v2946_v39 = vld [vmem:[#allocation39_spill] sm:$0xff] }
  0xbe   :  { %v823_v1 = vmul.f32 %v2216_v15, %v2918_v17  ;;  %v733_v61 = vrot.slane %v732_v46, 4  ;;  %v761_v21 = vmul.f32 %v2942_v49, %v2923_v27  ;;  %v838_v33 = vmul.f32 %v1892_v45, %v2943_v37 }
  0xbf   :  { %v839_v9 = vmul.f32 %v1895_v31, %v2944_v43  ;;  %v776_v55 = vmul.f32 %v2945_v58, %v2920_v53  ;;  %v778_v47 = vadd.f32 %v775_v7, %v774_v30  ;;  %v792_v48 = vmul.f32 %v2946_v39, %v2920_v53  ;;  %v2948_v7 = vld [vmem:[#allocation14_spill] sm:$0xff] }
  0xc0   :  { %v854_v17 = vmul.f32 %v2924_v60, %v2943_v37  ;;  %v794_v63 = vadd.f32 %v791_v44, %v790_v35  ;;  %v808_v19 = vmul.f32 %v2919_v24, %v2920_v53  ;;  %v810_v10 = vadd.f32 %v807_v34, %v806_v26  ;;  %v2949_v60 = vld [vmem:[#allocation17_spill] sm:$0xff] }
  0xc1   :  { %v855_v45 = vmul.f32 %v2925_v56, %v2944_v43  ;;  %v748_v29 = vadd.f32 %v747_v36, %v745_v59  ;;  %v763_v31 = vadd.f32 %v762_v0, %v760_v13  ;;  %v824_v15 = vmul.f32 %v2947_v5, %v2920_v53  ;;  %v2950_v53 = vld [vmem:[#allocation35_spill] sm:$0xff] }
  0xc2   :  { %v826_v30 = vadd.f32 %v823_v1, %v822_v42  ;;  %v840_v54 = vmul.f32 %v1909_v52, %v2948_v7  ;;  %v842_v39 = vadd.f32 %v839_v9, %v838_v33  ;;  %v856_v35 = vmul.f32 %v1914_v38, %v2948_v7  ;;  %v2951_v42 = vld [vmem:[#allocation46_spill] sm:$0xff] }
  0xc3   :  { %v858_v44 = vadd.f32 %v855_v45, %v854_v17  ;;  %v777_v26 = vmul.f32 %v2949_v60, %v2923_v27  ;;  %v779_v34 = vadd.f32 %v778_v47, %v776_v55  ;;  %v870_v59 = vmul.f32 %v2928_v25, %v2943_v37  ;;  %v2952_v17 = vld [vmem:[#allocation15_spill] sm:$0xff] }
  0xc4   :  { %v871_v36 = vmul.f32 %v2929_v51, %v2944_v43  ;;  %v793_v13 = vmul.f32 %v2950_v53, %v2923_v27  ;;  %v795_v0 = vadd.f32 %v794_v63, %v792_v48  ;;  %v809_v52 = vmul.f32 %v2922_v62, %v2923_v27 }
  0xc5   :  { %v811_v9 = vadd.f32 %v810_v10, %v808_v19  ;;  %v825_v1 = vmul.f32 %v2951_v42, %v2923_v27  ;;  %v827_v33 = vadd.f32 %v826_v30, %v824_v15  ;;  %v872_v55 = vmul.f32 %v1951_v22, %v2948_v7 }
  0xc6   :  { %v874_v47 = vadd.f32 %v871_v36, %v870_v59  ;;  %v841_v45 = vmul.f32 %v1936_v32, %v2952_v17  ;;  %v843_v51 = vadd.f32 %v842_v39, %v840_v54  ;;  %v857_v25 = vmul.f32 %v1943_v14, %v2952_v17 }
  0xc7   :  { %v859_v63 = vadd.f32 %v858_v44, %v856_v35  ;;  %v704_v48 = vadd.f32 %v703_v4, %v2281_v8  ;;  %v720_v10 = vadd.f32 %v719_v18, %v2287_v50  ;;  %v873_v27 = vmul.f32 %v1963_v2, %v2952_v17 }
  0xc8   :  { %v875_v15 = vadd.f32 %v874_v47, %v872_v55  ;;  %v734_v19 = vadd.f32 %v733_v61, %v732_v46  ;;  %v749_v30 = vrot.slane %v748_v29, 4  ;;  %v886_v59 = vmul.f32 %v2938_v12, %v2943_v37 }
  0xc9   :  { %v887_v32 = vmul.f32 %v2939_v28, %v2944_v43  ;;  %v764_v54 = vadd.f32 %v763_v31, %v761_v21  ;;  %v780_v39 = vadd.f32 %v779_v34, %v777_v26  ;;  %v796_v36 = vadd.f32 %v795_v0, %v793_v13 }
  0xca   :  { %v812_v35 = vadd.f32 %v811_v9, %v809_v52  ;;  %v689_v8 = vrot.slane %v2307_v40, 1  ;;  %v828_v4 = vadd.f32 %v827_v33, %v825_v1  ;;  %v844_v50 = vadd.f32 %v843_v51, %v841_v45 }
  0xcb   :  { %v860_v18 = vadd.f32 %v859_v63, %v857_v25  ;;  %v1417_v44 = vclamps-f32 %v2301_v23, 1.0  ;;  %v705_v55 = vrot.slane %v704_v48, 1  ;;  %v721_v46 = vrot.slane %v720_v10, 1 }
  0xcc   :  { %v876_v61 = vadd.f32 %v875_v15, %v873_v27  ;;  %v735_v47 = vrot.slane %v734_v19, 2  ;;  %v750_v2 = vadd.f32 %v749_v30, %v748_v29  ;;  %v888_v22 = vmul.f32 %v2940_v6, %v2948_v7 }
  0xcd   :  { %v890_v14 = vadd.f32 %v887_v32, %v886_v59  ;;  %v765_v21 = vrot.slane %v764_v54, 4  ;;  %v781_v31 = vrot.slane %v780_v39, 4  ;;  %v797_v26 = vrot.slane %v796_v36, 4 }
  0xce   :  { %v813_v34 = vrot.slane %v812_v35, 4  ;;  %v690_v13 = vadd.f32 %v689_v8, %v2307_v40  ;;  %v829_v0 = vrot.slane %v828_v4, 4  ;;  %v845_v51 = vrot.slane %v844_v50, 4 }
  0xcf   :  { %v861_v25 = vrot.slane %v860_v18, 4  ;;  %v2384_v52 = vsub.f32 1.0, %v1417_v44  ;;  %v706_v23 = vadd.f32 %v705_v55, %v704_v48  ;;  %v722_v9 = vadd.f32 %v721_v46, %v720_v10 }
  0xd0   :  { %v877_v1 = vrot.slane %v876_v61, 4  ;;  %v736_v33 = vadd.f32 %v735_v47, %v734_v19  ;;  %v751_v29 = vrot.slane %v750_v2, 2  ;;  %v889_v45 = vmul.f32 %v2942_v49, %v2952_v17 }
  0xd1   :  { %2953 = vst [vmem:[#allocation52_spill] sm:$0xff] %v2384_v52  ;;  %v891_v63 = vadd.f32 %v890_v14, %v888_v22  ;;  %v766_v27 = vadd.f32 %v765_v21, %v764_v54  ;;  %v782_v15 = vadd.f32 %v781_v31, %v780_v39  ;;  %v798_v30 = vadd.f32 %v797_v26, %v796_v36 }
  0xd2   :  { %v814_v59 = vadd.f32 %v813_v34, %v812_v35  ;;  %v1418_v32 = vclamps-f32 %v690_v13, 1.0  ;;  %v830_v40 = vadd.f32 %v829_v0, %v828_v4  ;;  %v846_v8 = vadd.f32 %v845_v51, %v844_v50 }
  0xd3   :  { %v862_v6 = vadd.f32 %v861_v25, %v860_v18  ;;  %v1419_v28 = vclamps-f32 %v706_v23, 1.0  ;;  %v878_v44 = vadd.f32 %v877_v1, %v876_v61  ;;  %v902_v48 = vmul.f32 %v2016_v20, %v2943_v37 }
  0xd4   :  { %v903_v10 = vmul.f32 %v2019_v41, %v2944_v43  ;;  %v1420_v19 = vclamps-f32 %v722_v9, 1.0  ;;  %v737_v55 = vrot.slane %v736_v33, 1  ;;  %v752_v46 = vadd.f32 %v751_v29, %v750_v2 }
  0xd5   :  { %v892_v14 = vadd.f32 %v891_v63, %v889_v45  ;;  %v767_v22 = vrot.slane %v766_v27, 2  ;;  %v783_v54 = vrot.slane %v782_v15, 2  ;;  %v799_v39 = vrot.slane %v798_v30, 2 }
  0xd6   :  { %v815_v36 = vrot.slane %v814_v59, 2  ;;  %v2392_v35 = vsub.f32 1.0, %v1418_v32  ;;  %v831_v4 = vrot.slane %v830_v40, 2  ;;  %v847_v50 = vrot.slane %v846_v8, 2 }
  0xd7   :  { %v863_v18 = vrot.slane %v862_v6, 2  ;;  %v2394_v61 = vsub.f32 1.0, %v1419_v28  ;;  %v879_v47 = vrot.slane %v878_v44, 2  ;;  %v904_v21 = vmul.f32 %v2945_v58, %v2948_v7 }
  0xd8   :  { %2954 = vst [vmem:[#allocation31_spill] sm:$0xff] %v2392_v35  ;;  %v906_v31 = vadd.f32 %v903_v10, %v902_v48  ;;  %v2398_v26 = vsub.f32 1.0, %v1420_v19  ;;  %v738_v2 = vadd.f32 %v737_v55, %v736_v33  ;;  %v753_v34 = vrot.slane %v752_v46, 1 }
  0xd9   :  { %2955 = vst [vmem:[#allocation16_spill] sm:$0xff] %v2394_v61  ;;  %v893_v13 = vrot.slane %v892_v14, 4  ;;  %v768_v0 = vadd.f32 %v767_v22, %v766_v27  ;;  %v784_v51 = vadd.f32 %v783_v54, %v782_v15  ;;  %v800_v25 = vadd.f32 %v799_v39, %v798_v30  ;;  %v2957_v39 = vld [vmem:[#allocation39_spill] sm:$0xff] }
  0xda   :  { %2956 = vst [vmem:[#allocation32_spill] sm:$0xff] %v2398_v26  ;;  %v816_v23 = vadd.f32 %v815_v36, %v814_v59  ;;  %v832_v9 = vadd.f32 %v831_v4, %v830_v40  ;;  %v848_v1 = vadd.f32 %v847_v50, %v846_v8  ;;  %v864_v29 = vadd.f32 %v863_v18, %v862_v6 }
  0xdb   :  { %v905_v28 = vmul.f32 %v2949_v60, %v2952_v17  ;;  %v880_v45 = vadd.f32 %v879_v47, %v878_v44  ;;  %v907_v63 = vadd.f32 %v906_v31, %v904_v21  ;;  %v918_v32 = vmul.f32 %v2114_v11, %v2943_v37 }
  0xdc   :  { %v919_v33 = vmul.f32 %v2117_v3, %v2944_v43  ;;  %v754_v48 = vadd.f32 %v753_v34, %v752_v46  ;;  %v894_v10 = vadd.f32 %v893_v13, %v892_v14  ;;  %v934_v27 = vmul.f32 %v2136_v57, %v2943_v37 }
  0xdd   :  { %v935_v15 = vmul.f32 %v2139_v16, %v2944_v43  ;;  %v769_v6 = vrot.slane %v768_v0, 1  ;;  %v785_v30 = vrot.slane %v784_v51, 1  ;;  %v801_v59 = vrot.slane %v800_v25, 1 }
  0xde   :  { %v817_v40 = vrot.slane %v816_v23, 1  ;;  %v1421_v8 = vclamps-f32 %v738_v2, 1.0  ;;  %v833_v44 = vrot.slane %v832_v9, 1  ;;  %v849_v19 = vrot.slane %v848_v1, 1 }
  0xdf   :  { %v865_v55 = vrot.slane %v864_v29, 1  ;;  %v881_v22 = vrot.slane %v880_v45, 1  ;;  %v908_v54 = vadd.f32 %v907_v63, %v905_v28  ;;  %v920_v46 = vmul.f32 %v2957_v39, %v2948_v7 }
  0xe0   :  { %v922_v14 = vadd.f32 %v919_v33, %v918_v32  ;;  %v1422_v36 = vclamps-f32 %v754_v48, 1.0  ;;  %v895_v4 = vrot.slane %v894_v10, 2  ;;  %v936_v50 = vmul.f32 %v2919_v24, %v2948_v7 }
  0xe1   :  { %v938_v18 = vadd.f32 %v935_v15, %v934_v27  ;;  %v770_v47 = vadd.f32 %v769_v6, %v768_v0  ;;  %v786_v21 = vadd.f32 %v785_v30, %v784_v51  ;;  %v802_v31 = vadd.f32 %v801_v59, %v800_v25  ;;  %v2958_v27 = vld [vmem:[#allocation41_spill] sm:$0xff]  ;;  %v2959_v51 = vld [vmem:[#allocation42_spill] sm:$0xff] }
  0xe2   :  { %v818_v34 = vadd.f32 %v817_v40, %v816_v23  ;;  %v834_v2 = vadd.f32 %v833_v44, %v832_v9  ;;  %v850_v13 = vadd.f32 %v849_v19, %v848_v1  ;;  %v866_v61 = vadd.f32 %v865_v55, %v864_v29 }
  0xe3   :  { %v921_v28 = vmul.f32 %v2950_v53, %v2952_v17  ;;  %v882_v63 = vadd.f32 %v881_v22, %v880_v45  ;;  %v909_v35 = vrot.slane %v908_v54, 4  ;;  %v923_v52 = vadd.f32 %v922_v14, %v920_v46  ;;  %v2964_v46 = vld [vmem:[#allocation20_spill] sm:$0xff] }
  0xe4   :  { %v937_v32 = vmul.f32 %v2922_v62, %v2952_v17  ;;  %v896_v33 = vadd.f32 %v895_v4, %v894_v10  ;;  %v939_v48 = vadd.f32 %v938_v18, %v936_v50  ;;  %v950_v0 = vmul.f32 %v2958_v27, %v2943_v37  ;;  %v2965_v14 = vld [vmem:[#allocation44_spill] sm:$0xff]  ;;  %v2966_v4 = vld [vmem:[#allocation34_spill] sm:$0xff] }
  0xe5   :  { %v951_v25 = vmul.f32 %v2959_v51, %v2944_v43  ;;  %v2422_v23 = vsub.f32 1.0, %v1421_v8  ;;  %v2424_v9 = vsub.f32 1.0, %v1422_v36  ;;  %v1423_v1 = vclamps-f32 %v770_v47, 1.0 }
  0xe6   :  { %v1424_v29 = vclamps-f32 %v786_v21, 1.0  ;;  %v1425_v45 = vclamps-f32 %v802_v31, 1.0  ;;  %v1426_v15 = vclamps-f32 %v818_v34, 1.0  ;;  %v1427_v6 = vclamps-f32 %v834_v2, 1.0 }
  0xe7   :  { %2960 = vst [vmem:[#allocation13_spill] sm:$0xff] %v2422_v23  ;;  %2961 = vst [vmem:[#allocation43_spill] sm:$0xff] %v2424_v9  ;;  %v1428_v30 = vclamps-f32 %v850_v13, 1.0  ;;  %v1429_v59 = vclamps-f32 %v866_v61, 1.0  ;;  %v1430_v40 = vclamps-f32 %v882_v63, 1.0  ;;  %v910_v10 = vadd.f32 %v909_v35, %v908_v54  ;;  %v2973_v13 = vld [vmem:[#allocation18_spill] sm:$0xff] }
  0xe8   :  { %v924_v44 = vadd.f32 %v923_v52, %v921_v28  ;;  %v897_v19 = vrot.slane %v896_v33, 1  ;;  %v940_v55 = vadd.f32 %v939_v48, %v937_v32  ;;  %v952_v37 = vmul.f32 %v2947_v5, %v2948_v7  ;;  %v2974_v32 = vld [vmem:[#allocation47_spill] sm:$0xff] }
  0xe9   :  { %v954_v43 = vadd.f32 %v951_v25, %v950_v0  ;;  %v2428_v8 = vsub.f32 1.0, %v1423_v1  ;;  %v2430_v22 = vsub.f32 1.0, %v1424_v29  ;;  %v966_v36 = vmul.f32 %v2965_v14, %v2964_v46  ;;  %v2975_v0 = vld [vmem:[#allocation48_spill] sm:$0xff]  ;;  %v2978_v14 = vld [vmem:[#allocation49_spill] sm:$0xff] }
  0xea   :  { %v967_v50 = vmul.f32 %v2925_v56, %v2966_v4  ;;  %v2436_v61 = vsub.f32 1.0, %v1425_v45  ;;  %v2438_v35 = vsub.f32 1.0, %v1426_v15  ;;  %v2440_v52 = vsub.f32 1.0, %v1427_v6 }
  0xeb   :  { %2962 = vst [vmem:[#allocation14_spill] sm:$0xff] %v2428_v8  ;;  %2963 = vst [vmem:[#allocation17_spill] sm:$0xff] %v2430_v22  ;;  %v2442_v54 = vsub.f32 1.0, %v1428_v30  ;;  %v2444_v7 = vsub.f32 1.0, %v1429_v59  ;;  %v911_v18 = vrot.slane %v910_v10, 2  ;;  %v925_v47 = vrot.slane %v924_v44, 4 }
  0xec   :  { %2967 = vst [vmem:[#allocation35_spill] sm:$0xff] %v2436_v61  ;;  %2968 = vst [vmem:[#allocation46_spill] sm:$0xff] %v2438_v35  ;;  %v953_v21 = vmul.f32 %v2951_v42, %v2952_v17  ;;  %v2448_v31 = vsub.f32 1.0, %v1430_v40  ;;  %v2450_v34 = vadd.f32 %v897_v19, %v896_v33  ;;  %v941_v56 = vrot.slane %v940_v55, 4  ;;  %v2976_v17 = vld [vmem:[#allocation53_spill] sm:$0xff]  ;;  %v2980_v22 = vld [vmem:[#allocation54_spill] sm:$0xff] }
  0xed   :  { %2969 = vst [vmem:[#allocation15_spill] sm:$0xff] %v2440_v52  ;;  %2970 = vst [vmem:[#allocation39_spill] sm:$0xff] %v2442_v54  ;;  %v955_v2 = vadd.f32 %v954_v43, %v952_v37  ;;  %v968_v28 = vmul.f32 %v1914_v38, %v2973_v13  ;;  %v970_v63 = vadd.f32 %v967_v50, %v966_v36  ;;  %v2977_v43 = vld [vmem:[#allocation19_spill] sm:$0xff]  ;;  %v2979_v52 = vld [vmem:[#allocation50_spill] sm:$0xff] }
  0xee   :  { %2971 = vst [vmem:[#allocation41_spill] sm:$0xff] %v2444_v7  ;;  %2972 = vst [vmem:[#allocation42_spill] sm:$0xff] %v2448_v31  ;;  %v982_v48 = vmul.f32 %v2974_v32, %v2964_v46  ;;  %v983_v25 = vmul.f32 %v2975_v0, %v2966_v4  ;;  %v998_v1 = vmul.f32 %v2938_v12, %v2964_v46 }
  0xef   :  { %v999_v29 = vmul.f32 %v2976_v17, %v2966_v4  ;;  %v1014_v33 = vmul.f32 %v2016_v20, %v2964_v46  ;;  %v1015_v45 = vmul.f32 %v2019_v41, %v2966_v4  ;;  %v1030_v38 = vmul.f32 %v2114_v11, %v2964_v46 }
  0xf0   :  { %v1031_v15 = vmul.f32 %v2117_v3, %v2966_v4  ;;  %v1046_v6 = vmul.f32 %v2136_v57, %v2964_v46  ;;  %v1047_v30 = vmul.f32 %v2139_v16, %v2966_v4  ;;  %v912_v59 = vadd.f32 %v911_v18, %v910_v10 }
  0xf1   :  { %v926_v40 = vadd.f32 %v925_v47, %v924_v44  ;;  %v942_v19 = vadd.f32 %v941_v56, %v940_v55  ;;  %v956_v37 = vadd.f32 %v955_v2, %v953_v21  ;;  %v969_v36 = vmul.f32 %v2978_v14, %v2977_v43  ;;  %v2981_v21 = vld [vmem:[#allocation51_spill] sm:$0xff] }
  0xf2   :  { %v971_v50 = vadd.f32 %v970_v63, %v968_v28  ;;  %v984_v35 = vmul.f32 %v2979_v52, %v2973_v13  ;;  %v986_v61 = vadd.f32 %v983_v25, %v982_v48  ;;  %v1000_v31 = vmul.f32 %v2980_v22, %v2973_v13  ;;  %v2982_v25 = vld [vmem:[#allocation21_spill] sm:$0xff] }
  0xf3   :  { %v1002_v8 = vadd.f32 %v999_v29, %v998_v1  ;;  %v1016_v7 = vmul.f32 %v2945_v58, %v2973_v13  ;;  %v1018_v9 = vadd.f32 %v1015_v45, %v1014_v33  ;;  %v1032_v10 = vmul.f32 %v2957_v39, %v2973_v13  ;;  %v2983_v29 = vld [vmem:[#allocation22_spill] sm:$0xff] }
  0xf4   :  { %v1034_v44 = vadd.f32 %v1031_v15, %v1030_v38  ;;  %v1048_v55 = vmul.f32 %v2919_v24, %v2973_v13  ;;  %v1050_v18 = vadd.f32 %v1047_v30, %v1046_v6  ;;  %v957_v47 = vrot.slane %v956_v37, 4 }
  0xf5   :  { %v985_v56 = vmul.f32 %v2981_v21, %v2977_v43  ;;  %v1062_v2 = vmul.f32 %v2958_v27, %v2964_v46  ;;  %v1063_v28 = vmul.f32 %v2959_v51, %v2966_v4  ;;  %v972_v63 = vadd.f32 %v971_v50, %v969_v36 }
  0xf6   :  { %v987_v48 = vadd.f32 %v986_v61, %v984_v35  ;;  %v1078_v1 = vmul.f32 %v2974_v32, %v2982_v25  ;;  %v1079_v33 = vmul.f32 %v2975_v0, %v2983_v29  ;;  %v1001_v45 = vmul.f32 %v2942_v49, %v2977_v43 }
  0xf7   :  { %v1003_v38 = vadd.f32 %v1002_v8, %v1000_v31  ;;  %v1017_v15 = vmul.f32 %v2949_v60, %v2977_v43  ;;  %v1019_v6 = vadd.f32 %v1018_v9, %v1016_v7  ;;  %v1033_v46 = vmul.f32 %v2950_v53, %v2977_v43  ;;  %v2984_v7 = vld [vmem:[#allocation23_spill] sm:$0xff] }
  0xf8   :  { %v1035_v4 = vadd.f32 %v1034_v44, %v1032_v10  ;;  %v1049_v61 = vmul.f32 %v2922_v62, %v2977_v43  ;;  %v1051_v35 = vadd.f32 %v1050_v18, %v1048_v55  ;;  %v1064_v32 = vmul.f32 %v2947_v5, %v2973_v13 }
  0xf9   :  { %v1066_v0 = vadd.f32 %v1063_v28, %v1062_v2  ;;  %v1094_v30 = vmul.f32 %v2938_v12, %v2982_v25  ;;  %v1095_v8 = vmul.f32 %v2976_v17, %v2983_v29  ;;  %v913_v31 = vrot.slane %v912_v59, 1 }
  0xfa   :  { %v988_v9 = vadd.f32 %v987_v48, %v985_v56  ;;  %v1080_v14 = vmul.f32 %v2979_v52, %v2984_v7  ;;  %v1082_v36 = vadd.f32 %v1079_v33, %v1078_v1  ;;  %v927_v50 = vrot.slane %v926_v40, 2  ;;  %v2985_v1 = vld [vmem:[#allocation24_spill] sm:$0xff] }
  0xfb   :  { %v943_v10 = vrot.slane %v942_v19, 2  ;;  %v958_v44 = vadd.f32 %v957_v47, %v956_v37  ;;  %v973_v55 = vrot.slane %v972_v63, 4  ;;  %v1004_v18 = vadd.f32 %v1003_v38, %v1001_v45 }
  0xfc   :  { %v1020_v54 = vadd.f32 %v1019_v6, %v1017_v15  ;;  %v1036_v13 = vadd.f32 %v1035_v4, %v1033_v46  ;;  %v1052_v2 = vadd.f32 %v1051_v35, %v1049_v61  ;;  %v1065_v28 = vmul.f32 %v2951_v42, %v2977_v43 }
  0xfd   :  { %v1067_v23 = vadd.f32 %v1066_v0, %v1064_v32  ;;  %v1096_v26 = vmul.f32 %v2980_v22, %v2984_v7  ;;  %v1098_v56 = vadd.f32 %v1095_v8, %v1094_v30  ;;  %v1431_v48 = vclamps-f32 %v2450_v34, 1.0 }
  0xfe   :  { %v989_v52 = vrot.slane %v988_v9, 4  ;;  %v1081_v33 = vmul.f32 %v2981_v21, %v2985_v1  ;;  %v1083_v37 = vadd.f32 %v1082_v36, %v1080_v14  ;;  %v914_v47 = vadd.f32 %v913_v31, %v912_v59 }
  0xff   :  { %v928_v45 = vadd.f32 %v927_v50, %v926_v40  ;;  %v944_v38 = vadd.f32 %v943_v10, %v942_v19  ;;  %v959_v15 = vrot.slane %v958_v44, 2  ;;  %v1005_v6 = vrot.slane %v1004_v18, 4 }
 0x100   :  { %v1021_v46 = vrot.slane %v1020_v54, 4  ;;  %v1037_v4 = vrot.slane %v1036_v13, 4  ;;  %v1053_v43 = vrot.slane %v1052_v2, 4  ;;  %v974_v61 = vadd.f32 %v973_v55, %v972_v63 }
 0x101   :  { %v1068_v35 = vadd.f32 %v1067_v23, %v1065_v28  ;;  %v1097_v32 = vmul.f32 %v2942_v49, %v2985_v1  ;;  %v1099_v0 = vadd.f32 %v1098_v56, %v1096_v26  ;;  %v990_v34 = vadd.f32 %v989_v52, %v988_v9 }
 0x102   :  { %v1084_v30 = vadd.f32 %v1083_v37, %v1081_v33  ;;  %v1110_v21 = vmul.f32 %v2016_v20, %v2982_v25  ;;  %v1111_v59 = vmul.f32 %v2019_v41, %v2983_v29  ;;  %v2525_v40 = vsub.f32 1.0, %v1431_v48 }
 0x103   :  { %v1432_v19 = vclamps-f32 %v914_v47, 1.0  ;;  %v929_v8 = vrot.slane %v928_v45, 1  ;;  %v945_v31 = vrot.slane %v944_v38, 1  ;;  %v1006_v14 = vadd.f32 %v1005_v6, %v1004_v18 }
 0x104   :  { %2986 = vst [vmem:[#allocation20_spill] sm:$0xff] %v2525_v40  ;;  %v1022_v63 = vadd.f32 %v1021_v46, %v1020_v54  ;;  %v1038_v23 = vadd.f32 %v1037_v4, %v1036_v13  ;;  %v1054_v36 = vadd.f32 %v1053_v43, %v1052_v2  ;;  %v960_v50 = vadd.f32 %v959_v15, %v958_v44 }
 0x105   :  { %v975_v10 = vrot.slane %v974_v61, 2  ;;  %v1069_v26 = vrot.slane %v1068_v35, 4  ;;  %v1100_v9 = vadd.f32 %v1099_v0, %v1097_v32  ;;  %v991_v55 = vrot.slane %v990_v34, 2 }
 0x106   :  { %v1085_v28 = vrot.slane %v1084_v30, 4  ;;  %v1112_v56 = vmul.f32 %v2945_v58, %v2984_v7  ;;  %v1114_v52 = vadd.f32 %v1111_v59, %v1110_v21  ;;  %v930_v33 = vadd.f32 %v929_v8, %v928_v45 }
 0x107   :  { %v946_v48 = vadd.f32 %v945_v31, %v944_v38  ;;  %v1126_v37 = vmul.f32 %v2114_v11, %v2982_v25  ;;  %v1127_v54 = vmul.f32 %v2117_v3, %v2983_v29  ;;  %v1007_v18 = vrot.slane %v1006_v14, 2 }
 0x108   :  { %v1023_v13 = vrot.slane %v1022_v63, 2  ;;  %v1039_v44 = vrot.slane %v1038_v23, 2  ;;  %v1055_v2 = vrot.slane %v1054_v36, 2  ;;  %v961_v47 = vrot.slane %v960_v50, 1 }
 0x109   :  { %v976_v15 = vadd.f32 %v975_v10, %v974_v61  ;;  %v1070_v6 = vadd.f32 %v1069_v26, %v1068_v35  ;;  %v1101_v46 = vrot.slane %v1100_v9, 4  ;;  %v992_v4 = vadd.f32 %v991_v55, %v990_v34 }
 0x10a   :  { %v1086_v43 = vadd.f32 %v1085_v28, %v1084_v30  ;;  %v1113_v45 = vmul.f32 %v2949_v60, %v2985_v1  ;;  %v1115_v38 = vadd.f32 %v1114_v52, %v1112_v56  ;;  %v2535_v32 = vsub.f32 1.0, %v1432_v19 }
 0x10b   :  { %v1433_v0 = vclamps-f32 %v930_v33, 1.0  ;;  %v1128_v21 = vmul.f32 %v2957_v39, %v2984_v7  ;;  %v1130_v59 = vadd.f32 %v1127_v54, %v1126_v37  ;;  %v1008_v8 = vadd.f32 %v1007_v18, %v1006_v14 }
 0x10c   :  { %2987 = vst [vmem:[#allocation44_spill] sm:$0xff] %v2535_v32  ;;  %v1024_v31 = vadd.f32 %v1023_v13, %v1022_v63  ;;  %v1040_v40 = vadd.f32 %v1039_v44, %v1038_v23  ;;  %v1056_v3 = vadd.f32 %v1055_v2, %v1054_v36  ;;  %v962_v61 = vadd.f32 %v961_v47, %v960_v50 }
 0x10d   :  { %v977_v35 = vrot.slane %v976_v15, 1  ;;  %v1071_v10 = vrot.slane %v1070_v6, 2  ;;  %v1102_v34 = vadd.f32 %v1101_v46, %v1100_v9  ;;  %v1434_v30 = vclamps-f32 %v946_v48, 1.0 }
 0x10e   :  { %v993_v26 = vrot.slane %v992_v4, 1  ;;  %v1087_v55 = vrot.slane %v1086_v43, 2  ;;  %v1116_v28 = vadd.f32 %v1115_v38, %v1113_v45  ;;  %v1129_v19 = vmul.f32 %v2950_v53, %v2985_v1 }
 0x10f   :  { %v1131_v56 = vadd.f32 %v1130_v59, %v1128_v21  ;;  %v1142_v52 = vmul.f32 %v2136_v57, %v2982_v25  ;;  %v1143_v14 = vmul.f32 %v2139_v16, %v2983_v29  ;;  %v1009_v63 = vrot.slane %v1008_v8, 1 }
 0x110   :  { %v1025_v23 = vrot.slane %v1024_v31, 1  ;;  %v1041_v36 = vrot.slane %v1040_v40, 1  ;;  %v1057_v50 = vrot.slane %v1056_v3, 1  ;;  %v1435_v33 = vclamps-f32 %v962_v61, 1.0 }
 0x111   :  { %v978_v9 = vadd.f32 %v977_v35, %v976_v15  ;;  %v1072_v48 = vadd.f32 %v1071_v10, %v1070_v6  ;;  %v1103_v37 = vrot.slane %v1102_v34, 2  ;;  %v2545_v54 = vsub.f32 1.0, %v1433_v0 }
 0x112   :  { %v994_v18 = vadd.f32 %v993_v26, %v992_v4  ;;  %v1088_v13 = vadd.f32 %v1087_v55, %v1086_v43  ;;  %v1117_v44 = vrot.slane %v1116_v28, 4  ;;  %v2547_v2 = vsub.f32 1.0, %v1434_v30 }
 0x113   :  { %v1132_v47 = vadd.f32 %v1131_v56, %v1129_v19  ;;  %v1144_v46 = vmul.f32 %v2919_v24, %v2984_v7  ;;  %v1146_v45 = vadd.f32 %v1143_v14, %v1142_v52  ;;  %v1010_v38 = vadd.f32 %v1009_v63, %v1008_v8  ;;  %v2988_v52 = vld [vmem:[#allocation25_spill] sm:$0xff]  ;;  %v2989_v14 = vld [vmem:[#allocation26_spill] sm:$0xff] }
 0x114   :  { %v1026_v21 = vadd.f32 %v1025_v23, %v1024_v31  ;;  %v1042_v59 = vadd.f32 %v1041_v36, %v1040_v40  ;;  %v1058_v32 = vadd.f32 %v1057_v50, %v1056_v3  ;;  %v2551_v61 = vsub.f32 1.0, %v1435_v33 }
 0x115   :  { %v1436_v15 = vclamps-f32 %v978_v9, 1.0  ;;  %v1073_v6 = vrot.slane %v1072_v48, 1  ;;  %v1104_v0 = vadd.f32 %v1103_v37, %v1102_v34  ;;  %v1437_v35 = vclamps-f32 %v994_v18, 1.0 }
 0x116   :  { %v1089_v4 = vrot.slane %v1088_v13, 1  ;;  %v1118_v43 = vadd.f32 %v1117_v44, %v1116_v28  ;;  %v1145_v10 = vmul.f32 %v2922_v62, %v2985_v1  ;;  %v1133_v30 = vrot.slane %v1132_v47, 4 }
 0x117   :  { %v1147_v26 = vadd.f32 %v1146_v45, %v1144_v46  ;;  %v1158_v55 = vmul.f32 %v2958_v27, %v2982_v25  ;;  %v1159_v40 = vmul.f32 %v2959_v51, %v2983_v29  ;;  %v1438_v3 = vclamps-f32 %v1010_v38, 1.0  ;;  %v2990_v46 = vld [vmem:[#allocation27_spill] sm:$0xff] }
 0x118   :  { %v1439_v8 = vclamps-f32 %v1026_v21, 1.0  ;;  %v1440_v31 = vclamps-f32 %v1042_v59, 1.0  ;;  %v1441_v19 = vclamps-f32 %v1058_v32, 1.0  ;;  %v1074_v56 = vadd.f32 %v1073_v6, %v1072_v48  ;;  %v2992_v21 = vld [vmem:[#allocation38_spill] sm:$0xff] }
 0x119   :  { %v1105_v34 = vrot.slane %v1104_v0, 1  ;;  %v1174_v28 = vmul.f32 %v2938_v12, %v2988_v52  ;;  %v1175_v63 = vmul.f32 %v2976_v17, %v2989_v14  ;;  %v2563_v23 = vsub.f32 1.0, %v1436_v15  ;;  %v2993_v15 = vld [vmem:[#allocation30_spill] sm:$0xff] }
 0x11a   :  { %v2565_v36 = vsub.f32 1.0, %v1437_v35  ;;  %v1090_v25 = vadd.f32 %v1089_v4, %v1088_v13  ;;  %v1119_v50 = vrot.slane %v1118_v43, 2  ;;  %v1134_v33 = vadd.f32 %v1133_v30, %v1132_v47 }
 0x11b   :  { %v1148_v29 = vadd.f32 %v1147_v26, %v1145_v10  ;;  %v1160_v9 = vmul.f32 %v2947_v5, %v2984_v7  ;;  %v1162_v32 = vadd.f32 %v1159_v40, %v1158_v55  ;;  %v2569_v48 = vsub.f32 1.0, %v1438_v3  ;;  %v2991_v7 = vld [vmem:[#allocation37_spill] sm:$0xff]  ;;  %v2994_v26 = vld [vmem:[#allocation55_spill] sm:$0xff] }
 0x11c   :  { %v2571_v37 = vsub.f32 1.0, %v1439_v8  ;;  %v2573_v12 = vsub.f32 1.0, %v1440_v31  ;;  %v2575_v18 = vsub.f32 1.0, %v1441_v19  ;;  %v1442_v17 = vclamps-f32 %v1074_v56, 1.0  ;;  %v2995_v8 = vld [vmem:[#allocation28_spill] sm:$0xff] }
 0x11d   :  { %v1106_v44 = vadd.f32 %v1105_v34, %v1104_v0  ;;  %v1176_v13 = vmul.f32 %v2980_v22, %v2990_v46  ;;  %v1178_v45 = vadd.f32 %v1175_v63, %v1174_v28  ;;  %v1443_v47 = vclamps-f32 %v1090_v25, 1.0  ;;  %v2996_v56 = vld [vmem:[#allocation56_spill] sm:$0xff] }
 0x11e   :  { %v1161_v38 = vmul.f32 %v2951_v42, %v2985_v1  ;;  %v1254_v59 = vadd.f32 %v2992_v21, %v2991_v7  ;;  %v1258_v6 = vadd.f32 %v2993_v15, %v2991_v7  ;;  %v1120_v35 = vadd.f32 %v1119_v50, %v1118_v43  ;;  %v2999_v21 = vld [vmem:[#allocation33_spill] sm:$0xff] }
 0x11f   :  { %v1135_v4 = vrot.slane %v1134_v33, 2  ;;  %v1149_v10 = vrot.slane %v1148_v29, 4  ;;  %v1163_v30 = vadd.f32 %v1162_v32, %v1160_v9  ;;  %v1190_v0 = vmul.f32 %v2016_v20, %v2988_v52 }
 0x120   :  { %v1191_v22 = vmul.f32 %v2019_v41, %v2989_v14  ;;  %v1255_v55 = vadd.f32 %v1254_v59, %v2994_v26  ;;  %v1259_v1 = vmin.f32 %v1254_v59, %v2991_v7  ;;  %v2591_v40 = vsub.f32 1.0, %v1442_v17  ;;  %v2997_v17 = vld [vmem:[#allocation36_spill] sm:$0xff]  ;;  %v2998_v7 = vld [vmem:[#allocation57_spill] sm:$0xff] }
 0x121   :  { %v1444_v3 = vclamps-f32 %v1106_v44, 1.0  ;;  %v1177_v31 = vmul.f32 %v2942_v49, %v2995_v8  ;;  %v1179_v43 = vadd.f32 %v1178_v45, %v1176_v13  ;;  %v2595_v19 = vsub.f32 1.0, %v1443_v47 }
 0x122   :  { %v1256_v34 = vadd.f32 %v1255_v55, %v2996_v56  ;;  %v1260_v28 = vmin.f32 %v1259_v1, %v1258_v6  ;;  %v1262_v20 = vmin.f32 %v1255_v55, %v1254_v59  ;;  %v1121_v63 = vrot.slane %v1120_v35, 1  ;;  %v3001_v1 = vld [vmem:[#allocation11_spill] sm:$0xff] }
 0x123   :  { %v1136_v25 = vadd.f32 %v1135_v4, %v1134_v33  ;;  %v1150_v41 = vadd.f32 %v1149_v10, %v1148_v29  ;;  %v2598_v50 = vadd.f32 %v1163_v30, %v1161_v38  ;;  %v1192_v9 = vmul.f32 %v2945_v58, %v2990_v46  ;;  %v3000_v29 = vld [vmem:[#allocation29_spill] sm:$0xff] }
 0x124   :  { %v1194_v32 = vadd.f32 %v1191_v22, %v1190_v0  ;;  %v1261_v44 = vadd.f32 %v1260_v28, %v2997_v17  ;;  %v1273_v49 = vadd.f32 %v1258_v6, %v2998_v7  ;;  %v2604_v13 = vsub.f32 1.0, %v1444_v3 }
 0x125   :  { %v1180_v45 = vadd.f32 %v1179_v43, %v1177_v31  ;;  %v1206_v47 = vmul.f32 %v2114_v11, %v2988_v52  ;;  %v1207_v33 = vmul.f32 %v2999_v21, %v2989_v14  ;;  %v1257_v38 = vadd.f32 %v1256_v34, %v3000_v29 }
 0x126   :  { %v1263_v59 = vmin.f32 %v1262_v20, %v1261_v44  ;;  %v1265_v15 = vmin.f32 %v1256_v34, %v1255_v55  ;;  %v1274_v4 = vmin.f32 %v1261_v44, %v1258_v6  ;;  %v2611_v58 = vadd.f32 %v1121_v63, %v1120_v35  ;;  %v3002_v55 = vld [vmem:[#allocation32_spill] sm:$0xff]  ;;  %v3003_v20 = vld [vmem:[#allocation58_spill] sm:$0xff] }
 0x127   :  { %v1137_v10 = vrot.slane %v1136_v25, 1  ;;  %v1151_v30 = vrot.slane %v1150_v41, 2  ;;  %v1165_v0 = vrot.slane %v2598_v50, 4  ;;  %v1193_v22 = vmul.f32 %v2949_v60, %v2995_v8 }
 0x128   :  { %v1195_v26 = vadd.f32 %v1194_v32, %v1192_v9  ;;  %v1264_v11 = vadd.f32 %v1263_v59, %v3001_v1  ;;  %v1275_v3 = vmin.f32 %v1274_v4, %v1273_v49  ;;  %v1181_v31 = vrot.slane %v1180_v45, 4  ;;  %v3005_v4 = vld [vmem:[#allocation59_spill] sm:$0xff] }
 0x129   :  { %v1208_v43 = vmul.f32 %v2957_v39, %v2990_v46  ;;  %v1210_v56 = vadd.f32 %v1207_v33, %v1206_v47  ;;  %v1291_v6 = vadd.f32 %v1273_v49, %v3002_v55  ;;  %v1268_v28 = vmin.f32 %v1257_v38, %v1256_v34  ;;  %v3004_v39 = vld [vmem:[#allocation40_spill] sm:$0xff] }
 0x12a   :  { %v1266_v35 = vmin.f32 %v1265_v15, %v1264_v11  ;;  %v1276_v63 = vadd.f32 %v1275_v3, %v3003_v20  ;;  %v1277_v17 = vmin.f32 %v1264_v11, %v1261_v44  ;;  %v1445_v7 = vclamps-f32 %v2611_v58, 1.0 }
 0x12b   :  { %v2622_v21 = vadd.f32 %v1137_v10, %v1136_v25  ;;  %v1222_v60 = vmul.f32 %v2136_v57, %v2988_v52  ;;  %v1223_v9 = vmul.f32 %v2139_v16, %v2989_v14  ;;  %v2628_v32 = vadd.f32 %v1151_v30, %v1150_v41 }
 0x12c   :  { %v1267_v47 = vadd.f32 %v1266_v35, %v3004_v39  ;;  %v1278_v33 = vmin.f32 %v1277_v17, %v1276_v63  ;;  %v1292_v29 = vmin.f32 %v1276_v63, %v1273_v49  ;;  %v1182_v34 = vadd.f32 %v1181_v31, %v1180_v45  ;;  %v3006_v45 = vld [vmem:[#allocation12_spill] sm:$0xff]  ;;  %v3011_v39 = vld [vmem:[#allocation43_spill] sm:$0xff] }
 0x12d   :  { %v1196_v59 = vadd.f32 %v1195_v26, %v1193_v22  ;;  %v1209_v44 = vmul.f32 %v2950_v53, %v2995_v8  ;;  %v1211_v15 = vadd.f32 %v1210_v56, %v1208_v43  ;;  %v1224_v16 = vmul.f32 %v2919_v24, %v2990_v46  ;;  %v3007_v53 = vld [vmem:[#allocation13_spill] sm:$0xff]  ;;  %v3008_v56 = vld [vmem:[#allocation39_spill] sm:$0xff]  ;;  %v3009_v35 = vld [vmem:[#allocation60_spill] sm:$0xff] }
 0x12e   :  { %v1269_v25 = vmin.f32 %v1268_v28, %v1267_v47  ;;  %v1279_v58 = vadd.f32 %v1278_v33, %v3005_v4  ;;  %v1280_v10 = vmin.f32 %v1267_v47, %v1264_v11  ;;  %v1293_v57 = vmin.f32 %v1292_v29, %v1291_v6 }
 0x12f   :  { %v1226_v41 = vadd.f32 %v1223_v9, %v1222_v60  ;;  %v1238_v30 = vmul.f32 %v2958_v27, %v2988_v52  ;;  %v1239_v49 = vmul.f32 %v2959_v51, %v2989_v14  ;;  %v1197_v31 = vrot.slane %v1196_v59, 4  ;;  %v3010_v60 = vld [vmem:[#allocation45_spill] sm:$0xff] }
 0x130   :  { %v1270_v22 = vadd.f32 %v1269_v25, %v3006_v45  ;;  %v1281_v26 = vmin.f32 %v1280_v10, %v1279_v58  ;;  %v1294_v1 = vadd.f32 %v1293_v57, %v3007_v53  ;;  %v1295_v3 = vmin.f32 %v1279_v58, %v1276_v63 }
 0x131   :  { %v1212_v43 = vadd.f32 %v1211_v15, %v1209_v44  ;;  %v1225_v11 = vmul.f32 %v2922_v62, %v2995_v8  ;;  %v1312_v24 = vadd.f32 %v1291_v6, %v3008_v56  ;;  %v1227_v20 = vadd.f32 %v1226_v41, %v1224_v16  ;;  %v3013_v16 = vld [vmem:[#allocation41_spill] sm:$0xff] }
 0x132   :  { %v1271_v55 = vmin.f32 %v1257_v38, %v1270_v22  ;;  %v1282_v28 = vadd.f32 %v1281_v26, %v3009_v35  ;;  %v1283_v27 = vmin.f32 %v1270_v22, %v1267_v47  ;;  %v1296_v52 = vmin.f32 %v1295_v3, %v1294_v1  ;;  %v3012_v47 = vld [vmem:[#allocation52_spill] sm:$0xff]  ;;  %v3015_v3 = vld [vmem:[#allocation31_spill] sm:$0xff] }
 0x133   :  { %v1240_v51 = vmul.f32 %v2947_v5, %v2990_v46  ;;  %v1242_v14 = vadd.f32 %v1239_v49, %v1238_v30  ;;  %v1313_v17 = vmin.f32 %v1294_v1, %v1291_v6  ;;  %v2651_v62 = vadd.f32 %v1165_v0, %v2598_v50  ;;  %v3014_v49 = vld [vmem:[#allocation14_spill] sm:$0xff] }
 0x134   :  { %v1272_v63 = vadd.f32 %v1271_v55, %v3010_v60  ;;  %v1284_v9 = vmin.f32 %v1283_v27, %v1282_v28  ;;  %v1297_v33 = vadd.f32 %v1296_v52, %v3011_v39  ;;  %v1298_v29 = vmin.f32 %v1282_v28, %v1279_v58  ;;  %v3018_v60 = vld [vmem:[#allocation16_spill] sm:$0xff] }
 0x135   :  { %v1183_v38 = vrot.slane %v1182_v34, 2  ;;  %v1198_v44 = vadd.f32 %v1197_v31, %v1196_v59  ;;  %v1314_v15 = vmin.f32 %v1313_v17, %v1312_v24  ;;  %v1213_v5 = vrot.slane %v1212_v43, 4 }
 0x136   :  { %v1285_v25 = vadd.f32 %v1284_v9, %v3012_v47  ;;  %v1286_v4 = vmin.f32 %v1272_v63, %v1270_v22  ;;  %v1299_v10 = vmin.f32 %v1298_v29, %v1297_v33  ;;  %v1316_v57 = vmin.f32 %v1297_v33, %v1294_v1 }
 0x137   :  { %v1228_v46 = vadd.f32 %v1227_v20, %v1225_v11  ;;  %v1241_v6 = vmul.f32 %v2951_v42, %v2995_v8  ;;  %v1315_v41 = vadd.f32 %v1314_v15, %v3013_v16  ;;  %v1243_v30 = vadd.f32 %v1242_v14, %v1240_v51  ;;  %v3016_v42 = vld [vmem:[#allocation42_spill] sm:$0xff]  ;;  %v3017_v20 = vld [vmem:[#allocation17_spill] sm:$0xff] }
 0x138   :  { %v1287_v58 = vmin.f32 %v1286_v4, %v1285_v25  ;;  %v1300_v50 = vadd.f32 %v1299_v10, %v3014_v49  ;;  %v1301_v0 = vmin.f32 %v1285_v25, %v1282_v28  ;;  %v2658_v45 = vsub.f32 1.0, %v1445_v7  ;;  %v3020_v4 = vld [vmem:[#allocation35_spill] sm:$0xff]  ;;  %v3021_v49 = vld [vmem:[#allocation44_spill] sm:$0xff] }
 0x139   :  { %v1184_v59 = vadd.f32 %v1183_v38, %v1182_v34  ;;  %v1317_v26 = vmin.f32 %v1316_v57, %v1315_v41  ;;  %v1334_v53 = vmin.f32 %v1315_v41, %v1312_v24  ;;  %v1199_v22 = vrot.slane %v1198_v44, 2  ;;  %v3019_v38 = vld [vmem:[#allocation20_spill] sm:$0xff] }
 0x13a   :  { %v1288_v1 = vadd.f32 %v1287_v58, %v3015_v3  ;;  %v1302_v31 = vmin.f32 %v1301_v0, %v1300_v50  ;;  %v1319_v11 = vmin.f32 %v1300_v50, %v1297_v33  ;;  %v1214_v56 = vadd.f32 %v1213_v5, %v1212_v43  ;;  %v3022_v3 = vld [vmem:[#allocation46_spill] sm:$0xff] }
 0x13b   :  { %v1229_v55 = vrot.slane %v1228_v46, 4  ;;  %v1318_v8 = vadd.f32 %v1317_v26, %v3016_v42  ;;  %v1335_v35 = vadd.f32 %v1334_v53, %v2563_v23  ;;  %v1244_v27 = vadd.f32 %v1243_v30, %v1241_v6 }
 0x13c   :  { %v1289_v52 = vmin.f32 %v1272_v63, %v1288_v1  ;;  %v1303_v28 = vadd.f32 %v1302_v31, %v3017_v20  ;;  %v1304_v7 = vmin.f32 %v1288_v1, %v1285_v25  ;;  %v1446_v34 = vclamps-f32 %v2622_v21, 1.0 }
 0x13d   :  { %v1153_v24 = vrot.slane %v2628_v32, 1  ;;  %v1320_v51 = vmin.f32 %v1319_v11, %v1318_v8  ;;  %v1336_v14 = vmin.f32 %v1318_v8, %v1315_v41  ;;  %v1200_v17 = vadd.f32 %v1199_v22, %v1198_v44 }
 0x13e   :  { %v1290_v9 = vadd.f32 %v1289_v52, %v3018_v60  ;;  %v1305_v43 = vmin.f32 %v1304_v7, %v1303_v28  ;;  %v1322_v39 = vmin.f32 %v1303_v28, %v1300_v50  ;;  %v1185_v33 = vrot.slane %v1184_v59, 1 }
 0x13f   :  { %v1215_v29 = vrot.slane %v1214_v56, 2  ;;  %v1321_v23 = vadd.f32 %v1320_v51, %v3019_v38  ;;  %v1337_v15 = vmin.f32 %v1336_v14, %v1335_v35  ;;  %v1230_v63 = vadd.f32 %v1229_v55, %v1228_v46  ;;  %v3023_v51 = vld [vmem:[#allocation15_spill] sm:$0xff] }
 0x140   :  { %v1245_v47 = vrot.slane %v1244_v27, 4  ;;  %v1306_v25 = vadd.f32 %v1305_v43, %v3020_v4  ;;  %v1307_v10 = vmin.f32 %v1290_v9, %v1288_v1  ;;  %v1167_v21 = vrot.slane %v2651_v62, 2 }
 0x141   :  { %v1323_v57 = vmin.f32 %v1322_v39, %v1321_v23  ;;  %v1338_v5 = vadd.f32 %v1337_v15, %v2565_v36  ;;  %v1339_v44 = vmin.f32 %v1321_v23, %v1318_v8  ;;  %v2671_v6 = vsub.f32 1.0, %v1446_v34 }
 0x142   :  { %v1201_v16 = vrot.slane %v1200_v17, 1  ;;  %v1308_v41 = vmin.f32 %v1307_v10, %v1306_v25  ;;  %v1325_v30 = vmin.f32 %v1306_v25, %v1303_v28  ;;  %v1186_v58 = vadd.f32 %v1185_v33, %v1184_v59 }
 0x143   :  { %v1324_v50 = vadd.f32 %v1323_v57, %v3021_v49  ;;  %v1340_v0 = vmin.f32 %v1339_v44, %v1338_v5  ;;  %v1354_v46 = vmin.f32 %v1338_v5, %v1335_v35  ;;  %v1216_v26 = vadd.f32 %v1215_v29, %v1214_v56 }
 0x144   :  { %v1231_v53 = vrot.slane %v1230_v63, 2  ;;  %v1246_v22 = vadd.f32 %v1245_v47, %v1244_v27  ;;  %v1309_v1 = vadd.f32 %v1308_v41, %v3022_v3  ;;  %v1168_v42 = vadd.f32 %v1167_v21, %v2651_v62 }
 0x145   :  { %v1326_v31 = vmin.f32 %v1325_v30, %v1324_v50  ;;  %v1341_v11 = vadd.f32 %v1340_v0, %v2569_v48  ;;  %v1342_v36 = vmin.f32 %v1324_v50, %v1321_v23  ;;  %v1355_v55 = vadd.f32 %v1354_v46, %v2595_v19 }
 0x146   :  { %v1202_v8 = vadd.f32 %v1201_v16, %v1200_v17  ;;  %v1310_v52 = vmin.f32 %v1290_v9, %v1309_v1  ;;  %v1328_v59 = vmin.f32 %v1309_v1, %v1306_v25  ;;  %v1449_v20 = vclamps-f32 %v1186_v58, 1.0 }
 0x147   :  { %v1327_v28 = vadd.f32 %v1326_v31, %v2545_v54  ;;  %v1343_v35 = vmin.f32 %v1342_v36, %v1341_v11  ;;  %v1356_v56 = vmin.f32 %v1341_v11, %v1338_v5  ;;  %v1217_v7 = vrot.slane %v1216_v26, 1 }
 0x148   :  { %v1232_v27 = vadd.f32 %v1231_v53, %v1230_v63  ;;  %v1247_v34 = vrot.slane %v1246_v22, 2  ;;  %v1311_v14 = vadd.f32 %v1310_v52, %v3023_v51  ;;  %v1154_v62 = vadd.f32 %v1153_v24, %v2628_v32 }
 0x149   :  { %v1329_v60 = vmin.f32 %v1328_v59, %v1327_v28  ;;  %v1344_v48 = vadd.f32 %v1343_v35, %v2571_v37  ;;  %v1345_v43 = vmin.f32 %v1327_v28, %v1324_v50  ;;  %v1357_v19 = vmin.f32 %v1356_v56, %v1355_v55 }
 0x14a   :  { %v1169_v17 = vrot.slane %v1168_v42, 1  ;;  %v1450_v9 = vclamps-f32 %v1202_v8, 1.0  ;;  %v1331_v39 = vmin.f32 %v1311_v14, %v1309_v1  ;;  %v1189_v23 = vsub.f32 1.0, %v1449_v20 }
 0x14b   :  { %v1330_v33 = vadd.f32 %v1329_v60, %v2547_v2  ;;  %v1346_v54 = vmin.f32 %v1345_v43, %v1344_v48  ;;  %v1358_v29 = vadd.f32 %v1357_v19, %v2604_v13  ;;  %v1359_v38 = vmin.f32 %v1344_v48, %v1341_v11 }
 0x14c   :  { %v1218_v15 = vadd.f32 %v1217_v7, %v1216_v26  ;;  %v1233_v63 = vrot.slane %v1232_v27, 1  ;;  %v1248_v47 = vadd.f32 %v1247_v34, %v1246_v22  ;;  %v1447_v21 = vclamps-f32 %v1154_v62, 1.0 }
 0x14d   :  { %v1332_v4 = vmin.f32 %v1331_v39, %v1330_v33  ;;  %v1347_v37 = vadd.f32 %v1346_v54, %v2573_v12  ;;  %v1348_v25 = vmin.f32 %v1330_v33, %v1327_v28  ;;  %v1360_v10 = vmin.f32 %v1359_v38, %v1358_v29 }
 0x14e   :  { %v1170_v32 = vadd.f32 %v1169_v17, %v1168_v42  ;;  %v1205_v24 = vsub.f32 1.0, %v1450_v9  ;;  %v1371_v57 = vmin.f32 %v1358_v29, %v1355_v55  ;;  %v1451_v16 = vclamps-f32 %v1218_v15, 1.0 }
 0x14f   :  { %v1333_v5 = vadd.f32 %v1332_v4, %v2551_v61  ;;  %v1349_v2 = vmin.f32 %v1348_v25, %v1347_v37  ;;  %v1361_v44 = vadd.f32 %v1360_v10, %v2658_v45  ;;  %v1362_v13 = vmin.f32 %v1347_v37, %v1344_v48 }
 0x150   :  { %v1234_v41 = vadd.f32 %v1233_v63, %v1232_v27  ;;  %v1249_v30 = vrot.slane %v1248_v47, 1  ;;  %v1372_v58 = vadd.f32 %v1371_v57, %v1189_v23  ;;  %v1157_v46 = vsub.f32 1.0, %v1447_v21 }
 0x151   :  { %v1350_v49 = vadd.f32 %v1349_v2, %v2575_v18  ;;  %v1351_v50 = vmin.f32 %v1333_v5, %v1330_v33  ;;  %v1363_v12 = vmin.f32 %v1362_v13, %v1361_v44  ;;  %v1373_v0 = vmin.f32 %v1361_v44, %v1358_v29 }
 0x152   :  { %v1448_v26 = vclamps-f32 %v1170_v32, 1.0  ;;  %v1221_v1 = vsub.f32 1.0, %v1451_v16  ;;  %v1452_v31 = vclamps-f32 %v1234_v41, 1.0  ;;  %v1250_v45 = vadd.f32 %v1249_v30, %v1248_v47 }
 0x153   :  { %v1352_v53 = vmin.f32 %v1351_v50, %v1350_v49  ;;  %v1364_v22 = vadd.f32 %v1363_v12, %v2671_v6  ;;  %v1365_v3 = vmin.f32 %v1350_v49, %v1347_v37  ;;  %v1374_v61 = vmin.f32 %v1373_v0, %v1372_v58 }
 0x154   :  { %v1173_v8 = vsub.f32 1.0, %v1448_v26  ;;  %v1237_v20 = vsub.f32 1.0, %v1452_v31  ;;  %v1453_v28 = vclamps-f32 %v1250_v45, 1.0 }
 0x155   :  { %v1353_v11 = vadd.f32 %v1352_v53, %v2591_v40  ;;  %v1366_v36 = vmin.f32 %v1365_v3, %v1364_v22  ;;  %v1375_v55 = vadd.f32 %v1374_v61, %v1205_v24  ;;  %v1376_v42 = vmin.f32 %v1364_v22, %v1361_v44 }
 0x156   :  { %v1253_v34 = vsub.f32 1.0, %v1453_v28 }
 0x157   :  { %v1367_v18 = vadd.f32 %v1366_v36, %v1157_v46  ;;  %v1368_v52 = vmin.f32 %v1353_v11, %v1350_v49  ;;  %v1377_v59 = vmin.f32 %v1376_v42, %v1375_v55 }
 0x159   :  { %v1369_v35 = vmin.f32 %v1368_v52, %v1367_v18  ;;  %v1378_v56 = vadd.f32 %v1377_v59, %v1221_v1  ;;  %v1379_v7 = vmin.f32 %v1367_v18, %v1364_v22 }
 0x15b   :  { %v1370_v6 = vadd.f32 %v1369_v35, %v1173_v8  ;;  %v1380_v27 = vmin.f32 %v1379_v7, %v1378_v56 }
 0x15d   :  { %v1381_v51 = vadd.f32 %v1380_v27, %v1237_v20  ;;  %v1382_v14 = vmin.f32 %v1370_v6, %v1367_v18 }
 0x15f   :  { %v1383_v40 = vmin.f32 %v1382_v14, %v1381_v51 }
 0x161   :  { %v1384_v60 = vadd.f32 %v1383_v40, %v1253_v34 }
 0x163   :  { %1385 = vst [vmem:[#allocation7] sm:$0x1] %v1384_v60 }
 0x164   :  { %1546 = shalt.err (!%p1543_p6)
}
 0x165   :  { %s1547_s11 = scalar_lea.hbm %s2704_s2, 16 }
 0x166   :  { %p1548_p7 = scmp.ne.s32.totalorder %s2704_s2, %s1547_s11  ;;  %p1551_p8 = scmp.lt.u32.totalorder %s1547_s11, %s2704_s2 }
 0x168   :  { %p1553_p9 = pnand %p1551_p8, %p1548_p7 }
 0x16a   :  { %1556 = shalt.err (!%p1553_p9)
}
 0x16b   :  { %1395 = dma.vmem_to_hbm [thread:$0]  %s1393_s6, 16, %s2704_s2, [#allocation4]  }
 0x16c   :  { %1561 = dma.done.wait [#allocation4], 16  }
 0x16d   :  { %1562 = vsyncadd [#allocation4], 4294967280 }
 0x16e   :  { %1399 = vsyncpa [#allocation3], 1 }
 0x16f   :  { %1400 = vsyncpa [#allocation6], 1 }
 0x170   :  { %1401 = vsyncpa [#allocation4], 1 }

</bundles_post_ra>
